<compile_context>
chip_gen: v5e
topology: v5e:2x2
jax: 0.10.0
libtpu: 0.0.40
codegen_flags: <defaults>
</compile_context>

<pallas_src>
import functools
import math

import jax
import jax.numpy as jnp
from jax.experimental import pallas as pl
from jax.experimental.pallas import tpu as pltpu


def _round_up(x, m):
    return ((x + m - 1) // m) * m


@functools.lru_cache(maxsize=None)
def _tpu_vmem_capacity():
    try:
        info = pltpu.get_tpu_info()
        cap = getattr(info, "vmem_capacity_bytes", None)
        if cap:
            return int(cap)
    except Exception:
        pass
    return 128 * 1024 * 1024          # v5e/v6e default


def _pick_time_tile(t2):
    """tt is always a multiple of 128; t2 padded to a multiple of 128 only."""
    t2p = _round_up(max(t2, 1), 128)
    base = 128 if _tpu_vmem_capacity() <= 64 * 1024 * 1024 else 256   # v7x vs v5e/v6e
    tt = base
    while t2p % tt:
        tt -= 128
    return tt, t2p


def _vmem_budget_bytes():
    cap = _tpu_vmem_capacity()
    if cap <= 64 * 1024 * 1024:                       # v7x: leave compiler headroom
        return cap - 12 * 1024 * 1024
    return min(100 * 1024 * 1024, cap - 24 * 1024 * 1024)   # v5e/v6e


# ----------------------------- fused Pallas kernel -----------------------------

def _subsample6_kernel(xt_ref, w1_ref, b1_ref, w2_ref, b2_ref, wl_ref, bl_ref,
                       pe_ref, o_ref, y1_scr, hstk_scr, *, scale):
    """One (batch, time-tile) step of the fused Conv2dSubsampling6 forward.

    Shapes (tt = time tile on lanes, C = odim, Np = padded odim, F1/F2 = freq dims):
      xt_ref   : (1, 5, 9, F1*tt) bf16   taps: xt[0,i,3*di+dj, f1*tt+t] = x[6t+2i+di, 2f1+dj]
      w1_ref   : (C, 9)      bf16        conv1 weight (out_ch, 3*3)
      b1_ref   : (C, 1)      f32
      w2_ref   : (25, C, C)  bf16        conv2 weight, [5*i+j, out_ch, in_ch]
      b2_ref   : (C, 1)      f32
      wl_ref   : (Np, F2*C)  bf16        Linear weight, columns (f2-major, c-minor)
      bl_ref   : (Np, 1)     f32
      pe_ref   : (Np, tt)    f32         positional encoding, transposed
      o_ref    : (1, Np, tt) f32         transposed output (un-padded / transposed outside)
      y1_scr   : (5, C, F1*tt) bf16      hoisted conv1+ReLU activations
      hstk_scr : (F2, C, tt)  bf16       staged conv2+ReLU activations (channel-major)
    """
    c_dim = w2_ref.shape[1]
    f2_dim = hstk_scr.shape[0]
    tt = o_ref.shape[2]

    # --- stage 1: conv1 hoisted + batched: 5 wide (C,9)@(9,F1*tt) matmuls -----
    w1 = w1_ref[...]
    b1 = b1_ref[...]
    for i in range(5):
        y1 = jnp.dot(w1, xt_ref[0, i, :, :], preferred_element_type=jnp.float32)
        y1_scr[i, :, :] = jnp.maximum(y1 + b1, 0.0).astype(jnp.bfloat16)

    # --- stage 2: conv2 + ReLU per f2, staged channel-major into VMEM --------
    b2 = b2_ref[...]

    def f2_body(f2, carry):
        acc = jnp.zeros((c_dim, tt), jnp.float32)
        for j in range(5):                                  # conv2 freq tap
            off = pl.multiple_of((3 * f2 + j) * tt, tt)     # lane-aligned (tt % 128 == 0)
            for i in range(5):                              # conv2 time tap
                acc = acc + jnp.dot(w2_ref[i * 5 + j, :, :],
                                    y1_scr[i, :, pl.ds(off, tt)],
                                    preferred_element_type=jnp.float32)
        hstk_scr[f2, :, :] = jnp.maximum(acc + b2, 0.0).astype(jnp.bfloat16)
        return carry

    jax.lax.fori_loop(0, f2_dim, f2_body, 0)

    # --- stage 3: channel-major flatten + Linear + scale + PE (one long-K matmul)
    h_flat = hstk_scr[...].reshape(f2_dim * c_dim, tt)
    lin = jnp.dot(wl_ref[...], h_flat, preferred_element_type=jnp.float32)
    out = (lin + bl_ref[...]) * scale + pe_ref[...]
    # TODO(synk): dropout inside PositionalEncoding is a training-time op; eval identity here.
    o_ref[0, :, :] = out.astype(o_ref.dtype)


# --------------------------------- module glue ---------------------------------

def sinusoidal_pe(length, d_model):
    assert d_model % 2 == 0, "PositionalEncoding assumes an even d_model"
    pos = jnp.arange(length, dtype=jnp.float32)[:, None]
    div = jnp.exp(jnp.arange(0, d_model, 2, dtype=jnp.float32)
                  * -(math.log(10000.0) / d_model))
    pe = jnp.zeros((length, d_model), jnp.float32)
    pe = pe.at[:, 0::2].set(jnp.sin(pos * div))
    pe = pe.at[:, 1::2].set(jnp.cos(pos * div))
    return pe


def init_params(idim, odim, key):
    # Faithful torch layouts: Conv2d weight (out, in, kh, kw); Linear weight (out, in).
    k1, k2, k3, k4, k5, k6 = jax.random.split(key, 6)
    f_out = ((idim - 1) // 2 - 2) // 3
    return dict(
        w1=jax.random.normal(k1, (odim, 1, 3, 3), jnp.float32) * 0.1,
        b1=jax.random.normal(k2, (odim,), jnp.float32) * 0.1,
        w2=jax.random.normal(k3, (odim, odim, 5, 5), jnp.float32) * 0.02,
        b2=jax.random.normal(k4, (odim,), jnp.float32) * 0.1,
        wl=jax.random.normal(k5, (odim, odim * f_out), jnp.float32) * 0.05,
        bl=jax.random.normal(k6, (odim,), jnp.float32) * 0.1,
    )


def prepare_params(params):
    """One-time weight repack (done once, outside the forward pass)."""
    odim = params["w1"].shape[0]
    f2_dim = params["wl"].shape[1] // odim
    n_pad = _round_up(odim, 128)                    # lane-dense output width

    w1t = params["w1"].reshape(odim, 9).astype(jnp.bfloat16)                  # (C, 9)
    w2t = jnp.transpose(params["w2"], (2, 3, 0, 1)).reshape(25, odim, odim)
    w2t = w2t.astype(jnp.bfloat16)                                            # (25, Co, Ci)
    # torch flatten order is flat[c*F2 + f2]; permute Linear columns to (f2-major,
    # c-minor) so the kernel's staged (F2, C, tt) scratch feeds one long-K matmul.
    wlt = params["wl"].reshape(odim, odim, f2_dim)                 # [n, c, f2]
    wlt = jnp.transpose(wlt, (0, 2, 1)).reshape(odim, f2_dim * odim)  # [n, f2*C + c]
    wlt = jnp.pad(wlt, ((0, n_pad - odim), (0, 0))).astype(jnp.bfloat16)
    return dict(
        w1t=w1t,
        b1=params["b1"].reshape(odim, 1).astype(jnp.float32),
        w2t=w2t,
        b2=params["b2"].reshape(odim, 1).astype(jnp.float32),
        wlt=wlt,
        bl=jnp.pad(params["bl"], (0, n_pad - odim)).reshape(n_pad, 1).astype(jnp.float32),
    )


def conv2d_subsampling6(x, x_mask, prep):
    """x: (B, T, idim) f32; x_mask: (B, 1, T) bool or None."""
    B, T, idim = x.shape
    odim = prep["w2t"].shape[1]
    n_pad = prep["bl"].shape[0]
    f2_dim = prep["wlt"].shape[1] // odim

    t1 = (T - 3) // 2 + 1
    f1_dim = (idim - 3) // 2 + 1
    t2 = (t1 - 5) // 3 + 1
    assert f2_dim == (f1_dim - 5) // 3 + 1

    tt, t2p = _pick_time_tile(t2)           # tt multiple of 128, t2p multiple of tt
    n_tiles = t2p // tt

    # Wrapper-side tap gather on the tiny 1-channel input only, in bf16 and in the
    # kernel's tile-interleaved layout:
    #   xt[b, i, 3*di+dj, tile*F1*tt + f1*tt + tau] = x[b, 6*(tile*tt+tau)+2*i+di, 2*f1+dj]
    xb = x.astype(jnp.bfloat16)
    taps_i = []
    for i in range(5):                       # conv2 time tap
        taps = []
        for di in range(3):                  # conv1 time tap
            for dj in range(3):              # conv1 freq tap
                r0 = 2 * i + di
                taps.append(xb[:, r0:r0 + 6 * (t2 - 1) + 1:6,
                               dj:dj + 2 * (f1_dim - 1) + 1:2])     # (B, t2, F1)
        taps_i.append(jnp.stack(taps, axis=1))                       # (B, 9, t2, F1)
    xt = jnp.stack(taps_i, axis=1)                                   # (B, 5, 9, t2, F1)
    if t2p != t2:
        xt = jnp.pad(xt, ((0, 0), (0, 0), (0, 0), (0, t2p - t2), (0, 0)))
    xt = xt.reshape(B, 5, 9, n_tiles, tt, f1_dim)
    xt = jnp.transpose(xt, (0, 1, 2, 3, 5, 4))                       # (..., F1, tt)
    xt = xt.reshape(B, 5, 9, n_tiles * f1_dim * tt)

    # Positional encoding: built once per length, transposed/padded, block-indexed
    # by the time tile only (never tiled by batch).
    pe_t = jnp.pad(sinusoidal_pe(t2p, odim).T, ((0, n_pad - odim), (0, 0)))  # (Np, t2p)

    grid = (B, n_tiles)
    out_t = pl.pallas_call(
        functools.partial(_subsample6_kernel, scale=math.sqrt(odim)),
        out_shape=jax.ShapeDtypeStruct((B, n_pad, t2p), jnp.float32),
        grid_spec=pltpu.PrefetchScalarGridSpec(
            num_scalar_prefetch=0,
            grid=grid,
            in_specs=[
                pl.BlockSpec((1, 5, 9, f1_dim * tt), lambda b, t: (b, 0, 0, t)),
                pl.BlockSpec((odim, 9), lambda b, t: (0, 0)),
                pl.BlockSpec((odim, 1), lambda b, t: (0, 0)),
                pl.BlockSpec((25, odim, odim), lambda b, t: (0, 0, 0)),
                pl.BlockSpec((odim, 1), lambda b, t: (0, 0)),
                pl.BlockSpec((n_pad, f2_dim * odim), lambda b, t: (0, 0)),
                pl.BlockSpec((n_pad, 1), lambda b, t: (0, 0)),
                pl.BlockSpec((n_pad, tt), lambda b, t: (0, t)),
            ],
            out_specs=pl.BlockSpec((1, n_pad, tt), lambda b, t: (b, 0, t)),
            scratch_shapes=[
                pltpu.VMEM((5, odim, f1_dim * tt), jnp.bfloat16),   # hoisted conv1
                pltpu.VMEM((f2_dim, odim, tt), jnp.bfloat16),       # staged conv2
            ],
        ),
        compiler_params=pltpu.CompilerParams(
            dimension_semantics=("parallel", "parallel"),
            vmem_limit_bytes=_vmem_budget_bytes(),
        ),
    )(xt, prep["w1t"], prep["b1"], prep["w2t"], prep["b2"],
      prep["wlt"], prep["bl"], pe_t)

    y = jnp.transpose(out_t, (0, 2, 1))[:, :t2, :odim]
    if x_mask is None:
        return y, None
    return y, x_mask[:, :, :-2:2][:, :, :-4:3]


# ------------------------------ pure-JAX reference ------------------------------

def reference_forward(x, params):
    odim = params["w1"].shape[0]
    h = x[:, None, :, :]
    y = jax.lax.conv_general_dilated(
        h, params["w1"], (2, 2), "VALID",
        dimension_numbers=("NCHW", "OIHW", "NCHW"),
        precision=jax.lax.Precision.HIGHEST)
    y = jax.nn.relu(y + params["b1"][None, :, None, None])
    y = jax.lax.conv_general_dilated(
        y, params["w2"], (3, 3), "VALID",
        dimension_numbers=("NCHW", "OIHW", "NCHW"),
        precision=jax.lax.Precision.HIGHEST)
    y = jax.nn.relu(y + params["b2"][None, :, None, None])
    b, c, t, f = y.shape
    flat = jnp.transpose(y, (0, 2, 1, 3)).reshape(b, t, c * f)
    lin = jnp.dot(flat, params["wl"].T,
                  precision=jax.lax.Precision.HIGHEST) + params["bl"]
    return lin * math.sqrt(odim) + sinusoidal_pe(t, odim)[None]


if __name__ == "__main__":
    B, T, idim, odim = 2, 32, 16, 32
    key = jax.random.PRNGKey(0)
    kx, kp = jax.random.split(key)
    x = jax.random.normal(kx, (B, T, idim), jnp.float32)
    x_mask = jnp.ones((B, 1, T), dtype=bool)

    params = init_params(idim, odim, kp)
    prep = prepare_params(params)

    fwd = jax.jit(conv2d_subsampling6)
    y, y_mask = fwd(x, x_mask, prep)
    jax.block_until_ready(y)
    jax.block_until_ready(y_mask)

    t1 = (T - 3) // 2 + 1
    t2 = (t1 - 5) // 3 + 1
    assert y.shape == (B, t2, odim), y.shape
    assert y_mask.shape == (B, 1, t2), y_mask.shape

    y_ref = reference_forward(x, params)
    err = float(jnp.max(jnp.abs(y - y_ref)))
    assert err < 0.1, f"max abs error vs reference too large: {err}"

    print("KERNEL_OK")
</pallas_src>

<mosaic_0001>
module attributes {stable_mosaic.version = 11 : i64} {
  func.func @_subsample6_kernel(%arg0: i32, %arg1: i32, %arg2: memref<1x5x9x896xbf16, #tpu.memory_space<vmem>>, %arg3: memref<32x9xbf16, #tpu.memory_space<vmem>>, %arg4: memref<32x1xf32, #tpu.memory_space<vmem>>, %arg5: memref<25x32x32xbf16, #tpu.memory_space<vmem>>, %arg6: memref<32x1xf32, #tpu.memory_space<vmem>>, %arg7: memref<128x32xbf16, #tpu.memory_space<vmem>>, %arg8: memref<128x1xf32, #tpu.memory_space<vmem>>, %arg9: memref<128x128xf32, #tpu.memory_space<vmem>>, %arg10: memref<1x128x128xf32, #tpu.memory_space<vmem>>, %arg11: memref<5x32x896xbf16, #tpu.memory_space<vmem>>, %arg12: memref<1x32x128xbf16, #tpu.memory_space<vmem>>) attributes {dimension_semantics = [#tpu.dimension_semantics<parallel>, #tpu.dimension_semantics<parallel>], iteration_bounds = array<i64: 2, 1>, scalar_prefetch = 0 : i64, scratch_operands = 2 : i64, tpu.core_type = #tpu.core_type<tc>, window_params = [{transform_indices = @transform_0, window_bounds = array<i64: 1, 5, 9, 896>}, {pipeline_mode = #tpu.pipeline_mode<synchronous>, transform_indices = @transform_1, window_bounds = array<i64: 32, 9>}, {pipeline_mode = #tpu.pipeline_mode<synchronous>, transform_indices = @transform_2, window_bounds = array<i64: 32, 1>}, {pipeline_mode = #tpu.pipeline_mode<synchronous>, transform_indices = @transform_3, window_bounds = array<i64: 25, 32, 32>}, {pipeline_mode = #tpu.pipeline_mode<synchronous>, transform_indices = @transform_4, window_bounds = array<i64: 32, 1>}, {pipeline_mode = #tpu.pipeline_mode<synchronous>, transform_indices = @transform_5, window_bounds = array<i64: 128, 32>}, {pipeline_mode = #tpu.pipeline_mode<synchronous>, transform_indices = @transform_6, window_bounds = array<i64: 128, 1>}, {transform_indices = @transform_7, window_bounds = array<i64: 128, 128>}, {transform_indices = @transform_8, window_bounds = array<i64: 1, 128, 128>}]} {
    %c0 = arith.constant 0 : index
    %c0_0 = arith.constant 0 : index
    %0 = vector.load %arg3[%c0, %c0_0] : memref<32x9xbf16, #tpu.memory_space<vmem>>, vector<32x9xbf16>
    %c0_1 = arith.constant 0 : index
    %c0_2 = arith.constant 0 : index
    %1 = vector.load %arg4[%c0_1, %c0_2] : memref<32x1xf32, #tpu.memory_space<vmem>>, vector<32x1xf32>
    %c0_3 = arith.constant 0 : index
    %c0_4 = arith.constant 0 : index
    %c0_5 = arith.constant 0 : index
    %c0_6 = arith.constant 0 : index
    %2 = vector.load %arg2[%c0_3, %c0_4, %c0_5, %c0_6] : memref<1x5x9x896xbf16, #tpu.memory_space<vmem>>, vector<1x1x9x896xbf16>
    %3 = vector.shape_cast %2 : vector<1x1x9x896xbf16> to vector<9x896xbf16>
    %cst = arith.constant dense<0.000000e+00> : vector<32x896xf32>
    %4 = tpu.matmul %0, %3, %cst {dimension_numbers = #tpu.dot_dimension_numbers<[1], [0], [0], [1], [0, 0, 1, 1], [], []>} : vector<32x9xbf16>, vector<9x896xbf16>, vector<32x896xf32> -> vector<32x896xf32>
    %5 = vector.broadcast %1 : vector<32x1xf32> to vector<32x896xf32>
    %6 = arith.addf %4, %5 : vector<32x896xf32>
    %cst_7 = arith.constant 0.000000e+00 : f32
    %7 = vector.broadcast %cst_7 : f32 to vector<32x896xf32>
    %8 = arith.maximumf %6, %7 : vector<32x896xf32>
    %9 = arith.truncf %8 : vector<32x896xf32> to vector<32x896xbf16>
    %c0_8 = arith.constant 0 : index
    %c0_9 = arith.constant 0 : index
    %c0_10 = arith.constant 0 : index
    %10 = vector.load %arg11[%c0_8, %c0_9, %c0_10] : memref<5x32x896xbf16, #tpu.memory_space<vmem>>, vector<1x32x896xbf16>
    %11 = vector.shape_cast %10 : vector<1x32x896xbf16> to vector<32x896xbf16>
    %12 = vector.shape_cast %9 : vector<32x896xbf16> to vector<1x32x896xbf16>
    tpu.vector_store %arg11[%c0_8, %c0_9, %c0_10], %12 {strides = array<i32>} : memref<5x32x896xbf16, #tpu.memory_space<vmem>>, vector<1x32x896xbf16>,
    %c0_11 = arith.constant 0 : index
    %c1 = arith.constant 1 : index
    %c0_12 = arith.constant 0 : index
    %c0_13 = arith.constant 0 : index
    %13 = vector.load %arg2[%c0_11, %c1, %c0_12, %c0_13] : memref<1x5x9x896xbf16, #tpu.memory_space<vmem>>, vector<1x1x9x896xbf16>
    %14 = vector.shape_cast %13 : vector<1x1x9x896xbf16> to vector<9x896xbf16>
    %cst_14 = arith.constant dense<0.000000e+00> : vector<32x896xf32>
    %15 = tpu.matmul %0, %14, %cst_14 {dimension_numbers = #tpu.dot_dimension_numbers<[1], [0], [0], [1], [0, 0, 1, 1], [], []>} : vector<32x9xbf16>, vector<9x896xbf16>, vector<32x896xf32> -> vector<32x896xf32>
    %16 = vector.broadcast %1 : vector<32x1xf32> to vector<32x896xf32>
    %17 = arith.addf %15, %16 : vector<32x896xf32>
    %cst_15 = arith.constant 0.000000e+00 : f32
    %18 = vector.broadcast %cst_15 : f32 to vector<32x896xf32>
    %19 = arith.maximumf %17, %18 : vector<32x896xf32>
    %20 = arith.truncf %19 : vector<32x896xf32> to vector<32x896xbf16>
    %c1_16 = arith.constant 1 : index
    %c0_17 = arith.constant 0 : index
    %c0_18 = arith.constant 0 : index
    %21 = vector.load %arg11[%c1_16, %c0_17, %c0_18] : memref<5x32x896xbf16, #tpu.memory_space<vmem>>, vector<1x32x896xbf16>
    %22 = vector.shape_cast %21 : vector<1x32x896xbf16> to vector<32x896xbf16>
    %23 = vector.shape_cast %20 : vector<32x896xbf16> to vector<1x32x896xbf16>
    tpu.vector_store %arg11[%c1_16, %c0_17, %c0_18], %23 {strides = array<i32>} : memref<5x32x896xbf16, #tpu.memory_space<vmem>>, vector<1x32x896xbf16>,
    %c0_19 = arith.constant 0 : index
    %c2 = arith.constant 2 : index
    %c0_20 = arith.constant 0 : index
    %c0_21 = arith.constant 0 : index
    %24 = vector.load %arg2[%c0_19, %c2, %c0_20, %c0_21] : memref<1x5x9x896xbf16, #tpu.memory_space<vmem>>, vector<1x1x9x896xbf16>
    %25 = vector.shape_cast %24 : vector<1x1x9x896xbf16> to vector<9x896xbf16>
    %cst_22 = arith.constant dense<0.000000e+00> : vector<32x896xf32>
    %26 = tpu.matmul %0, %25, %cst_22 {dimension_numbers = #tpu.dot_dimension_numbers<[1], [0], [0], [1], [0, 0, 1, 1], [], []>} : vector<32x9xbf16>, vector<9x896xbf16>, vector<32x896xf32> -> vector<32x896xf32>
    %27 = vector.broadcast %1 : vector<32x1xf32> to vector<32x896xf32>
    %28 = arith.addf %26, %27 : vector<32x896xf32>
    %cst_23 = arith.constant 0.000000e+00 : f32
    %29 = vector.broadcast %cst_23 : f32 to vector<32x896xf32>
    %30 = arith.maximumf %28, %29 : vector<32x896xf32>
    %31 = arith.truncf %30 : vector<32x896xf32> to vector<32x896xbf16>
    %c2_24 = arith.constant 2 : index
    %c0_25 = arith.constant 0 : index
    %c0_26 = arith.constant 0 : index
    %32 = vector.load %arg11[%c2_24, %c0_25, %c0_26] : memref<5x32x896xbf16, #tpu.memory_space<vmem>>, vector<1x32x896xbf16>
    %33 = vector.shape_cast %32 : vector<1x32x896xbf16> to vector<32x896xbf16>
    %34 = vector.shape_cast %31 : vector<32x896xbf16> to vector<1x32x896xbf16>
    tpu.vector_store %arg11[%c2_24, %c0_25, %c0_26], %34 {strides = array<i32>} : memref<5x32x896xbf16, #tpu.memory_space<vmem>>, vector<1x32x896xbf16>,
    %c0_27 = arith.constant 0 : index
    %c3 = arith.constant 3 : index
    %c0_28 = arith.constant 0 : index
    %c0_29 = arith.constant 0 : index
    %35 = vector.load %arg2[%c0_27, %c3, %c0_28, %c0_29] : memref<1x5x9x896xbf16, #tpu.memory_space<vmem>>, vector<1x1x9x896xbf16>
    %36 = vector.shape_cast %35 : vector<1x1x9x896xbf16> to vector<9x896xbf16>
    %cst_30 = arith.constant dense<0.000000e+00> : vector<32x896xf32>
    %37 = tpu.matmul %0, %36, %cst_30 {dimension_numbers = #tpu.dot_dimension_numbers<[1], [0], [0], [1], [0, 0, 1, 1], [], []>} : vector<32x9xbf16>, vector<9x896xbf16>, vector<32x896xf32> -> vector<32x896xf32>
    %38 = vector.broadcast %1 : vector<32x1xf32> to vector<32x896xf32>
    %39 = arith.addf %37, %38 : vector<32x896xf32>
    %cst_31 = arith.constant 0.000000e+00 : f32
    %40 = vector.broadcast %cst_31 : f32 to vector<32x896xf32>
    %41 = arith.maximumf %39, %40 : vector<32x896xf32>
    %42 = arith.truncf %41 : vector<32x896xf32> to vector<32x896xbf16>
    %c3_32 = arith.constant 3 : index
    %c0_33 = arith.constant 0 : index
    %c0_34 = arith.constant 0 : index
    %43 = vector.load %arg11[%c3_32, %c0_33, %c0_34] : memref<5x32x896xbf16, #tpu.memory_space<vmem>>, vector<1x32x896xbf16>
    %44 = vector.shape_cast %43 : vector<1x32x896xbf16> to vector<32x896xbf16>
    %45 = vector.shape_cast %42 : vector<32x896xbf16> to vector<1x32x896xbf16>
    tpu.vector_store %arg11[%c3_32, %c0_33, %c0_34], %45 {strides = array<i32>} : memref<5x32x896xbf16, #tpu.memory_space<vmem>>, vector<1x32x896xbf16>,
    %c0_35 = arith.constant 0 : index
    %c4 = arith.constant 4 : index
    %c0_36 = arith.constant 0 : index
    %c0_37 = arith.constant 0 : index
    %46 = vector.load %arg2[%c0_35, %c4, %c0_36, %c0_37] : memref<1x5x9x896xbf16, #tpu.memory_space<vmem>>, vector<1x1x9x896xbf16>
    %47 = vector.shape_cast %46 : vector<1x1x9x896xbf16> to vector<9x896xbf16>
    %cst_38 = arith.constant dense<0.000000e+00> : vector<32x896xf32>
    %48 = tpu.matmul %0, %47, %cst_38 {dimension_numbers = #tpu.dot_dimension_numbers<[1], [0], [0], [1], [0, 0, 1, 1], [], []>} : vector<32x9xbf16>, vector<9x896xbf16>, vector<32x896xf32> -> vector<32x896xf32>
    %49 = vector.broadcast %1 : vector<32x1xf32> to vector<32x896xf32>
    %50 = arith.addf %48, %49 : vector<32x896xf32>
    %cst_39 = arith.constant 0.000000e+00 : f32
    %51 = vector.broadcast %cst_39 : f32 to vector<32x896xf32>
    %52 = arith.maximumf %50, %51 : vector<32x896xf32>
    %53 = arith.truncf %52 : vector<32x896xf32> to vector<32x896xbf16>
    %c4_40 = arith.constant 4 : index
    %c0_41 = arith.constant 0 : index
    %c0_42 = arith.constant 0 : index
    %54 = vector.load %arg11[%c4_40, %c0_41, %c0_42] : memref<5x32x896xbf16, #tpu.memory_space<vmem>>, vector<1x32x896xbf16>
    %55 = vector.shape_cast %54 : vector<1x32x896xbf16> to vector<32x896xbf16>
    %56 = vector.shape_cast %53 : vector<32x896xbf16> to vector<1x32x896xbf16>
    tpu.vector_store %arg11[%c4_40, %c0_41, %c0_42], %56 {strides = array<i32>} : memref<5x32x896xbf16, #tpu.memory_space<vmem>>, vector<1x32x896xbf16>,
    %c0_43 = arith.constant 0 : index
    %c0_44 = arith.constant 0 : index
    %57 = vector.load %arg6[%c0_43, %c0_44] : memref<32x1xf32, #tpu.memory_space<vmem>>, vector<32x1xf32>
    %c0_i32 = arith.constant 0 : i32
    %cst_45 = arith.constant 0.000000e+00 : f32
    %58 = vector.broadcast %cst_45 : f32 to vector<32x128xf32>
    %c3_i32 = arith.constant 3 : i32
    %59 = arith.muli %c3_i32, %c0_i32 : i32
    %c0_i32_46 = arith.constant 0 : i32
    %60 = arith.addi %59, %c0_i32_46 : i32
    %c128_i32 = arith.constant 128 : i32
    %61 = arith.muli %60, %c128_i32 : i32
    %62 = tpu.assume_multiple %61, 128 : i32
    %c0_47 = arith.constant 0 : index
    %c0_48 = arith.constant 0 : index
    %c0_49 = arith.constant 0 : index
    %63 = vector.load %arg5[%c0_47, %c0_48, %c0_49] : memref<25x32x32xbf16, #tpu.memory_space<vmem>>, vector<1x32x32xbf16>
    %64 = vector.shape_cast %63 : vector<1x32x32xbf16> to vector<32x32xbf16>
    %c0_50 = arith.constant 0 : index
    %c0_51 = arith.constant 0 : index
    %65 = arith.index_cast %62 : i32 to index
    %66 = vector.load %arg11[%c0_50, %c0_51, %65] : memref<5x32x896xbf16, #tpu.memory_space<vmem>>, vector<1x32x128xbf16>
    %67 = vector.shape_cast %66 : vector<1x32x128xbf16> to vector<32x128xbf16>
    %cst_52 = arith.constant dense<0.000000e+00> : vector<32x128xf32>
    %68 = tpu.matmul %64, %67, %cst_52 {dimension_numbers = #tpu.dot_dimension_numbers<[1], [0], [0], [1], [0, 0, 1, 1], [], []>} : vector<32x32xbf16>, vector<32x128xbf16>, vector<32x128xf32> -> vector<32x128xf32>
    %69 = arith.addf %58, %68 : vector<32x128xf32>
    %c5 = arith.constant 5 : index
    %c0_53 = arith.constant 0 : index
    %c0_54 = arith.constant 0 : index
    %70 = vector.load %arg5[%c5, %c0_53, %c0_54] : memref<25x32x32xbf16, #tpu.memory_space<vmem>>, vector<1x32x32xbf16>
    %71 = vector.shape_cast %70 : vector<1x32x32xbf16> to vector<32x32xbf16>
    %c1_55 = arith.constant 1 : index
    %c0_56 = arith.constant 0 : index
    %72 = arith.index_cast %62 : i32 to index
    %73 = vector.load %arg11[%c1_55, %c0_56, %72] : memref<5x32x896xbf16, #tpu.memory_space<vmem>>, vector<1x32x128xbf16>
    %74 = vector.shape_cast %73 : vector<1x32x128xbf16> to vector<32x128xbf16>
    %cst_57 = arith.constant dense<0.000000e+00> : vector<32x128xf32>
    %75 = tpu.matmul %71, %74, %cst_57 {dimension_numbers = #tpu.dot_dimension_numbers<[1], [0], [0], [1], [0, 0, 1, 1], [], []>} : vector<32x32xbf16>, vector<32x128xbf16>, vector<32x128xf32> -> vector<32x128xf32>
    %76 = arith.addf %69, %75 : vector<32x128xf32>
    %c10 = arith.constant 10 : index
    %c0_58 = arith.constant 0 : index
    %c0_59 = arith.constant 0 : index
    %77 = vector.load %arg5[%c10, %c0_58, %c0_59] : memref<25x32x32xbf16, #tpu.memory_space<vmem>>, vector<1x32x32xbf16>
    %78 = vector.shape_cast %77 : vector<1x32x32xbf16> to vector<32x32xbf16>
    %c2_60 = arith.constant 2 : index
    %c0_61 = arith.constant 0 : index
    %79 = arith.index_cast %62 : i32 to index
    %80 = vector.load %arg11[%c2_60, %c0_61, %79] : memref<5x32x896xbf16, #tpu.memory_space<vmem>>, vector<1x32x128xbf16>
    %81 = vector.shape_cast %80 : vector<1x32x128xbf16> to vector<32x128xbf16>
    %cst_62 = arith.constant dense<0.000000e+00> : vector<32x128xf32>
    %82 = tpu.matmul %78, %81, %cst_62 {dimension_numbers = #tpu.dot_dimension_numbers<[1], [0], [0], [1], [0, 0, 1, 1], [], []>} : vector<32x32xbf16>, vector<32x128xbf16>, vector<32x128xf32> -> vector<32x128xf32>
    %83 = arith.addf %76, %82 : vector<32x128xf32>
    %c15 = arith.constant 15 : index
    %c0_63 = arith.constant 0 : index
    %c0_64 = arith.constant 0 : index
    %84 = vector.load %arg5[%c15, %c0_63, %c0_64] : memref<25x32x32xbf16, #tpu.memory_space<vmem>>, vector<1x32x32xbf16>
    %85 = vector.shape_cast %84 : vector<1x32x32xbf16> to vector<32x32xbf16>
    %c3_65 = arith.constant 3 : index
    %c0_66 = arith.constant 0 : index
    %86 = arith.index_cast %62 : i32 to index
    %87 = vector.load %arg11[%c3_65, %c0_66, %86] : memref<5x32x896xbf16, #tpu.memory_space<vmem>>, vector<1x32x128xbf16>
    %88 = vector.shape_cast %87 : vector<1x32x128xbf16> to vector<32x128xbf16>
    %cst_67 = arith.constant dense<0.000000e+00> : vector<32x128xf32>
    %89 = tpu.matmul %85, %88, %cst_67 {dimension_numbers = #tpu.dot_dimension_numbers<[1], [0], [0], [1], [0, 0, 1, 1], [], []>} : vector<32x32xbf16>, vector<32x128xbf16>, vector<32x128xf32> -> vector<32x128xf32>
    %90 = arith.addf %83, %89 : vector<32x128xf32>
    %c20 = arith.constant 20 : index
    %c0_68 = arith.constant 0 : index
    %c0_69 = arith.constant 0 : index
    %91 = vector.load %arg5[%c20, %c0_68, %c0_69] : memref<25x32x32xbf16, #tpu.memory_space<vmem>>, vector<1x32x32xbf16>
    %92 = vector.shape_cast %91 : vector<1x32x32xbf16> to vector<32x32xbf16>
    %c4_70 = arith.constant 4 : index
    %c0_71 = arith.constant 0 : index
    %93 = arith.index_cast %62 : i32 to index
    %94 = vector.load %arg11[%c4_70, %c0_71, %93] : memref<5x32x896xbf16, #tpu.memory_space<vmem>>, vector<1x32x128xbf16>
    %95 = vector.shape_cast %94 : vector<1x32x128xbf16> to vector<32x128xbf16>
    %cst_72 = arith.constant dense<0.000000e+00> : vector<32x128xf32>
    %96 = tpu.matmul %92, %95, %cst_72 {dimension_numbers = #tpu.dot_dimension_numbers<[1], [0], [0], [1], [0, 0, 1, 1], [], []>} : vector<32x32xbf16>, vector<32x128xbf16>, vector<32x128xf32> -> vector<32x128xf32>
    %97 = arith.addf %90, %96 : vector<32x128xf32>
    %c3_i32_73 = arith.constant 3 : i32
    %98 = arith.muli %c3_i32_73, %c0_i32 : i32
    %c1_i32 = arith.constant 1 : i32
    %99 = arith.addi %98, %c1_i32 : i32
    %c128_i32_74 = arith.constant 128 : i32
    %100 = arith.muli %99, %c128_i32_74 : i32
    %101 = tpu.assume_multiple %100, 128 : i32
    %c1_75 = arith.constant 1 : index
    %c0_76 = arith.constant 0 : index
    %c0_77 = arith.constant 0 : index
    %102 = vector.load %arg5[%c1_75, %c0_76, %c0_77] : memref<25x32x32xbf16, #tpu.memory_space<vmem>>, vector<1x32x32xbf16>
    %103 = vector.shape_cast %102 : vector<1x32x32xbf16> to vector<32x32xbf16>
    %c0_78 = arith.constant 0 : index
    %c0_79 = arith.constant 0 : index
    %104 = arith.index_cast %101 : i32 to index
    %105 = vector.load %arg11[%c0_78, %c0_79, %104] : memref<5x32x896xbf16, #tpu.memory_space<vmem>>, vector<1x32x128xbf16>
    %106 = vector.shape_cast %105 : vector<1x32x128xbf16> to vector<32x128xbf16>
    %cst_80 = arith.constant dense<0.000000e+00> : vector<32x128xf32>
    %107 = tpu.matmul %103, %106, %cst_80 {dimension_numbers = #tpu.dot_dimension_numbers<[1], [0], [0], [1], [0, 0, 1, 1], [], []>} : vector<32x32xbf16>, vector<32x128xbf16>, vector<32x128xf32> -> vector<32x128xf32>
    %108 = arith.addf %97, %107 : vector<32x128xf32>
    %c6 = arith.constant 6 : index
    %c0_81 = arith.constant 0 : index
    %c0_82 = arith.constant 0 : index
    %109 = vector.load %arg5[%c6, %c0_81, %c0_82] : memref<25x32x32xbf16, #tpu.memory_space<vmem>>, vector<1x32x32xbf16>
    %110 = vector.shape_cast %109 : vector<1x32x32xbf16> to vector<32x32xbf16>
    %c1_83 = arith.constant 1 : index
    %c0_84 = arith.constant 0 : index
    %111 = arith.index_cast %101 : i32 to index
    %112 = vector.load %arg11[%c1_83, %c0_84, %111] : memref<5x32x896xbf16, #tpu.memory_space<vmem>>, vector<1x32x128xbf16>
    %113 = vector.shape_cast %112 : vector<1x32x128xbf16> to vector<32x128xbf16>
    %cst_85 = arith.constant dense<0.000000e+00> : vector<32x128xf32>
    %114 = tpu.matmul %110, %113, %cst_85 {dimension_numbers = #tpu.dot_dimension_numbers<[1], [0], [0], [1], [0, 0, 1, 1], [], []>} : vector<32x32xbf16>, vector<32x128xbf16>, vector<32x128xf32> -> vector<32x128xf32>
    %115 = arith.addf %108, %114 : vector<32x128xf32>
    %c11 = arith.constant 11 : index
    %c0_86 = arith.constant 0 : index
    %c0_87 = arith.constant 0 : index
    %116 = vector.load %arg5[%c11, %c0_86, %c0_87] : memref<25x32x32xbf16, #tpu.memory_space<vmem>>, vector<1x32x32xbf16>
    %117 = vector.shape_cast %116 : vector<1x32x32xbf16> to vector<32x32xbf16>
    %c2_88 = arith.constant 2 : index
    %c0_89 = arith.constant 0 : index
    %118 = arith.index_cast %101 : i32 to index
    %119 = vector.load %arg11[%c2_88, %c0_89, %118] : memref<5x32x896xbf16, #tpu.memory_space<vmem>>, vector<1x32x128xbf16>
    %120 = vector.shape_cast %119 : vector<1x32x128xbf16> to vector<32x128xbf16>
    %cst_90 = arith.constant dense<0.000000e+00> : vector<32x128xf32>
    %121 = tpu.matmul %117, %120, %cst_90 {dimension_numbers = #tpu.dot_dimension_numbers<[1], [0], [0], [1], [0, 0, 1, 1], [], []>} : vector<32x32xbf16>, vector<32x128xbf16>, vector<32x128xf32> -> vector<32x128xf32>
    %122 = arith.addf %115, %121 : vector<32x128xf32>
    %c16 = arith.constant 16 : index
    %c0_91 = arith.constant 0 : index
    %c0_92 = arith.constant 0 : index
    %123 = vector.load %arg5[%c16, %c0_91, %c0_92] : memref<25x32x32xbf16, #tpu.memory_space<vmem>>, vector<1x32x32xbf16>
    %124 = vector.shape_cast %123 : vector<1x32x32xbf16> to vector<32x32xbf16>
    %c3_93 = arith.constant 3 : index
    %c0_94 = arith.constant 0 : index
    %125 = arith.index_cast %101 : i32 to index
    %126 = vector.load %arg11[%c3_93, %c0_94, %125] : memref<5x32x896xbf16, #tpu.memory_space<vmem>>, vector<1x32x128xbf16>
    %127 = vector.shape_cast %126 : vector<1x32x128xbf16> to vector<32x128xbf16>
    %cst_95 = arith.constant dense<0.000000e+00> : vector<32x128xf32>
    %128 = tpu.matmul %124, %127, %cst_95 {dimension_numbers = #tpu.dot_dimension_numbers<[1], [0], [0], [1], [0, 0, 1, 1], [], []>} : vector<32x32xbf16>, vector<32x128xbf16>, vector<32x128xf32> -> vector<32x128xf32>
    %129 = arith.addf %122, %128 : vector<32x128xf32>
    %c21 = arith.constant 21 : index
    %c0_96 = arith.constant 0 : index
    %c0_97 = arith.constant 0 : index
    %130 = vector.load %arg5[%c21, %c0_96, %c0_97] : memref<25x32x32xbf16, #tpu.memory_space<vmem>>, vector<1x32x32xbf16>
    %131 = vector.shape_cast %130 : vector<1x32x32xbf16> to vector<32x32xbf16>
    %c4_98 = arith.constant 4 : index
    %c0_99 = arith.constant 0 : index
    %132 = arith.index_cast %101 : i32 to index
    %133 = vector.load %arg11[%c4_98, %c0_99, %132] : memref<5x32x896xbf16, #tpu.memory_space<vmem>>, vector<1x32x128xbf16>
    %134 = vector.shape_cast %133 : vector<1x32x128xbf16> to vector<32x128xbf16>
    %cst_100 = arith.constant dense<0.000000e+00> : vector<32x128xf32>
    %135 = tpu.matmul %131, %134, %cst_100 {dimension_numbers = #tpu.dot_dimension_numbers<[1], [0], [0], [1], [0, 0, 1, 1], [], []>} : vector<32x32xbf16>, vector<32x128xbf16>, vector<32x128xf32> -> vector<32x128xf32>
    %136 = arith.addf %129, %135 : vector<32x128xf32>
    %c3_i32_101 = arith.constant 3 : i32
    %137 = arith.muli %c3_i32_101, %c0_i32 : i32
    %c2_i32 = arith.constant 2 : i32
    %138 = arith.addi %137, %c2_i32 : i32
    %c128_i32_102 = arith.constant 128 : i32
    %139 = arith.muli %138, %c128_i32_102 : i32
    %140 = tpu.assume_multiple %139, 128 : i32
    %c2_103 = arith.constant 2 : index
    %c0_104 = arith.constant 0 : index
    %c0_105 = arith.constant 0 : index
    %141 = vector.load %arg5[%c2_103, %c0_104, %c0_105] : memref<25x32x32xbf16, #tpu.memory_space<vmem>>, vector<1x32x32xbf16>
    %142 = vector.shape_cast %141 : vector<1x32x32xbf16> to vector<32x32xbf16>
    %c0_106 = arith.constant 0 : index
    %c0_107 = arith.constant 0 : index
    %143 = arith.index_cast %140 : i32 to index
    %144 = vector.load %arg11[%c0_106, %c0_107, %143] : memref<5x32x896xbf16, #tpu.memory_space<vmem>>, vector<1x32x128xbf16>
    %145 = vector.shape_cast %144 : vector<1x32x128xbf16> to vector<32x128xbf16>
    %cst_108 = arith.constant dense<0.000000e+00> : vector<32x128xf32>
    %146 = tpu.matmul %142, %145, %cst_108 {dimension_numbers = #tpu.dot_dimension_numbers<[1], [0], [0], [1], [0, 0, 1, 1], [], []>} : vector<32x32xbf16>, vector<32x128xbf16>, vector<32x128xf32> -> vector<32x128xf32>
    %147 = arith.addf %136, %146 : vector<32x128xf32>
    %c7 = arith.constant 7 : index
    %c0_109 = arith.constant 0 : index
    %c0_110 = arith.constant 0 : index
    %148 = vector.load %arg5[%c7, %c0_109, %c0_110] : memref<25x32x32xbf16, #tpu.memory_space<vmem>>, vector<1x32x32xbf16>
    %149 = vector.shape_cast %148 : vector<1x32x32xbf16> to vector<32x32xbf16>
    %c1_111 = arith.constant 1 : index
    %c0_112 = arith.constant 0 : index
    %150 = arith.index_cast %140 : i32 to index
    %151 = vector.load %arg11[%c1_111, %c0_112, %150] : memref<5x32x896xbf16, #tpu.memory_space<vmem>>, vector<1x32x128xbf16>
    %152 = vector.shape_cast %151 : vector<1x32x128xbf16> to vector<32x128xbf16>
    %cst_113 = arith.constant dense<0.000000e+00> : vector<32x128xf32>
    %153 = tpu.matmul %149, %152, %cst_113 {dimension_numbers = #tpu.dot_dimension_numbers<[1], [0], [0], [1], [0, 0, 1, 1], [], []>} : vector<32x32xbf16>, vector<32x128xbf16>, vector<32x128xf32> -> vector<32x128xf32>
    %154 = arith.addf %147, %153 : vector<32x128xf32>
    %c12 = arith.constant 12 : index
    %c0_114 = arith.constant 0 : index
    %c0_115 = arith.constant 0 : index
    %155 = vector.load %arg5[%c12, %c0_114, %c0_115] : memref<25x32x32xbf16, #tpu.memory_space<vmem>>, vector<1x32x32xbf16>
    %156 = vector.shape_cast %155 : vector<1x32x32xbf16> to vector<32x32xbf16>
    %c2_116 = arith.constant 2 : index
    %c0_117 = arith.constant 0 : index
    %157 = arith.index_cast %140 : i32 to index
    %158 = vector.load %arg11[%c2_116, %c0_117, %157] : memref<5x32x896xbf16, #tpu.memory_space<vmem>>, vector<1x32x128xbf16>
    %159 = vector.shape_cast %158 : vector<1x32x128xbf16> to vector<32x128xbf16>
    %cst_118 = arith.constant dense<0.000000e+00> : vector<32x128xf32>
    %160 = tpu.matmul %156, %159, %cst_118 {dimension_numbers = #tpu.dot_dimension_numbers<[1], [0], [0], [1], [0, 0, 1, 1], [], []>} : vector<32x32xbf16>, vector<32x128xbf16>, vector<32x128xf32> -> vector<32x128xf32>
    %161 = arith.addf %154, %160 : vector<32x128xf32>
    %c17 = arith.constant 17 : index
    %c0_119 = arith.constant 0 : index
    %c0_120 = arith.constant 0 : index
    %162 = vector.load %arg5[%c17, %c0_119, %c0_120] : memref<25x32x32xbf16, #tpu.memory_space<vmem>>, vector<1x32x32xbf16>
    %163 = vector.shape_cast %162 : vector<1x32x32xbf16> to vector<32x32xbf16>
    %c3_121 = arith.constant 3 : index
    %c0_122 = arith.constant 0 : index
    %164 = arith.index_cast %140 : i32 to index
    %165 = vector.load %arg11[%c3_121, %c0_122, %164] : memref<5x32x896xbf16, #tpu.memory_space<vmem>>, vector<1x32x128xbf16>
    %166 = vector.shape_cast %165 : vector<1x32x128xbf16> to vector<32x128xbf16>
    %cst_123 = arith.constant dense<0.000000e+00> : vector<32x128xf32>
    %167 = tpu.matmul %163, %166, %cst_123 {dimension_numbers = #tpu.dot_dimension_numbers<[1], [0], [0], [1], [0, 0, 1, 1], [], []>} : vector<32x32xbf16>, vector<32x128xbf16>, vector<32x128xf32> -> vector<32x128xf32>
    %168 = arith.addf %161, %167 : vector<32x128xf32>
    %c22 = arith.constant 22 : index
    %c0_124 = arith.constant 0 : index
    %c0_125 = arith.constant 0 : index
    %169 = vector.load %arg5[%c22, %c0_124, %c0_125] : memref<25x32x32xbf16, #tpu.memory_space<vmem>>, vector<1x32x32xbf16>
    %170 = vector.shape_cast %169 : vector<1x32x32xbf16> to vector<32x32xbf16>
    %c4_126 = arith.constant 4 : index
    %c0_127 = arith.constant 0 : index
    %171 = arith.index_cast %140 : i32 to index
    %172 = vector.load %arg11[%c4_126, %c0_127, %171] : memref<5x32x896xbf16, #tpu.memory_space<vmem>>, vector<1x32x128xbf16>
    %173 = vector.shape_cast %172 : vector<1x32x128xbf16> to vector<32x128xbf16>
    %cst_128 = arith.constant dense<0.000000e+00> : vector<32x128xf32>
    %174 = tpu.matmul %170, %173, %cst_128 {dimension_numbers = #tpu.dot_dimension_numbers<[1], [0], [0], [1], [0, 0, 1, 1], [], []>} : vector<32x32xbf16>, vector<32x128xbf16>, vector<32x128xf32> -> vector<32x128xf32>
    %175 = arith.addf %168, %174 : vector<32x128xf32>
    %c3_i32_129 = arith.constant 3 : i32
    %176 = arith.muli %c3_i32_129, %c0_i32 : i32
    %c3_i32_130 = arith.constant 3 : i32
    %177 = arith.addi %176, %c3_i32_130 : i32
    %c128_i32_131 = arith.constant 128 : i32
    %178 = arith.muli %177, %c128_i32_131 : i32
    %179 = tpu.assume_multiple %178, 128 : i32
    %c3_132 = arith.constant 3 : index
    %c0_133 = arith.constant 0 : index
    %c0_134 = arith.constant 0 : index
    %180 = vector.load %arg5[%c3_132, %c0_133, %c0_134] : memref<25x32x32xbf16, #tpu.memory_space<vmem>>, vector<1x32x32xbf16>
    %181 = vector.shape_cast %180 : vector<1x32x32xbf16> to vector<32x32xbf16>
    %c0_135 = arith.constant 0 : index
    %c0_136 = arith.constant 0 : index
    %182 = arith.index_cast %179 : i32 to index
    %183 = vector.load %arg11[%c0_135, %c0_136, %182] : memref<5x32x896xbf16, #tpu.memory_space<vmem>>, vector<1x32x128xbf16>
    %184 = vector.shape_cast %183 : vector<1x32x128xbf16> to vector<32x128xbf16>
    %cst_137 = arith.constant dense<0.000000e+00> : vector<32x128xf32>
    %185 = tpu.matmul %181, %184, %cst_137 {dimension_numbers = #tpu.dot_dimension_numbers<[1], [0], [0], [1], [0, 0, 1, 1], [], []>} : vector<32x32xbf16>, vector<32x128xbf16>, vector<32x128xf32> -> vector<32x128xf32>
    %186 = arith.addf %175, %185 : vector<32x128xf32>
    %c8 = arith.constant 8 : index
    %c0_138 = arith.constant 0 : index
    %c0_139 = arith.constant 0 : index
    %187 = vector.load %arg5[%c8, %c0_138, %c0_139] : memref<25x32x32xbf16, #tpu.memory_space<vmem>>, vector<1x32x32xbf16>
    %188 = vector.shape_cast %187 : vector<1x32x32xbf16> to vector<32x32xbf16>
    %c1_140 = arith.constant 1 : index
    %c0_141 = arith.constant 0 : index
    %189 = arith.index_cast %179 : i32 to index
    %190 = vector.load %arg11[%c1_140, %c0_141, %189] : memref<5x32x896xbf16, #tpu.memory_space<vmem>>, vector<1x32x128xbf16>
    %191 = vector.shape_cast %190 : vector<1x32x128xbf16> to vector<32x128xbf16>
    %cst_142 = arith.constant dense<0.000000e+00> : vector<32x128xf32>
    %192 = tpu.matmul %188, %191, %cst_142 {dimension_numbers = #tpu.dot_dimension_numbers<[1], [0], [0], [1], [0, 0, 1, 1], [], []>} : vector<32x32xbf16>, vector<32x128xbf16>, vector<32x128xf32> -> vector<32x128xf32>
    %193 = arith.addf %186, %192 : vector<32x128xf32>
    %c13 = arith.constant 13 : index
    %c0_143 = arith.constant 0 : index
    %c0_144 = arith.constant 0 : index
    %194 = vector.load %arg5[%c13, %c0_143, %c0_144] : memref<25x32x32xbf16, #tpu.memory_space<vmem>>, vector<1x32x32xbf16>
    %195 = vector.shape_cast %194 : vector<1x32x32xbf16> to vector<32x32xbf16>
    %c2_145 = arith.constant 2 : index
    %c0_146 = arith.constant 0 : index
    %196 = arith.index_cast %179 : i32 to index
    %197 = vector.load %arg11[%c2_145, %c0_146, %196] : memref<5x32x896xbf16, #tpu.memory_space<vmem>>, vector<1x32x128xbf16>
    %198 = vector.shape_cast %197 : vector<1x32x128xbf16> to vector<32x128xbf16>
    %cst_147 = arith.constant dense<0.000000e+00> : vector<32x128xf32>
    %199 = tpu.matmul %195, %198, %cst_147 {dimension_numbers = #tpu.dot_dimension_numbers<[1], [0], [0], [1], [0, 0, 1, 1], [], []>} : vector<32x32xbf16>, vector<32x128xbf16>, vector<32x128xf32> -> vector<32x128xf32>
    %200 = arith.addf %193, %199 : vector<32x128xf32>
    %c18 = arith.constant 18 : index
    %c0_148 = arith.constant 0 : index
    %c0_149 = arith.constant 0 : index
    %201 = vector.load %arg5[%c18, %c0_148, %c0_149] : memref<25x32x32xbf16, #tpu.memory_space<vmem>>, vector<1x32x32xbf16>
    %202 = vector.shape_cast %201 : vector<1x32x32xbf16> to vector<32x32xbf16>
    %c3_150 = arith.constant 3 : index
    %c0_151 = arith.constant 0 : index
    %203 = arith.index_cast %179 : i32 to index
    %204 = vector.load %arg11[%c3_150, %c0_151, %203] : memref<5x32x896xbf16, #tpu.memory_space<vmem>>, vector<1x32x128xbf16>
    %205 = vector.shape_cast %204 : vector<1x32x128xbf16> to vector<32x128xbf16>
    %cst_152 = arith.constant dense<0.000000e+00> : vector<32x128xf32>
    %206 = tpu.matmul %202, %205, %cst_152 {dimension_numbers = #tpu.dot_dimension_numbers<[1], [0], [0], [1], [0, 0, 1, 1], [], []>} : vector<32x32xbf16>, vector<32x128xbf16>, vector<32x128xf32> -> vector<32x128xf32>
    %207 = arith.addf %200, %206 : vector<32x128xf32>
    %c23 = arith.constant 23 : index
    %c0_153 = arith.constant 0 : index
    %c0_154 = arith.constant 0 : index
    %208 = vector.load %arg5[%c23, %c0_153, %c0_154] : memref<25x32x32xbf16, #tpu.memory_space<vmem>>, vector<1x32x32xbf16>
    %209 = vector.shape_cast %208 : vector<1x32x32xbf16> to vector<32x32xbf16>
    %c4_155 = arith.constant 4 : index
    %c0_156 = arith.constant 0 : index
    %210 = arith.index_cast %179 : i32 to index
    %211 = vector.load %arg11[%c4_155, %c0_156, %210] : memref<5x32x896xbf16, #tpu.memory_space<vmem>>, vector<1x32x128xbf16>
    %212 = vector.shape_cast %211 : vector<1x32x128xbf16> to vector<32x128xbf16>
    %cst_157 = arith.constant dense<0.000000e+00> : vector<32x128xf32>
    %213 = tpu.matmul %209, %212, %cst_157 {dimension_numbers = #tpu.dot_dimension_numbers<[1], [0], [0], [1], [0, 0, 1, 1], [], []>} : vector<32x32xbf16>, vector<32x128xbf16>, vector<32x128xf32> -> vector<32x128xf32>
    %214 = arith.addf %207, %213 : vector<32x128xf32>
    %c3_i32_158 = arith.constant 3 : i32
    %215 = arith.muli %c3_i32_158, %c0_i32 : i32
    %c4_i32 = arith.constant 4 : i32
    %216 = arith.addi %215, %c4_i32 : i32
    %c128_i32_159 = arith.constant 128 : i32
    %217 = arith.muli %216, %c128_i32_159 : i32
    %218 = tpu.assume_multiple %217, 128 : i32
    %c4_160 = arith.constant 4 : index
    %c0_161 = arith.constant 0 : index
    %c0_162 = arith.constant 0 : index
    %219 = vector.load %arg5[%c4_160, %c0_161, %c0_162] : memref<25x32x32xbf16, #tpu.memory_space<vmem>>, vector<1x32x32xbf16>
    %220 = vector.shape_cast %219 : vector<1x32x32xbf16> to vector<32x32xbf16>
    %c0_163 = arith.constant 0 : index
    %c0_164 = arith.constant 0 : index
    %221 = arith.index_cast %218 : i32 to index
    %222 = vector.load %arg11[%c0_163, %c0_164, %221] : memref<5x32x896xbf16, #tpu.memory_space<vmem>>, vector<1x32x128xbf16>
    %223 = vector.shape_cast %222 : vector<1x32x128xbf16> to vector<32x128xbf16>
    %cst_165 = arith.constant dense<0.000000e+00> : vector<32x128xf32>
    %224 = tpu.matmul %220, %223, %cst_165 {dimension_numbers = #tpu.dot_dimension_numbers<[1], [0], [0], [1], [0, 0, 1, 1], [], []>} : vector<32x32xbf16>, vector<32x128xbf16>, vector<32x128xf32> -> vector<32x128xf32>
    %225 = arith.addf %214, %224 : vector<32x128xf32>
    %c9 = arith.constant 9 : index
    %c0_166 = arith.constant 0 : index
    %c0_167 = arith.constant 0 : index
    %226 = vector.load %arg5[%c9, %c0_166, %c0_167] : memref<25x32x32xbf16, #tpu.memory_space<vmem>>, vector<1x32x32xbf16>
    %227 = vector.shape_cast %226 : vector<1x32x32xbf16> to vector<32x32xbf16>
    %c1_168 = arith.constant 1 : index
    %c0_169 = arith.constant 0 : index
    %228 = arith.index_cast %218 : i32 to index
    %229 = vector.load %arg11[%c1_168, %c0_169, %228] : memref<5x32x896xbf16, #tpu.memory_space<vmem>>, vector<1x32x128xbf16>
    %230 = vector.shape_cast %229 : vector<1x32x128xbf16> to vector<32x128xbf16>
    %cst_170 = arith.constant dense<0.000000e+00> : vector<32x128xf32>
    %231 = tpu.matmul %227, %230, %cst_170 {dimension_numbers = #tpu.dot_dimension_numbers<[1], [0], [0], [1], [0, 0, 1, 1], [], []>} : vector<32x32xbf16>, vector<32x128xbf16>, vector<32x128xf32> -> vector<32x128xf32>
    %232 = arith.addf %225, %231 : vector<32x128xf32>
    %c14 = arith.constant 14 : index
    %c0_171 = arith.constant 0 : index
    %c0_172 = arith.constant 0 : index
    %233 = vector.load %arg5[%c14, %c0_171, %c0_172] : memref<25x32x32xbf16, #tpu.memory_space<vmem>>, vector<1x32x32xbf16>
    %234 = vector.shape_cast %233 : vector<1x32x32xbf16> to vector<32x32xbf16>
    %c2_173 = arith.constant 2 : index
    %c0_174 = arith.constant 0 : index
    %235 = arith.index_cast %218 : i32 to index
    %236 = vector.load %arg11[%c2_173, %c0_174, %235] : memref<5x32x896xbf16, #tpu.memory_space<vmem>>, vector<1x32x128xbf16>
    %237 = vector.shape_cast %236 : vector<1x32x128xbf16> to vector<32x128xbf16>
    %cst_175 = arith.constant dense<0.000000e+00> : vector<32x128xf32>
    %238 = tpu.matmul %234, %237, %cst_175 {dimension_numbers = #tpu.dot_dimension_numbers<[1], [0], [0], [1], [0, 0, 1, 1], [], []>} : vector<32x32xbf16>, vector<32x128xbf16>, vector<32x128xf32> -> vector<32x128xf32>
    %239 = arith.addf %232, %238 : vector<32x128xf32>
    %c19 = arith.constant 19 : index
    %c0_176 = arith.constant 0 : index
    %c0_177 = arith.constant 0 : index
    %240 = vector.load %arg5[%c19, %c0_176, %c0_177] : memref<25x32x32xbf16, #tpu.memory_space<vmem>>, vector<1x32x32xbf16>
    %241 = vector.shape_cast %240 : vector<1x32x32xbf16> to vector<32x32xbf16>
    %c3_178 = arith.constant 3 : index
    %c0_179 = arith.constant 0 : index
    %242 = arith.index_cast %218 : i32 to index
    %243 = vector.load %arg11[%c3_178, %c0_179, %242] : memref<5x32x896xbf16, #tpu.memory_space<vmem>>, vector<1x32x128xbf16>
    %244 = vector.shape_cast %243 : vector<1x32x128xbf16> to vector<32x128xbf16>
    %cst_180 = arith.constant dense<0.000000e+00> : vector<32x128xf32>
    %245 = tpu.matmul %241, %244, %cst_180 {dimension_numbers = #tpu.dot_dimension_numbers<[1], [0], [0], [1], [0, 0, 1, 1], [], []>} : vector<32x32xbf16>, vector<32x128xbf16>, vector<32x128xf32> -> vector<32x128xf32>
    %246 = arith.addf %239, %245 : vector<32x128xf32>
    %c24 = arith.constant 24 : index
    %c0_181 = arith.constant 0 : index
    %c0_182 = arith.constant 0 : index
    %247 = vector.load %arg5[%c24, %c0_181, %c0_182] : memref<25x32x32xbf16, #tpu.memory_space<vmem>>, vector<1x32x32xbf16>
    %248 = vector.shape_cast %247 : vector<1x32x32xbf16> to vector<32x32xbf16>
    %c4_183 = arith.constant 4 : index
    %c0_184 = arith.constant 0 : index
    %249 = arith.index_cast %218 : i32 to index
    %250 = vector.load %arg11[%c4_183, %c0_184, %249] : memref<5x32x896xbf16, #tpu.memory_space<vmem>>, vector<1x32x128xbf16>
    %251 = vector.shape_cast %250 : vector<1x32x128xbf16> to vector<32x128xbf16>
    %cst_185 = arith.constant dense<0.000000e+00> : vector<32x128xf32>
    %252 = tpu.matmul %248, %251, %cst_185 {dimension_numbers = #tpu.dot_dimension_numbers<[1], [0], [0], [1], [0, 0, 1, 1], [], []>} : vector<32x32xbf16>, vector<32x128xbf16>, vector<32x128xf32> -> vector<32x128xf32>
    %253 = arith.addf %246, %252 : vector<32x128xf32>
    %254 = vector.broadcast %57 : vector<32x1xf32> to vector<32x128xf32>
    %255 = arith.addf %253, %254 : vector<32x128xf32>
    %cst_186 = arith.constant 0.000000e+00 : f32
    %256 = vector.broadcast %cst_186 : f32 to vector<32x128xf32>
    %257 = arith.maximumf %255, %256 : vector<32x128xf32>
    %258 = arith.truncf %257 : vector<32x128xf32> to vector<32x128xbf16>
    %259 = arith.index_cast %c0_i32 : i32 to index
    %c0_187 = arith.constant 0 : index
    %c0_188 = arith.constant 0 : index
    %260 = vector.load %arg12[%259, %c0_187, %c0_188] : memref<1x32x128xbf16, #tpu.memory_space<vmem>>, vector<1x32x128xbf16>
    %261 = vector.shape_cast %260 : vector<1x32x128xbf16> to vector<32x128xbf16>
    %262 = vector.shape_cast %258 : vector<32x128xbf16> to vector<1x32x128xbf16>
    tpu.vector_store %arg12[%259, %c0_187, %c0_188], %262 {strides = array<i32>} : memref<1x32x128xbf16, #tpu.memory_space<vmem>>, vector<1x32x128xbf16>,
    %c1_i32_189 = arith.constant 1 : i32
    %c0_190 = arith.constant 0 : index
    %c0_191 = arith.constant 0 : index
    %c0_192 = arith.constant 0 : index
    %263 = vector.load %arg12[%c0_190, %c0_191, %c0_192] : memref<1x32x128xbf16, #tpu.memory_space<vmem>>, vector<1x32x128xbf16>
    %264 = vector.shape_cast %263 : vector<1x32x128xbf16> to vector<32x128xbf16>
    %c0_193 = arith.constant 0 : index
    %c0_194 = arith.constant 0 : index
    %265 = vector.load %arg7[%c0_193, %c0_194] : memref<128x32xbf16, #tpu.memory_space<vmem>>, vector<128x32xbf16>
    %cst_195 = arith.constant dense<0.000000e+00> : vector<128x128xf32>
    %266 = tpu.matmul %265, %264, %cst_195 {dimension_numbers = #tpu.dot_dimension_numbers<[1], [0], [0], [1], [0, 0, 1, 1], [], []>} : vector<128x32xbf16>, vector<32x128xbf16>, vector<128x128xf32> -> vector<128x128xf32>
    %c0_196 = arith.constant 0 : index
    %c0_197 = arith.constant 0 : index
    %267 = vector.load %arg8[%c0_196, %c0_197] : memref<128x1xf32, #tpu.memory_space<vmem>>, vector<128x1xf32>
    %268 = vector.broadcast %267 : vector<128x1xf32> to vector<128x128xf32>
    %269 = arith.addf %266, %268 : vector<128x128xf32>
    %cst_198 = arith.constant 5.65685415 : f32
    %270 = vector.broadcast %cst_198 : f32 to vector<128x128xf32>
    %271 = arith.mulf %269, %270 : vector<128x128xf32>
    %c0_199 = arith.constant 0 : index
    %c0_200 = arith.constant 0 : index
    %272 = vector.load %arg9[%c0_199, %c0_200] : memref<128x128xf32, #tpu.memory_space<vmem>>, vector<128x128xf32>
    %273 = arith.addf %271, %272 : vector<128x128xf32>
    %c0_201 = arith.constant 0 : index
    %c0_202 = arith.constant 0 : index
    %c0_203 = arith.constant 0 : index
    %274 = vector.load %arg10[%c0_201, %c0_202, %c0_203] : memref<1x128x128xf32, #tpu.memory_space<vmem>>, vector<1x128x128xf32>
    %275 = vector.shape_cast %274 : vector<1x128x128xf32> to vector<128x128xf32>
    %276 = vector.shape_cast %273 : vector<128x128xf32> to vector<1x128x128xf32>
    tpu.vector_store %arg10[%c0_201, %c0_202, %c0_203], %276 {strides = array<i32>} : memref<1x128x128xf32, #tpu.memory_space<vmem>>, vector<1x128x128xf32>,
    return
  }
  func.func @transform_0(%arg0: i32, %arg1: i32) -> (i32, i32, i32, i32) {
    %c0_i32 = arith.constant 0 : i32
    %c0_i32_0 = arith.constant 0 : i32
    %c0_i32_1 = arith.constant 0 : i32
    return %arg0, %c0_i32, %c0_i32_0, %arg1 : i32, i32, i32, i32
  }
  func.func @transform_1(%arg0: i32, %arg1: i32) -> (i32, i32) {
    %c0_i32 = arith.constant 0 : i32
    %c0_i32_0 = arith.constant 0 : i32
    %c0_i32_1 = arith.constant 0 : i32
    return %c0_i32, %c0_i32_0 : i32, i32
  }
  func.func @transform_2(%arg0: i32, %arg1: i32) -> (i32, i32) {
    %c0_i32 = arith.constant 0 : i32
    %c0_i32_0 = arith.constant 0 : i32
    %c0_i32_1 = arith.constant 0 : i32
    return %c0_i32, %c0_i32_0 : i32, i32
  }
  func.func @transform_3(%arg0: i32, %arg1: i32) -> (i32, i32, i32) {
    %c0_i32 = arith.constant 0 : i32
    %c0_i32_0 = arith.constant 0 : i32
    %c0_i32_1 = arith.constant 0 : i32
    %c0_i32_2 = arith.constant 0 : i32
    return %c0_i32, %c0_i32_0, %c0_i32_1 : i32, i32, i32
  }
  func.func @transform_4(%arg0: i32, %arg1: i32) -> (i32, i32) {
    %c0_i32 = arith.constant 0 : i32
    %c0_i32_0 = arith.constant 0 : i32
    %c0_i32_1 = arith.constant 0 : i32
    return %c0_i32, %c0_i32_0 : i32, i32
  }
  func.func @transform_5(%arg0: i32, %arg1: i32) -> (i32, i32) {
    %c0_i32 = arith.constant 0 : i32
    %c0_i32_0 = arith.constant 0 : i32
    %c0_i32_1 = arith.constant 0 : i32
    return %c0_i32, %c0_i32_0 : i32, i32
  }
  func.func @transform_6(%arg0: i32, %arg1: i32) -> (i32, i32) {
    %c0_i32 = arith.constant 0 : i32
    %c0_i32_0 = arith.constant 0 : i32
    %c0_i32_1 = arith.constant 0 : i32
    return %c0_i32, %c0_i32_0 : i32, i32
  }
  func.func @transform_7(%arg0: i32, %arg1: i32) -> (i32, i32) {
    %c0_i32 = arith.constant 0 : i32
    %c0_i32_0 = arith.constant 0 : i32
    return %c0_i32, %arg1 : i32, i32
  }
  func.func @transform_8(%arg0: i32, %arg1: i32) -> (i32, i32, i32) {
    %c0_i32 = arith.constant 0 : i32
    %c0_i32_0 = arith.constant 0 : i32
    return %arg0, %c0_i32, %arg1 : i32, i32, i32
  }
}

</mosaic_0001>

<bundles_post_ra>
// kernel: conv2d_subsampling6.1
= control target key start
LH: loop header
LB: loop body
LE: loop exit
PB: predicated region body
PF: predicated region fallthrough
CT: control target
= control target key end

     0   :  { %s4809_s27 = smov 0   ;;  %s4811_s28 = smov 0   ;;  %s5658_s0 = inlined_call_operand.vmem [shape: bf16[2,5,9,896], index: 0, kind: input, shape index: {}]   ;;  %s5659_s1 = inlined_call_operand.vmem [shape: bf16[32,9], index: 1, kind: input, shape index: {}]   ;;  %s5660_s2 = inlined_call_operand.vmem [shape: f32[32,1], index: 2, kind: input, shape index: {}]   ;;  %s5661_s3 = inlined_call_operand.vmem [shape: bf16[25,32,32], index: 3, kind: input, shape index: {}]   ;;  %s5662_s4 = inlined_call_operand.vmem [shape: f32[32,1], index: 4, kind: input, shape index: {}]   ;;  %s5663_s5 = inlined_call_operand.vmem [shape: bf16[128,32], index: 5, kind: input, shape index: {}]   ;;  %s5664_s6 = inlined_call_operand.vmem [shape: f32[128,1], index: 6, kind: input, shape index: {}]   ;;  %s5665_s7 = inlined_call_operand.vmem [shape: f32[128,128], index: 7, kind: input, shape index: {}]   ;;  %s5666_s8 = inlined_call_operand.vmem [shape: f32[2,128,128], index: 8, kind: output, shape index: {}]  }
   0x1   :  { %s4813_s29 = smov 0  }
   0x2 LB: > { %s30_s30 = sadd.s32 1, %s4756_s28  ;;  %p3697_p0 = scmp.ge.s32.totalorder %s4760_s29, 1  ;;  %s4760_s29 = sphi %s4813_s29, %s18_s29   ;;  %s4756_s28 = sphi %s4811_s28, %s5668_s28   ;;  %s4752_s27 = sphi %s4809_s27, %s5667_s27  }
   0x3   : > { %p32_p1 = scmp.ge.s32.totalorder %s30_s30, 2  ;;  %p292_p2 = scmp.lt.s32.totalorder %s4760_s29, 3 }
   0x5   : > { %s5670_s30 = smov (%p32_p1, %s30_s30), 0  ;;  %p293_p3 = pnand %p3697_p0, %p292_p2 }
   0x6   : > { %p338_p4 = scmp.lt.s32.totalorder (!%p293_p3), %s4752_s27, 1 }
   0x7   : > { %296 = sbr.rel (%p293_p3) target bundleno = 1046 (0x416), region = 52 }
   0xc   : > { %vm442_vm0 = vcmask 1043456   ;;  %v364_v0 = vld [vmem:[%s5660_s2] sm:$0xff]  ;;  %s5672_s27 = smov (!%p338_p4, %s4752_s27), 1  ;;  %v4762_v1 = vmov 0   ;;  %v366_v2 = vld [vmem:[%s5660_s2 + $0x10] sm:$0xff]  ;;  %vm443_vm1 = vcmask 1044480  }
   0xd   : > { %4734 = vset.pattern.permute.xlu1 %v4762_v1  ;;  %4733 = vset.pattern.permute.xlu0 %v4762_v1  ;;  %v4763_v3 = vmov 65535   ;;  %s4706_s13 = smul.u32 280, %s5672_s27  ;;  %v365_v6 = vld [vmem:[%s5660_s2 + $0x8] sm:$0xff]  ;;  %v4864_v26 = vld [vmem:[%s5659_s1] sm:$0xff]  ;;  %vm435_vm2 = vcmask 72704   ;;  %v367_v32 = vld [vmem:[%s5660_s2 + $0x18] sm:$0xff] }
   0xe   : > { %v444_v4 = vsel %vm442_vm0, 4294967295, %v4763_v3  ;;  %378 = vperm.xlu1 %4734, %v364_v0   ;;  %388 = vperm.xlu0 %4733, %v366_v2   ;;  %v4886_v37 = vld [vmem:[%s5659_s1 + $0x8] sm:$0xff]  ;;  %vm1718_vm3 = vcmask 261120   ;;  %s4547_s24 = sshll.u32 %s5672_s27, 7 }
   0xf   : > { %4735 = vset.pattern.permute.xlu2 %v4762_v1  ;;  %s4839_s16 = scalar_lea.vmem %s5658_s0, %s4706_s13  ;;  %v4841_v5 = vsel %vm443_vm1, %v444_v4, 0  ;;  %s5586_s11 = scalar_lea.vmem %s5666_s8, %s4547_s24 }
  0x10   : > { %v3711_v7 = vld [vmem:[%s4839_s16] sm:$0xf]  ;;  %v4553_v8 = vld [vmem:[%s4839_s16 + $0x18] sm:$0x10]  ;;  %v3719_v9 = vld [vmem:[%s4839_s16 + $0x8] sm:$0xf] }
  0x11   : > { %v3712_v10 = vor.u32 %v4553_v8, %v3711_v7  ;;  %v4554_v11 = vld [vmem:[%s4839_s16 + $0x20] sm:$0x10]  ;;  %v4551_v12 = vld [vmem:[%s4839_s16 + $0xc] sm:$0xf]  ;;  %v3721_v13 = vld [vmem:[%s4839_s16 + $0x24] sm:$0x10] }
  0x12   : > { %v3720_v14 = vor.u32 %v4554_v11, %v3719_v9  ;;  %v3724_v15 = vor.u32 %v4551_v12, %v3721_v13  ;;  %v4550_v16 = vld [vmem:[%s4839_s16 + $0x4] sm:$0xf]  ;;  %v3713_v17 = vld [vmem:[%s4839_s16 + $0x1c] sm:$0x10]  ;;  %v3727_v18 = vld [vmem:[%s4839_s16 + $0x10] sm:$0xf] }
  0x13   : > { %v447_v19 = vand.u32 %v3712_v10, %v4841_v5  ;;  %v3716_v20 = vor.u32 %v4550_v16, %v3713_v17  ;;  %v4555_v21 = vld [vmem:[%s4839_s16 + $0x28] sm:$0x10]  ;;  %v3761_v22 = vld [vmem:[%s4839_s16 + $0x38] sm:$0xf]  ;;  %v4560_v23 = vld [vmem:[%s4839_s16 + $0x50] sm:$0x10] }
  0x14   : > { %v453_v24 = vand.u32 %v3720_v14, %v4841_v5  ;;  %v456_v25 = vand.u32 %v3724_v15, %v4841_v5  ;;  %v3728_v27 = vor.u32 %v4555_v21, %v3727_v18  ;;  %v3762_v28 = vor.u32 %v4560_v23, %v3761_v22  ;;  %v4559_v33 = vld [vmem:[%s4839_s16 + $0x4c] sm:$0xf]  ;;  %v3779_v34 = vld [vmem:[%s4839_s16 + $0x64] sm:$0x10]  ;;  %v4552_v38 = vld [vmem:[%s4839_s16 + $0x14] sm:$0xf] }
  0x15   : > { %474 = vmatpush.bf16.msra.mxu1 %v447_v19  ;;  %v450_v29 = vand.u32 %v3716_v20, %v4841_v5  ;;  %v3782_v35 = vor.u32 %v4559_v33, %v3779_v34  ;;  %v3729_v39 = vld [vmem:[%s4839_s16 + $0x2c] sm:$0x10]  ;;  %v3735_v40 = vld [vmem:[%s4839_s16 + $0x18] sm:$0xf]  ;;  %v4556_v42 = vld [vmem:[%s4839_s16 + $0x30] sm:$0x10] }
  0x16   : > { %383 = vperm.xlu1 %4734, %v365_v6   ;;  %512 = vmatpush.bf16.msra.mxu2 %v453_v24  ;;  %v459_v30 = vand.u32 %v3728_v27, %v4841_v5  ;;  %v699_v31 = vand.u32 %v3762_v28, %v4841_v5  ;;  %v3732_v41 = vor.u32 %v4552_v38, %v3729_v39  ;;  %v4557_v43 = vld [vmem:[%s4839_s16 + $0x3c] sm:$0xf]  ;;  %v3763_v44 = vld [vmem:[%s4839_s16 + $0x54] sm:$0x10]  ;;  %v4568_v51 = vld [vmem:[%s4839_s16 + $0x90] sm:$0x10] }
  0x17   : > { %531 = vmatpush.bf16.msra.mxu3 %v456_v25  ;;  %393 = vperm.xlu0 %4733, %v367_v32   ;;  %v714_v36 = vand.u32 %v3782_v35, %v4841_v5  ;;  %v3736_v45 = vor.u32 %v4556_v42, %v3735_v40  ;;  %v3766_v46 = vor.u32 %v4557_v43, %v3763_v44  ;;  %v3819_v50 = vld [vmem:[%s4839_s16 + $0x78] sm:$0xf]  ;;  %v3769_v54 = vld [vmem:[%s4839_s16 + $0x40] sm:$0xf]  ;;  %v4561_v55 = vld [vmem:[%s4839_s16 + $0x58] sm:$0x10] }
  0x18   : > { %3737 = vmatmul.msk.bf16.vlgmr.msra.gmra.mxu1 %vm435_vm2, %v4864_v26  ;;  %v462_v47 = vand.u32 %v3732_v41, %v4841_v5  ;;  %v3820_v52 = vor.u32 %v4568_v51, %v3819_v50  ;;  %v4558_v56 = vld [vmem:[%s4839_s16 + $0x44] sm:$0xf]  ;;  %v3770_v57 = vor.u32 %v4561_v55, %v3769_v54  ;;  %v3771_v58 = vld [vmem:[%s4839_s16 + $0x5c] sm:$0x10]  ;;  %v3777_v59 = vld [vmem:[%s4839_s16 + $0x48] sm:$0xf] }
  0x19   : > { %493 = vmatpush.bf16.msrb.mxu1 %v450_v29  ;;  %3741 = vmatmul.msk.bf16.vlgmr.msra.gmra.mxu2 %vm435_vm2, %v4864_v26  ;;  %v465_v48 = vand.u32 %v3736_v45, %v4841_v5  ;;  %v702_v49 = vand.u32 %v3766_v46, %v4841_v5  ;;  %v4562_v60 = vld [vmem:[%s4839_s16 + $0x60] sm:$0x10]  ;;  %v3774_v61 = vor.u32 %v4558_v56, %v3771_v58  ;;  %v3835_v2 = vld [vmem:[%s4839_s16 + $0x88] sm:$0xf]  ;;  %v3785_v7 = vld [vmem:[%s4839_s16 + $0x50] sm:$0xf] }
  0x1a   : > { %550 = vmatpush.bf16.msrb.mxu2 %v459_v30  ;;  %3743 = vmatmul.msk.bf16.vlgmr.msra.gmra.mxu3 %vm435_vm2, %v4864_v26  ;;  %v958_v53 = vand.u32 %v3820_v52, %v4841_v5  ;;  %v3778_v62 = vor.u32 %v4562_v60, %v3777_v59  ;;  %v705_v63 = vand.u32 %v3770_v57, %v4841_v5  ;;  %v4570_v3 = vld [vmem:[%s4839_s16 + $0xa0] sm:$0x10]  ;;  %v4563_v8 = vld [vmem:[%s4839_s16 + $0x68] sm:$0x10]  ;;  %v3811_v11 = vld [vmem:[%s4839_s16 + $0x70] sm:$0xf] }
  0x1b   : > { %726 = vmatpush.bf16.msrb.mxu3 %v699_v31  ;;  %821 = vmatpush.bf16.msra.mxu0 %v714_v36  ;;  %v708_v0 = vand.u32 %v3774_v61, %v4841_v5  ;;  %v3836_v4 = vor.u32 %v4570_v3, %v3835_v2  ;;  %v3786_v9 = vor.u32 %v4563_v8, %v3785_v7  ;;  %v4567_v12 = vld [vmem:[%s4839_s16 + $0x88] sm:$0x10]  ;;  %v4564_v13 = vld [vmem:[%s4839_s16 + $0x74] sm:$0xf]  ;;  %v3813_v15 = vld [vmem:[%s4839_s16 + $0x8c] sm:$0x10] }
  0x1c   : > { %v711_v1 = vand.u32 %v3778_v62, %v4841_v5  ;;  %v3812_v14 = vor.u32 %v4567_v12, %v3811_v11  ;;  %v3816_v16 = vor.u32 %v4564_v13, %v3813_v15  ;;  %v4572_v19 = vld [vmem:[%s4839_s16 + $0xb4] sm:$0xf]  ;;  %v3871_v20 = vld [vmem:[%s4839_s16 + $0xcc] sm:$0x10]  ;;  %v4565_v23 = vld [vmem:[%s4839_s16 + $0x7c] sm:$0xf] }
  0x1d   : > { %569 = vmatpush.bf16.msra.mxu1 %v462_v47  ;;  %v970_v6 = vand.u32 %v3836_v4, %v4841_v5  ;;  %v717_v10 = vand.u32 %v3786_v9, %v4841_v5  ;;  %v3874_v21 = vor.u32 %v4572_v19, %v3871_v20  ;;  %v3821_v24 = vld [vmem:[%s4839_s16 + $0x94] sm:$0x10]  ;;  %v3827_v25 = vld [vmem:[%s4839_s16 + $0x80] sm:$0xf]  ;;  %v4569_v28 = vld [vmem:[%s4839_s16 + $0x98] sm:$0x10] }
  0x1e   : > { %3797 = vmatmul.msk.bf16.vlgmr.msra.gmra.mxu0 %vm435_vm2, %v4864_v26  ;;  %588 = vmatpush.bf16.msra.mxu2 %v465_v48  ;;  %v952_v17 = vand.u32 %v3812_v14, %v4841_v5  ;;  %v955_v18 = vand.u32 %v3816_v16, %v4841_v5  ;;  %v3824_v27 = vor.u32 %v4565_v23, %v3821_v24  ;;  %v4566_v29 = vld [vmem:[%s4839_s16 + $0x84] sm:$0xf]  ;;  %v3829_v30 = vld [vmem:[%s4839_s16 + $0x9c] sm:$0x10]  ;;  %v4581_v42 = vld [vmem:[%s4839_s16 + $0xf8] sm:$0x10] }
  0x1f   : > { %745 = vmatpush.bf16.msra.mxu3 %v702_v49  ;;  %1017 = vmatpush.bf16.msrb.mxu0 %v958_v53  ;;  %v1214_v22 = vand.u32 %v3874_v21, %v4841_v5  ;;  %v3828_v31 = vor.u32 %v4569_v28, %v3827_v25  ;;  %v3832_v32 = vor.u32 %v4566_v29, %v3829_v30  ;;  %v3911_v41 = vld [vmem:[%s4839_s16 + $0xe0] sm:$0xf]  ;;  %v3861_v7 = vld [vmem:[%s4839_s16 + $0xa8] sm:$0xf]  ;;  %v4574_v8 = vld [vmem:[%s4839_s16 + $0xc0] sm:$0x10] }
  0x20   : > { %v961_v33 = vand.u32 %v3824_v27, %v4841_v5  ;;  %v3912_v46 = vor.u32 %v4581_v42, %v3911_v41  ;;  %v4571_v9 = vld [vmem:[%s4839_s16 + $0xac] sm:$0xf]  ;;  %v3863_v11 = vld [vmem:[%s4839_s16 + $0xc4] sm:$0x10]  ;;  %v3869_v12 = vld [vmem:[%s4839_s16 + $0xb0] sm:$0xf] }
  0x21   : > { %v964_v35 = vand.u32 %v3828_v31, %v4841_v5  ;;  %v967_v36 = vand.u32 %v3832_v32, %v4841_v5  ;;  %v4575_v13 = vld [vmem:[%s4839_s16 + $0xc8] sm:$0x10]  ;;  %v3866_v15 = vor.u32 %v4571_v9, %v3863_v11  ;;  %v3877_v9 = vld [vmem:[%s4839_s16 + $0xb8] sm:$0xf]  ;;  %v4573_v11 = vld [vmem:[%s4839_s16 + $0xbc] sm:$0xf] }
  0x22   : > { %v1458_v49 = vand.u32 %v3912_v46, %v4841_v5  ;;  %v3870_v16 = vor.u32 %v4575_v13, %v3869_v12 }
  0x23   : > { %1093 = vmatpush.bf16.msra.mxu0 %v970_v6  ;;  %v1208_v24 = vand.u32 %v3866_v15, %v4841_v5 }
  0x24   : > { %v1211_v25 = vand.u32 %v3870_v16, %v4841_v5  ;;  %v3879_v16 = vld [vmem:[%s4839_s16 + $0xd4] sm:$0x10] }
  0x28   : > { %3738 = vmatmul.msk.bf16.gmra.mxu1 %vm435_vm2, %v4886_v37 }
  0x29   : > { %3742 = vmatmul.msk.bf16.gmra.mxu2 %vm435_vm2, %v4886_v37 }
  0x2a   : > { %3744 = vmatmul.msk.bf16.gmra.mxu3 %vm435_vm2, %v4886_v37 }
  0x2e   : > { %3798 = vmatmul.msk.bf16.gmra.mxu0 %vm435_vm2, %v4886_v37 }
  0x38   : > { %3739 = vmatmul.msk.bf16.vlgmr.msrb.gmra.mxu1 %vm435_vm2, %v4864_v26 }
  0x39   : > { %3745 = vmatmul.msk.bf16.vlgmr.msrb.gmra.mxu2 %vm435_vm2, %v4864_v26  ;;  %764 = vmatpush.bf16.msrb.mxu1 %v705_v63 }
  0x3a   : > { %3787 = vmatmul.msk.bf16.vlgmr.msrb.gmra.mxu3 %vm435_vm2, %v4864_v26  ;;  %783 = vmatpush.bf16.msrb.mxu2 %v708_v0 }
  0x3b   : > { %802 = vmatpush.bf16.msrb.mxu3 %v711_v1 }
  0x3e   : > { %3841 = vmatmul.msk.bf16.vlgmr.msrb.gmra.mxu0 %vm435_vm2, %v4864_v26 }
  0x3f   : > { %1289 = vmatpush.bf16.msrb.mxu0 %v1214_v22 }
  0x48   : > { %3740 = vmatmul.msk.bf16.gmra.mxu1 %vm435_vm2, %v4886_v37 }
  0x49   : > { %3746 = vmatmul.msk.bf16.gmra.mxu2 %vm435_vm2, %v4886_v37 }
  0x4a   : > { %3788 = vmatmul.msk.bf16.gmra.mxu3 %vm435_vm2, %v4886_v37 }
  0x4e   : > { %3842 = vmatmul.msk.bf16.gmra.mxu0 %vm435_vm2, %v4886_v37 }
  0x58   : > { %3747 = vmatmul.msk.bf16.vlgmr.msra.gmra.mxu1 %vm435_vm2, %v4864_v26 }
  0x59   : > { %3749 = vmatmul.msk.bf16.vlgmr.msra.gmra.mxu2 %vm435_vm2, %v4864_v26  ;;  %840 = vmatpush.bf16.msra.mxu1 %v717_v10  ;;  %v3862_v10 = vor.u32 %v4574_v8, %v3861_v7  ;;  %v1673_v7 = vld [vmem:[%s5662_s4 + $0x8] sm:$0xff] }
  0x5a   : > { %3789 = vmatmul.msk.bf16.vlgmr.msra.gmra.mxu3 %vm435_vm2, %v4864_v26  ;;  %979 = vmatpush.bf16.msra.mxu2 %v952_v17 }
  0x5b   : > { %998 = vmatpush.bf16.msra.mxu3 %v955_v18  ;;  %v1205_v20 = vand.u32 %v3862_v10, %v4841_v5  ;;  %3239 = vperm.xlu1 %4734, %v1673_v7   ;;  %v4576_v10 = vld [vmem:[%s4839_s16 + $0xd0] sm:$0x10] }
  0x5c   : > { %v3878_v15 = vor.u32 %v4576_v10, %v3877_v9 }
  0x5e   : > { %3849 = vmatmul.msk.bf16.vlgmr.msra.gmra.mxu0 %vm435_vm2, %v4864_v26 }
  0x5f   : > { %1485 = vmatpush.bf16.msra.mxu0 %v1458_v49 }
  0x68   : > { %3748 = vmatmul.msk.bf16.gmra.mxu1 %vm435_vm2, %v4886_v37 }
  0x69   : > { %3750 = vmatmul.msk.bf16.gmra.mxu2 %vm435_vm2, %v4886_v37 }
  0x6a   : > { %3790 = vmatmul.msk.bf16.gmra.mxu3 %vm435_vm2, %v4886_v37 }
  0x6e   : > { %3850 = vmatmul.msk.bf16.gmra.mxu0 %vm435_vm2, %v4886_v37 }
  0x78   : > { %3791 = vmatmul.msk.bf16.vlgmr.msrb.gmra.mxu1 %vm435_vm2, %v4864_v26 }
  0x79   : > { %3793 = vmatmul.msk.bf16.vlgmr.msrb.gmra.mxu2 %vm435_vm2, %v4864_v26  ;;  %1036 = vmatpush.bf16.msrb.mxu1 %v961_v33 }
  0x7a   : > { %3795 = vmatmul.msk.bf16.vlgmr.msrb.gmra.mxu3 %vm435_vm2, %v4864_v26  ;;  %1055 = vmatpush.bf16.msrb.mxu2 %v964_v35  ;;  %v4583_v35 = vld [vmem:[%s4839_s16 + $0x108] sm:$0x10] }
  0x7b   : > { %1074 = vmatpush.bf16.msrb.mxu3 %v967_v36 }
  0x7e   : > { %3893 = vmatmul.msk.bf16.vlgmr.msrb.gmra.mxu0 %vm435_vm2, %v4864_v26 }
  0x80   : > { %v4991_v38 = vpop.permute.xlu1 %378  ;;  %v5014_v60 = vpop.permute.xlu0 %388 }
  0x88   : > { %3792 = vmatmul.msk.bf16.gmra.mxu1 %vm435_vm2, %v4886_v37  ;;  %v5004_v51 = vpop.permute.xlu1 %383 }
  0x89   : > { %3794 = vmatmul.msk.bf16.gmra.mxu2 %vm435_vm2, %v4886_v37  ;;  %v5032_v14 = vpop.permute.xlu0 %393 }
  0x8a   : > { %3796 = vmatmul.msk.bf16.gmra.mxu3 %vm435_vm2, %v4886_v37 }
  0x8e   : > { %3894 = vmatmul.msk.bf16.gmra.mxu0 %vm435_vm2, %v4886_v37 }
  0x95   : > { %v476_v34 = vpop.f32.mrf.mxu1 }
  0x96   : > { %v477_v17 = vadd.f32 %v476_v34, %v4991_v38  ;;  %v3927_v34 = vld [vmem:[%s4839_s16 + $0xf0] sm:$0xf] }
  0x98   : > { %3799 = vmatmul.msk.bf16.vlgmr.msra.gmra.mxu1 %vm435_vm2, %v4864_v26  ;;  %v600_v31 = vmax.f32 %v477_v17, 0.0  ;;  %v3885_v17 = vld [vmem:[%s4839_s16 + $0xc0] sm:$0xf] }
  0x99   : > { %3837 = vmatmul.msk.bf16.vlgmr.msra.gmra.mxu2 %vm435_vm2, %v4864_v26  ;;  %1232 = vmatpush.bf16.msra.mxu1 %v1205_v20  ;;  %v3882_v20 = vor.u32 %v4573_v11, %v3879_v16 }
  0x9a   : > { %3839 = vmatmul.msk.bf16.vlgmr.msra.gmra.mxu3 %vm435_vm2, %v4864_v26  ;;  %1251 = vmatpush.bf16.msra.mxu2 %v1208_v24  ;;  %v1217_v24 = vand.u32 %v3878_v15, %v4841_v5 }
  0x9b   : > { %v5024_v2 = vpop.f32.mrf.mxu0  ;;  %1270 = vmatpush.bf16.msra.mxu3 %v1211_v25 }
  0x9c   : > { %v514_v39 = vpop.f32.mrf.mxu2 }
  0x9d   : > { %v533_v40 = vpop.f32.mrf.mxu3  ;;  %v515_v43 = vadd.f32 %v514_v39, %v4991_v38  ;;  %v5001_v45 = vpop.f32.mrf.mxu1  ;;  %v3928_v39 = vor.u32 %v4583_v35, %v3927_v34 }
  0x9e   : > { %v534_v44 = vadd.f32 %v533_v40, %v4991_v38  ;;  %3937 = vmatmul.msk.bf16.vlgmr.msra.gmra.mxu0 %vm435_vm2, %v4864_v26  ;;  %v479_v40 = vadd.f32 %v5001_v45, %v5004_v51 }
  0x9f   : > { %v602_v47 = vmax.f32 %v515_v43, 0.0  ;;  %v1470_v43 = vand.u32 %v3928_v39, %v4841_v5 }
  0xa0   : > { %v603_v48 = vmax.f32 %v534_v44, 0.0 }
  0xa1   : > { %1561 = vmatpush.bf16.msrb.mxu0 %v1470_v43  ;;  %v3292_v43 = vld [vmem:[%s5664_s6 + $0x20] sm:$0xff] }
  0xa2   : > { %v629_v50 = vpack.c.bf16 %v603_v48, %v602_v47  ;;  %v607_v48 = vmax.f32 %v479_v40, 0.0 }
  0xa3   : > { %v5043_v28 = vpop.f32.mrf.mxu0 }
  0xa4   : > { %645 = vst [vmem:[#allocation2 + $0x8] sm:$0xff] %v629_v50  ;;  %v516_v52 = vpop.f32.mrf.mxu2 }
  0xa5   : > { %v535_v53 = vpop.f32.mrf.mxu3  ;;  %v517_v54 = vadd.f32 %v516_v52, %v5004_v51  ;;  %v5010_v56 = vpop.f32.mrf.mxu1 }
  0xa6   : > { %v536_v55 = vadd.f32 %v535_v53, %v5004_v51  ;;  %v482_v52 = vadd.f32 %v5010_v56, %v5014_v60 }
  0xa7   : > { %v609_v57 = vmax.f32 %v517_v54, 0.0 }
  0xa8   : > { %v610_v58 = vmax.f32 %v536_v55, 0.0  ;;  %3800 = vmatmul.msk.bf16.gmra.mxu1 %vm435_vm2, %v4886_v37 }
  0xa9   : > { %3838 = vmatmul.msk.bf16.gmra.mxu2 %vm435_vm2, %v4886_v37 }
  0xaa   : > { %v633_v59 = vpack.c.bf16 %v610_v58, %v609_v57  ;;  %3840 = vmatmul.msk.bf16.gmra.mxu3 %vm435_vm2, %v4886_v37  ;;  %v614_v58 = vmax.f32 %v482_v52, 0.0 }
  0xab   : > { %v5059_v47 = vpop.f32.mrf.mxu0 }
  0xac   : > { %649 = vst [vmem:[#allocation2 + $0x24] sm:$0xff] %v633_v59  ;;  %v519_v61 = vpop.f32.mrf.mxu2 }
  0xad   : > { %v538_v62 = vpop.f32.mrf.mxu3  ;;  %v520_v63 = vadd.f32 %v519_v61, %v5014_v60  ;;  %v5022_v1 = vpop.f32.mrf.mxu1  ;;  %v1672_v61 = vld [vmem:[%s5662_s4] sm:$0xff] }
  0xae   : > { %v539_v0 = vadd.f32 %v538_v62, %v5014_v60  ;;  %3938 = vmatmul.msk.bf16.gmra.mxu0 %vm435_vm2, %v4886_v37  ;;  %v484_v62 = vadd.f32 %v5022_v1, %v5032_v14  ;;  %3234 = vperm.xlu0 %4733, %v1672_v61   ;;  %v3293_v61 = vld [vmem:[%s5664_s6 + $0x28] sm:$0xff] }
  0xaf   : > { %v616_v3 = vmax.f32 %v520_v63, 0.0 }
  0xb0   : > { %v617_v4 = vmax.f32 %v539_v0, 0.0  ;;  %v621_v8 = vmax.f32 %v484_v62, 0.0 }
  0xb2   : > { %v637_v6 = vpack.c.bf16 %v617_v4, %v616_v3 }
  0xb3   : > { %v5068_v57 = vpop.f32.mrf.mxu0 }
  0xb4   : > { %653 = vst [vmem:[#allocation2 + $0x40] sm:$0xff] %v637_v6  ;;  %v521_v18 = vpop.f32.mrf.mxu2 }
  0xb5   : > { %v540_v19 = vpop.f32.mrf.mxu3  ;;  %v522_v21 = vadd.f32 %v521_v18, %v5032_v14  ;;  %v495_v23 = vpop.f32.mrf.mxu1  ;;  %v4577_v18 = vld [vmem:[%s4839_s16 + $0xd8] sm:$0x10] }
  0xb6   : > { %v541_v22 = vadd.f32 %v540_v19, %v5032_v14  ;;  %v496_v27 = vadd.f32 %v495_v23, %v4991_v38  ;;  %v3289_v19 = vld [vmem:[%s5664_s6 + $0x8] sm:$0xff] }
  0xb7   : > { %v623_v29 = vmax.f32 %v522_v21, 0.0  ;;  %v3886_v21 = vor.u32 %v4577_v18, %v3885_v17  ;;  %3311 = vperm.xlu0 %4733, %v3289_v19  }
  0xb8   : > { %v624_v30 = vmax.f32 %v541_v22, 0.0  ;;  %v601_v32 = vmax.f32 %v496_v27, 0.0  ;;  %3843 = vmatmul.msk.bf16.vlgmr.msrb.gmra.mxu1 %vm435_vm2, %v4864_v26  ;;  %v1220_v27 = vand.u32 %v3882_v20, %v4841_v5 }
  0xb9   : > { %3845 = vmatmul.msk.bf16.vlgmr.msrb.gmra.mxu2 %vm435_vm2, %v4864_v26  ;;  %1308 = vmatpush.bf16.msrb.mxu1 %v1217_v24 }
  0xba   : > { %v641_v33 = vpack.c.bf16 %v624_v30, %v623_v29  ;;  %3847 = vmatmul.msk.bf16.vlgmr.msrb.gmra.mxu3 %vm435_vm2, %v4864_v26  ;;  %v628_v36 = vpack.c.bf16 %v601_v32, %v600_v31  ;;  %v1223_v32 = vand.u32 %v3886_v21, %v4841_v5  ;;  %1327 = vmatpush.bf16.msrb.mxu2 %v1220_v27 }
  0xbb   : > { %v5086_v6 = vpop.f32.mrf.mxu0 }
  0xbc   : > { %657 = vst [vmem:[#allocation2 + $0x5c] sm:$0xff] %v641_v33  ;;  %v552_v41 = vpop.f32.mrf.mxu2  ;;  %v3290_v33 = vld [vmem:[%s5664_s6 + $0x10] sm:$0xff]  ;;  %1346 = vmatpush.bf16.msrb.mxu3 %v1223_v32 }
  0xbd   : > { %644 = vst [vmem:[#allocation2] sm:$0xff] %v628_v36  ;;  %v5055_v42 = vpop.f32.mrf.mxu3  ;;  %v497_v44 = vpop.f32.mrf.mxu1  ;;  %v553_v12 = vadd.f32 %v552_v41, %v4991_v38  ;;  %3316 = vperm.xlu1 %4734, %v3290_v33  }
  0xbe   : > { %v498_v46 = vadd.f32 %v497_v44, %v5004_v51  ;;  %3945 = vmatmul.msk.bf16.vlgmr.msrb.gmra.mxu0 %vm435_vm2, %v4864_v26  ;;  %v729_v35 = vadd.f32 %v5055_v42, %v4991_v38 }
  0xbf   : > { %v604_v29 = vmax.f32 %v553_v12, 0.0  ;;  %3326 = vperm.xlu0 %4733, %v3292_v43   ;;  %v3295_v12 = vld [vmem:[%s5664_s6 + $0x38] sm:$0xff] }
  0xc0   : > { %v608_v49 = vmax.f32 %v498_v46, 0.0 }
  0xc2   : > { %v632_v50 = vpack.c.bf16 %v608_v49, %v607_v48  ;;  %v852_v48 = vmax.f32 %v729_v35, 0.0 }
  0xc3   : > { %v5110_v31 = vpop.f32.mrf.mxu0 }
  0xc4   : > { %648 = vst [vmem:[#allocation2 + $0x1c] sm:$0xff] %v632_v50  ;;  %v554_v45 = vpop.f32.mrf.mxu2  ;;  %v4071_v16 = vld [vmem:[#allocation2 + $0x4] sm:$0xf] }
  0xc5   : > { %v5063_v53 = vpop.f32.mrf.mxu3  ;;  %v500_v54 = vpop.f32.mrf.mxu1  ;;  %v555_v36 = vadd.f32 %v554_v45, %v5004_v51  ;;  %3331 = vperm.xlu1 %4734, %v3293_v61   ;;  %v3921_v61 = vld [vmem:[%s4839_s16 + $0x104] sm:$0x10] }
  0xc6   : > { %v501_v55 = vadd.f32 %v500_v54, %v5014_v60  ;;  %v731_v7 = vadd.f32 %v5063_v53, %v5004_v51 }
  0xc7   : > { %v611_v54 = vmax.f32 %v555_v36, 0.0  ;;  %3341 = vperm.xlu0 %4733, %v3295_v12  }
  0xc8   : > { %v615_v59 = vmax.f32 %v501_v55, 0.0  ;;  %3844 = vmatmul.msk.bf16.gmra.mxu1 %vm435_vm2, %v4886_v37  ;;  %v859_v53 = vmax.f32 %v731_v7, 0.0 }
  0xc9   : > { %3846 = vmatmul.msk.bf16.gmra.mxu2 %vm435_vm2, %v4886_v37 }
  0xca   : > { %3848 = vmatmul.msk.bf16.gmra.mxu3 %vm435_vm2, %v4886_v37  ;;  %v636_v56 = vpack.c.bf16 %v615_v59, %v614_v58 }
  0xcb   : > { %v4587_v52 = vld [vmem:[#allocation2 + $0x18] sm:$0xf0]  ;;  %v5130_v58 = vpop.f32.mrf.mxu0  ;;  %v4607_v11 = vld [vmem:[#allocation2 + $0x1c] sm:$0xf0] }
  0xcc   : > { %652 = vst [vmem:[#allocation2 + $0x38] sm:$0xff] %v636_v56  ;;  %v5081_v63 = vpop.f32.mrf.mxu2  ;;  %v3983_v56 = vld [vmem:[#allocation2] sm:$0xf] }
  0xcd   : > { %v5083_v0 = vpop.f32.mrf.mxu3  ;;  %v502_v3 = vpop.f32.mrf.mxu1  ;;  %v558_v9 = vadd.f32 %v5081_v63, %v5014_v60  ;;  %v4072_v63 = vor.u32 %v4607_v11, %v4071_v16  ;;  %v3302_v16 = vld [vmem:[%s5664_s6 + $0x70] sm:$0xff] }
  0xce   : > { %v503_v4 = vadd.f32 %v502_v3, %v5032_v14  ;;  %3946 = vmatmul.msk.bf16.gmra.mxu0 %vm435_vm2, %v4886_v37  ;;  %v3984_v3 = vor.u32 %v4587_v52, %v3983_v56  ;;  %v3913_v52 = vld [vmem:[%s4839_s16 + $0xfc] sm:$0x10]  ;;  %v4579_v56 = vld [vmem:[%s4839_s16 + $0xec] sm:$0xf] }
  0xcf   : > { %v618_v19 = vmax.f32 %v558_v9, 0.0 }
  0xd0   : > { %v622_v1 = vmax.f32 %v503_v4, 0.0 }
  0xd2   : > { %v640_v13 = vpack.c.bf16 %v622_v1, %v621_v8 }
  0xd3   : > { %v3987_v40 = vld [vmem:[#allocation2 + $0x38] sm:$0xf]  ;;  %v4075_v4 = vld [vmem:[#allocation2 + $0x3c] sm:$0xf]  ;;  %v5144_v21 = vpop.f32.mrf.mxu0 }
  0xd4   : > { %656 = vst [vmem:[#allocation2 + $0x54] sm:$0xff] %v640_v13  ;;  %v5101_v22 = vpop.f32.mrf.mxu2 }
  0xd5   : > { %v5103_v23 = vpop.f32.mrf.mxu3  ;;  %v571_v25 = vpop.f32.mrf.mxu1  ;;  %v560_v32 = vadd.f32 %v5101_v22, %v5032_v14 }
  0xd6   : > { %v572_v30 = vadd.f32 %v571_v25, %v4991_v38  ;;  %v3296_v25 = vld [vmem:[%s5664_s6 + $0x40] sm:$0xff] }
  0xd7   : > { %3346 = vperm.xlu1 %4734, %v3296_v25   ;;  %v625_v22 = vmax.f32 %v560_v32, 0.0  ;;  %v826_v32 = vadd.f32 %v5043_v28, %v5004_v51 }
  0xd8   : > { %v605_v34 = vmax.f32 %v572_v30, 0.0  ;;  %3887 = vmatmul.msk.bf16.vlgmr.msra.gmra.mxu1 %vm435_vm2, %v4864_v26 }
  0xd9   : > { %3889 = vmatmul.msk.bf16.vlgmr.msra.gmra.mxu2 %vm435_vm2, %v4864_v26 }
  0xda   : > { %3891 = vmatmul.msk.bf16.vlgmr.msra.gmra.mxu3 %vm435_vm2, %v4864_v26  ;;  %v630_v39 = vpack.c.bf16 %v605_v34, %v604_v29  ;;  %v734_v29 = vadd.f32 %v5083_v0, %v5014_v60  ;;  %v3298_v34 = vld [vmem:[%s5664_s6 + $0x50] sm:$0xff] }
  0xdb   : > { %v4588_v41 = vld [vmem:[#allocation2 + $0x50] sm:$0xf0]  ;;  %v4608_v55 = vld [vmem:[#allocation2 + $0x54] sm:$0xf0]  ;;  %3356 = vperm.xlu0 %4733, %v3298_v34   ;;  %v1095_v43 = vpop.f32.mrf.mxu0 }
  0xdc   : > { %646 = vst [vmem:[#allocation2 + $0x10] sm:$0xff] %v630_v39  ;;  %v590_v44 = vpop.f32.mrf.mxu2  ;;  %v3988_v42 = vor.u32 %v4588_v41, %v3987_v40  ;;  %v4076_v1 = vor.u32 %v4608_v55, %v4075_v4  ;;  %v866_v36 = vmax.f32 %v734_v29, 0.0  ;;  %v3924_v4 = vor.u32 %v4579_v56, %v3921_v61 }
  0xdd   : > { %v747_v46 = vpop.f32.mrf.mxu3  ;;  %v573_v50 = vpop.f32.mrf.mxu1  ;;  %v864_v43 = vmax.f32 %v826_v32, 0.0 }
  0xde   : > { %v748_v49 = vadd.f32 %v747_v46, %v4991_v38  ;;  %v574_v45 = vadd.f32 %v573_v50, %v5004_v51  ;;  %1778 = vmatpush.bf16.msra.mxu0 %v3988_v42  ;;  %v3299_v46 = vld [vmem:[%s5664_s6 + $0x58] sm:$0xff]  ;;  %v736_v42 = vadd.f32 %v5103_v23, %v5032_v14  ;;  %v4578_v50 = vld [vmem:[%s4839_s16 + $0xe4] sm:$0xf]  ;;  %v1467_v12 = vand.u32 %v3924_v4, %v4841_v5 }
  0xdf   : > { %3361 = vperm.xlu1 %4734, %v3299_v46   ;;  %v3916_v55 = vor.u32 %v4578_v50, %v3913_v52 }
  0xe0   : > { %v853_v59 = vmax.f32 %v748_v49, 0.0  ;;  %v612_v62 = vmax.f32 %v574_v45, 0.0  ;;  %v873_v7 = vmax.f32 %v736_v42, 0.0  ;;  %1542 = vmatpush.bf16.msra.mxu3 %v1467_v12  ;;  %v4580_v12 = vld [vmem:[%s4839_s16 + $0xf4] sm:$0xf] }
  0xe2   : > { %v880_v8 = vpack.c.bf16 %v853_v59, %v852_v48  ;;  %v634_v10 = vpack.c.bf16 %v612_v62, %v611_v54  ;;  %1779 = vmatpush.bf16.msra.mxu0 %v3984_v3  ;;  %v3919_v54 = vld [vmem:[%s4839_s16 + $0xe8] sm:$0xf]  ;;  %v4582_v59 = vld [vmem:[%s4839_s16 + $0x100] sm:$0x10] }
  0xe3   : > { %v3301_v62 = vld [vmem:[%s5664_s6 + $0x68] sm:$0xff]  ;;  %v3920_v3 = vor.u32 %v4582_v59, %v3919_v54 }
  0xe4   : > { %897 = vst [vmem:[#allocation2 + $0x70] sm:$0xff] %v880_v8  ;;  %v592_v13 = vpop.f32.mrf.mxu2  ;;  %3371 = vperm.xlu0 %4733, %v3301_v62  }
  0xe5   : > { %v749_v15 = vpop.f32.mrf.mxu3  ;;  %650 = vst [vmem:[#allocation2 + $0x2c] sm:$0xff] %v634_v10  ;;  %v576_v18 = vpop.f32.mrf.mxu1  ;;  %v1464_v11 = vand.u32 %v3920_v3, %v4841_v5 }
  0xe6   : > { %2024 = vmatpush.bf16.msrb.mxu0 %v4076_v1  ;;  %v750_v17 = vadd.f32 %v749_v15, %v5004_v51  ;;  %v577_v20 = vadd.f32 %v576_v18, %v5014_v60  ;;  %v1461_v1 = vand.u32 %v3916_v55, %v4841_v5  ;;  %v1097_v15 = vpop.f32.mrf.mxu0 }
  0xe7   : > { %1523 = vmatpush.bf16.msra.mxu2 %v1464_v11  ;;  %3376 = vperm.xlu1 %4734, %v3302_v16   ;;  %v3935_v15 = vld [vmem:[%s4839_s16 + $0xf8] sm:$0xf] }
  0xe8   : > { %v860_v24 = vmax.f32 %v750_v17, 0.0  ;;  %v619_v27 = vmax.f32 %v577_v20, 0.0  ;;  %3888 = vmatmul.msk.bf16.gmra.mxu1 %vm435_vm2, %v4886_v37 }
  0xe9   : > { %3890 = vmatmul.msk.bf16.gmra.mxu2 %vm435_vm2, %v4886_v37  ;;  %1504 = vmatpush.bf16.msra.mxu1 %v1461_v1 }
  0xea   : > { %2025 = vmatpush.bf16.msrb.mxu0 %v4072_v63  ;;  %v884_v30 = vpack.c.bf16 %v860_v24, %v859_v53  ;;  %3892 = vmatmul.msk.bf16.gmra.mxu3 %vm435_vm2, %v4886_v37  ;;  %v638_v33 = vpack.c.bf16 %v619_v27, %v618_v19  ;;  %v824_v53 = vadd.f32 %v5024_v2, %v4991_v38 }
  0xeb   : > { %v3965_v28 = vld [vmem:[#allocation2 + $0x70] sm:$0xf] }
  0xec   : > { %901 = vst [vmem:[#allocation2 + $0x8c] sm:$0xff] %v884_v30  ;;  %v595_v35 = vpop.f32.mrf.mxu2  ;;  %v857_v20 = vmax.f32 %v824_v53, 0.0  ;;  %v4584_v53 = vld [vmem:[%s4839_s16 + $0x110] sm:$0x10] }
  0xed   : > { %v752_v0 = vpop.f32.mrf.mxu3  ;;  %654 = vst [vmem:[#allocation2 + $0x48] sm:$0xff] %v638_v33  ;;  %v578_v40 = vpop.f32.mrf.mxu1 }
  0xee   : > { %v753_v39 = vadd.f32 %v752_v0, %v5014_v60  ;;  %v579_v41 = vadd.f32 %v578_v40, %v5032_v14  ;;  %v1100_v35 = vpop.f32.mrf.mxu0 }
  0xef   : > { %v4736_v35 = vld [vmem:[%s5659_s1] sm:$0xff] }
  0xf0   : > { %v867_v44 = vmax.f32 %v753_v39, 0.0  ;;  %v626_v48 = vmax.f32 %v579_v41, 0.0 }
  0xf2   : > { %v888_v49 = vpack.c.bf16 %v867_v44, %v866_v36  ;;  %v642_v45 = vpack.c.bf16 %v626_v48, %v625_v22 }
  0xf3   : > { %v4591_v48 = vld [vmem:[#allocation2 + $0x88] sm:$0xf0] }
  0xf4   : > { %905 = vst [vmem:[#allocation2 + $0xa8] sm:$0xff] %v888_v49  ;;  %v597_v23 = vpop.f32.mrf.mxu2  ;;  %v3966_v54 = vor.u32 %v4591_v48, %v3965_v28 }
  0xf5   : > { %v754_v8 = vpop.f32.mrf.mxu3  ;;  %658 = vst [vmem:[#allocation2 + $0x64] sm:$0xff] %v642_v45  ;;  %v766_v10 = vpop.f32.mrf.mxu1  ;;  %v829_v45 = vadd.f32 %v5059_v47, %v5014_v60 }
  0xf6   : > { %v755_v9 = vadd.f32 %v754_v8, %v5032_v14  ;;  %v767_v18 = vadd.f32 %v766_v10, %v4991_v38  ;;  %v1102_v61 = vpop.f32.mrf.mxu0 }
  0xf7   : > { %v871_v3 = vmax.f32 %v829_v45, 0.0 }
  0xf8   : > { %v874_v13 = vmax.f32 %v755_v9, 0.0  ;;  %3895 = vmatmul.msk.bf16.vlgmr.msrb.gmra.mxu1 %vm435_vm2, %v4864_v26  ;;  %v854_v2 = vmax.f32 %v767_v18, 0.0  ;;  %v831_v9 = vadd.f32 %v5068_v57, %v5032_v14  ;;  %v3936_v18 = vor.u32 %v4584_v53, %v3935_v15 }
  0xf9   : > { %3897 = vmatmul.msk.bf16.vlgmr.msrb.gmra.mxu2 %vm435_vm2, %v4864_v26  ;;  %v1022_v15 = vadd.f32 %v5110_v31, %v5004_v51 }
  0xfa   : > { %v892_v17 = vpack.c.bf16 %v874_v13, %v873_v7  ;;  %3899 = vmatmul.msk.bf16.vlgmr.msrb.gmra.mxu3 %vm435_vm2, %v4864_v26  ;;  %v3929_v13 = vld [vmem:[%s4839_s16 + $0x10c] sm:$0x10] }
  0xfb   : > { %v3969_v0 = vld [vmem:[#allocation2 + $0xa8] sm:$0xf]  ;;  %v3932_v16 = vor.u32 %v4580_v12, %v3929_v13 }
  0xfc   : > { %909 = vst [vmem:[#allocation2 + $0xc4] sm:$0xff] %v892_v17  ;;  %v785_v63 = vpop.f32.mrf.mxu2 }
  0xfd   : > { %v804_v19 = vpop.f32.mrf.mxu3  ;;  %v786_v24 = vadd.f32 %v785_v63, %v4991_v38  ;;  %v768_v27 = vpop.f32.mrf.mxu1 }
  0xfe   : > { %v805_v25 = vadd.f32 %v804_v19, %v4991_v38  ;;  %v769_v36 = vadd.f32 %v768_v27, %v5004_v51 }
  0xff   : > { %v855_v29 = vmax.f32 %v786_v24, 0.0  ;;  %v878_v24 = vmax.f32 %v831_v9, 0.0 }
 0x100   : > { %v856_v30 = vmax.f32 %v805_v25, 0.0  ;;  %v861_v49 = vmax.f32 %v769_v36, 0.0 }
 0x101   : > { %v881_v33 = vpack.c.bf16 %v855_v29, %v854_v2  ;;  %v1476_v2 = vand.u32 %v3936_v18, %v4841_v5 }
 0x102   : > { %v882_v34 = vpack.c.bf16 %v857_v20, %v856_v30  ;;  %v1473_v20 = vand.u32 %v3932_v16, %v4841_v5 }
 0x103   : > { %898 = vst [vmem:[#allocation2 + $0x78] sm:$0xff] %v881_v33  ;;  %v4592_v39 = vld [vmem:[#allocation2 + $0xc0] sm:$0xf0]  ;;  %1599 = vmatpush.bf16.msrb.mxu2 %v1476_v2 }
 0x104   : > { %899 = vst [vmem:[#allocation2 + $0x80] sm:$0xff] %v882_v34  ;;  %v787_v40 = vpop.f32.mrf.mxu2  ;;  %v3970_v41 = vor.u32 %v4592_v39, %v3969_v0  ;;  %1580 = vmatpush.bf16.msrb.mxu1 %v1473_v20 }
 0x105   : > { %v806_v22 = vpop.f32.mrf.mxu3  ;;  %v788_v44 = vadd.f32 %v787_v40, %v5004_v51  ;;  %v771_v42 = vpop.f32.mrf.mxu1 }
 0x106   : > { %v807_v46 = vadd.f32 %v806_v22, %v5004_v51  ;;  %1731 = vmatpush.bf16.msrb.mxu3 %v3970_v41  ;;  %v772_v56 = vadd.f32 %v771_v42, %v5014_v60 }
 0x107   : > { %v862_v50 = vmax.f32 %v788_v44, 0.0 }
 0x108   : > { %v863_v52 = vmax.f32 %v807_v46, 0.0  ;;  %3896 = vmatmul.msk.bf16.gmra.mxu1 %vm435_vm2, %v4886_v37  ;;  %v868_v8 = vmax.f32 %v772_v56, 0.0 }
 0x109   : > { %v885_v55 = vpack.c.bf16 %v862_v50, %v861_v49  ;;  %3898 = vmatmul.msk.bf16.gmra.mxu2 %vm435_vm2, %v4886_v37  ;;  %v5237_v50 = vld [vmem:[%s5659_s1 + $0x8] sm:$0xff] }
 0x10a   : > { %v886_v59 = vpack.c.bf16 %v864_v43, %v863_v52  ;;  %3900 = vmatmul.msk.bf16.gmra.mxu3 %vm435_vm2, %v4886_v37 }
 0x10b   : > { %1732 = vmatpush.bf16.msrb.mxu3 %v3966_v54  ;;  %902 = vst [vmem:[#allocation2 + $0x94] sm:$0xff] %v885_v55 }
 0x10c   : > { %903 = vst [vmem:[#allocation2 + $0x9c] sm:$0xff] %v886_v59  ;;  %v790_v62 = vpop.f32.mrf.mxu2 }
 0x10d   : > { %v809_v47 = vpop.f32.mrf.mxu3  ;;  %v791_v4 = vadd.f32 %v790_v62, %v5014_v60  ;;  %v773_v23 = vpop.f32.mrf.mxu1 }
 0x10e   : > { %v810_v7 = vadd.f32 %v809_v47, %v5014_v60  ;;  %v774_v17 = vadd.f32 %v773_v23, %v5032_v14 }
 0x10f   : > { %v869_v37 = vmax.f32 %v791_v4, 0.0 }
 0x110   : > { %v870_v1 = vmax.f32 %v810_v7, 0.0  ;;  %v875_v29 = vmax.f32 %v774_v17, 0.0 }
 0x111   : > { %v889_v10 = vpack.c.bf16 %v869_v37, %v868_v8 }
 0x112   : > { %v890_v11 = vpack.c.bf16 %v871_v3, %v870_v1  ;;  %v1020_v3 = vadd.f32 %v5086_v6, %v4991_v38 }
 0x113   : > { %906 = vst [vmem:[#allocation2 + $0xb0] sm:$0xff] %v889_v10 }
 0x114   : > { %907 = vst [vmem:[#allocation2 + $0xb8] sm:$0xff] %v890_v11  ;;  %v792_v63 = vpop.f32.mrf.mxu2  ;;  %v1107_v1 = vmax.f32 %v1020_v3, 0.0 }
 0x115   : > { %v811_v19 = vpop.f32.mrf.mxu3  ;;  %v793_v25 = vadd.f32 %v792_v63, %v5032_v14  ;;  %v842_v27 = vpop.f32.mrf.mxu1 }
 0x116   : > { %v812_v57 = vadd.f32 %v811_v19, %v5032_v14 }
 0x117   : > { %v876_v30 = vmax.f32 %v793_v25, 0.0  ;;  %v1114_v25 = vmax.f32 %v1022_v15, 0.0 }
 0x118   : > { %v877_v32 = vmax.f32 %v812_v57, 0.0  ;;  %3939 = vmatmul.msk.bf16.vlgmr.msra.gmra.mxu1 %vm435_vm2, %v4864_v26 }
 0x119   : > { %v893_v33 = vpack.c.bf16 %v876_v30, %v875_v29  ;;  %3941 = vmatmul.msk.bf16.vlgmr.msra.gmra.mxu2 %vm435_vm2, %v4736_v35  ;;  %v1025_v29 = vadd.f32 %v5130_v58, %v5014_v60 }
 0x11a   : > { %v894_v34 = vpack.c.bf16 %v878_v24, %v877_v32  ;;  %3943 = vmatmul.msk.bf16.vlgmr.msra.gmra.mxu3 %vm435_vm2, %v4736_v35 }
 0x11b   : > { %910 = vst [vmem:[#allocation2 + $0xcc] sm:$0xff] %v893_v33 }
 0x11c   : > { %911 = vst [vmem:[#allocation2 + $0xd4] sm:$0xff] %v894_v34  ;;  %v981_v5 = vpop.f32.mrf.mxu2 }
 0x11d   : > { %v1000_v0 = vpop.f32.mrf.mxu3  ;;  %v982_v36 = vadd.f32 %v981_v5, %v4991_v38  ;;  %v844_v40 = vpop.f32.mrf.mxu1 }
 0x11e   : > { %v1001_v39 = vadd.f32 %v1000_v0, %v4991_v38 }
 0x11f   : > { %v1105_v26 = vmax.f32 %v982_v36, 0.0 }
 0x120   : > { %v1106_v22 = vmax.f32 %v1001_v39, 0.0 }
 0x122   : > { %v1133_v41 = vpack.c.bf16 %v1106_v22, %v1105_v26  ;;  %v4097_v26 = vld [vmem:[#allocation2 + $0xac] sm:$0xf]  ;;  %v4612_v22 = vld [vmem:[#allocation2 + $0xc4] sm:$0xf0] }
 0x124   : > { %1150 = vst [vmem:[#allocation2 + $0xe0] sm:$0xff] %v1133_v41  ;;  %v983_v43 = vpop.f32.mrf.mxu2  ;;  %v1121_v41 = vmax.f32 %v1025_v29, 0.0 }
 0x125   : > { %v1002_v44 = vpop.f32.mrf.mxu3  ;;  %v984_v46 = vadd.f32 %v983_v43, %v5004_v51  ;;  %v847_v28 = vpop.f32.mrf.mxu1 }
 0x126   : > { %v1003_v42 = vadd.f32 %v1002_v44, %v5004_v51 }
 0x127   : > { %v1112_v48 = vmax.f32 %v984_v46, 0.0 }
 0x128   : > { %v1113_v49 = vmax.f32 %v1003_v42, 0.0  ;;  %3940 = vmatmul.msk.bf16.gmra.mxu1 %vm435_vm2, %v5237_v50  ;;  %v4098_v42 = vor.u32 %v4612_v22, %v4097_v26  ;;  %v4594_v26 = vld [vmem:[%s5661_s3 + $0xa8] sm:$0xff]  ;;  %v4585_v22 = vld [vmem:[%s5661_s3] sm:$0xff] }
 0x129   : > { %3942 = vmatmul.msk.bf16.gmra.mxu2 %vm435_vm2, %v5237_v50  ;;  %3989 = vmatmul.msk.bf16.vlgmr.msra.gmra.mxu0 %vm1718_vm3, %v4585_v22 }
 0x12a   : > { %v1137_v52 = vpack.c.bf16 %v1113_v49, %v1112_v48  ;;  %3944 = vmatmul.msk.bf16.gmra.mxu3 %vm435_vm2, %v5237_v50  ;;  %v4093_v48 = vld [vmem:[#allocation2 + $0x74] sm:$0xf]  ;;  %v4611_v49 = vld [vmem:[#allocation2 + $0x8c] sm:$0xf0] }
 0x12b   : > { %v4005_v32 = vld [vmem:[#allocation2 + $0xe0] sm:$0xf] }
 0x12c   : > { %1154 = vst [vmem:[#allocation2 + $0xfc] sm:$0xff] %v1137_v52  ;;  %v986_v54 = vpop.f32.mrf.mxu2 }
 0x12d   : > { %v1005_v45 = vpop.f32.mrf.mxu3  ;;  %v987_v55 = vadd.f32 %v986_v54, %v5014_v60  ;;  %v849_v56 = vpop.f32.mrf.mxu1  ;;  %v1027_v54 = vadd.f32 %v5144_v21, %v5032_v14 }
 0x12e   : > { %v1006_v59 = vadd.f32 %v1005_v45, %v5014_v60 }
 0x12f   : > { %v1119_v61 = vmax.f32 %v987_v55, 0.0 }
 0x130   : > { %v1120_v62 = vmax.f32 %v1006_v59, 0.0  ;;  %v4094_v59 = vor.u32 %v4611_v49, %v4093_v48 }
 0x132   : > { %v1141_v47 = vpack.c.bf16 %v1120_v62, %v1119_v61 }
 0x133   : > { %v4595_v33 = vld [vmem:[#allocation2 + $0xf8] sm:$0xf0] }
 0x134   : > { %1158 = vst [vmem:[#allocation2 + $0x118] sm:$0xff] %v1141_v47  ;;  %v988_v4 = vpop.f32.mrf.mxu2  ;;  %v4006_v40 = vor.u32 %v4595_v33, %v4005_v32 }
 0x135   : > { %v1007_v7 = vpop.f32.mrf.mxu3  ;;  %v989_v23 = vadd.f32 %v988_v4, %v5032_v14  ;;  %v1038_v37 = vpop.f32.mrf.mxu1  ;;  %v1128_v4 = vmax.f32 %v1027_v54, 0.0 }
 0x136   : > { %v1008_v8 = vadd.f32 %v1007_v7, %v5032_v14  ;;  %v1039_v9 = vadd.f32 %v1038_v37, %v4991_v38 }
 0x137   : > { %v1126_v10 = vmax.f32 %v989_v23, 0.0  ;;  %v1291_v23 = vpop.f32.mrf.mxu0 }
 0x138   : > { %v1127_v11 = vmax.f32 %v1008_v8, 0.0  ;;  %v1108_v12 = vmax.f32 %v1039_v9, 0.0  ;;  %3947 = vmatmul.msk.bf16.vlgmr.msrb.gmra.mxu1 %vm435_vm2, %v4736_v35  ;;  %v4593_v9 = vld [vmem:[%s5661_s3 + $0xa0] sm:$0xff] }
 0x139   : > { %3949 = vmatmul.msk.bf16.vlgmr.msrb.gmra.mxu2 %vm435_vm2, %v4736_v35 }
 0x13a   : > { %v1145_v13 = vpack.c.bf16 %v1127_v11, %v1126_v10  ;;  %v1134_v6 = vpack.c.bf16 %v1108_v12, %v1107_v1  ;;  %v4185_v10 = vld [vmem:[#allocation2 + $0x40] sm:$0xf]  ;;  %v4628_v11 = vld [vmem:[#allocation2 + $0x58] sm:$0xf0] }
 0x13b   : > { %v4009_v27 = vld [vmem:[#allocation2 + $0x118] sm:$0xf]  ;;  %v4119_v22 = vld [vmem:[#allocation2 + $0x11c] sm:$0xf] }
 0x13c   : > { %1162 = vst [vmem:[#allocation2 + $0x134] sm:$0xff] %v1145_v13  ;;  %v1057_v16 = vpop.f32.mrf.mxu2 }
 0x13d   : > { %1151 = vst [vmem:[#allocation2 + $0xe8] sm:$0xff] %v1134_v6  ;;  %v1076_v53 = vpop.f32.mrf.mxu3  ;;  %v1058_v17 = vadd.f32 %v1057_v16, %v4991_v38  ;;  %v1040_v63 = vpop.f32.mrf.mxu1 }
 0x13e   : > { %v1077_v18 = vadd.f32 %v1076_v53, %v4991_v38  ;;  %v1041_v19 = vadd.f32 %v1040_v63, %v5004_v51  ;;  %v4186_v53 = vor.u32 %v4628_v11, %v4185_v10  ;;  %v1292_v63 = vadd.f32 %v1291_v23, %v4991_v38  ;;  %v4609_v10 = vld [vmem:[%s5661_s3 + $0x60] sm:$0xff] }
 0x13f   : > { %v1109_v20 = vmax.f32 %v1058_v17, 0.0  ;;  %v4181_v17 = vld [vmem:[#allocation2 + $0x8] sm:$0xf] }
 0x140   : > { %v1110_v24 = vmax.f32 %v1077_v18, 0.0  ;;  %v1115_v57 = vmax.f32 %v1041_v19, 0.0  ;;  %v4627_v18 = vld [vmem:[#allocation2 + $0x20] sm:$0xf0] }
 0x142   : > { %v1135_v2 = vpack.c.bf16 %v1110_v24, %v1109_v20  ;;  %v1138_v31 = vpack.c.bf16 %v1115_v57, %v1114_v25  ;;  %v1293_v20 = vpop.f32.mrf.mxu0  ;;  %v4182_v25 = vor.u32 %v4627_v18, %v4181_v17 }
 0x143   : > { %v4596_v30 = vld [vmem:[#allocation2 + $0x130] sm:$0xf0] }
 0x144   : > { %1152 = vst [vmem:[#allocation2 + $0xf0] sm:$0xff] %v1135_v2  ;;  %v4010_v34 = vor.u32 %v4596_v30, %v4009_v27  ;;  %v1059_v35 = vpop.f32.mrf.mxu2  ;;  %v1361_v2 = vmax.f32 %v1292_v63, 0.0 }
 0x145   : > { %1155 = vst [vmem:[#allocation2 + $0x104] sm:$0xff] %v1138_v31  ;;  %v1078_v5 = vpop.f32.mrf.mxu3  ;;  %v1060_v0 = vadd.f32 %v1059_v35, %v5004_v51  ;;  %v1043_v39 = vpop.f32.mrf.mxu1  ;;  %v1294_v35 = vadd.f32 %v1293_v20, %v5004_v51 }
 0x146   : > { %v1079_v36 = vadd.f32 %v1078_v5, %v5004_v51  ;;  %1837 = vmatpush.bf16.msra.mxu1 %v4010_v34  ;;  %v1044_v58 = vadd.f32 %v1043_v39, %v5014_v60 }
 0x147   : > { %v1116_v43 = vmax.f32 %v1060_v0, 0.0 }
 0x148   : > { %v1117_v44 = vmax.f32 %v1079_v36, 0.0  ;;  %v1122_v46 = vmax.f32 %v1044_v58, 0.0  ;;  %3948 = vmatmul.msk.bf16.gmra.mxu1 %vm435_vm2, %v5237_v50 }
 0x149   : > { %3950 = vmatmul.msk.bf16.gmra.mxu2 %vm435_vm2, %v5237_v50 }
 0x14a   : > { %v1139_v28 = vpack.c.bf16 %v1117_v44, %v1116_v43  ;;  %1838 = vmatpush.bf16.msra.mxu1 %v4006_v40  ;;  %v1142_v52 = vpack.c.bf16 %v1122_v46, %v1121_v41  ;;  %v1368_v41 = vmax.f32 %v1294_v35, 0.0  ;;  %v1296_v46 = vpop.f32.mrf.mxu0 }
 0x14b   : > { %v1297_v49 = vadd.f32 %v1296_v46, %v5014_v60 }
 0x14c   : > { %1156 = vst [vmem:[#allocation2 + $0x10c] sm:$0xff] %v1139_v28  ;;  %v1062_v45 = vpop.f32.mrf.mxu2 }
 0x14d   : > { %1159 = vst [vmem:[#allocation2 + $0x120] sm:$0xff] %v1142_v52  ;;  %v1081_v55 = vpop.f32.mrf.mxu3  ;;  %v1063_v56 = vadd.f32 %v1062_v45, %v5014_v60  ;;  %v1045_v62 = vpop.f32.mrf.mxu1 }
 0x14e   : > { %2087 = vmatpush.bf16.msrb.mxu1 %v4098_v42  ;;  %v1082_v61 = vadd.f32 %v1081_v55, %v5014_v60  ;;  %v1046_v50 = vadd.f32 %v1045_v62, %v5032_v14 }
 0x14f   : > { %v1123_v47 = vmax.f32 %v1063_v56, 0.0  ;;  %v1375_v56 = vmax.f32 %v1297_v49, 0.0 }
 0x150   : > { %v1124_v3 = vmax.f32 %v1082_v61, 0.0  ;;  %v1129_v7 = vmax.f32 %v1046_v50, 0.0 }
 0x152   : > { %2088 = vmatpush.bf16.msrb.mxu1 %v4094_v59  ;;  %v1143_v8 = vpack.c.bf16 %v1124_v3, %v1123_v47  ;;  %v1146_v37 = vpack.c.bf16 %v1129_v7, %v1128_v4  ;;  %v1298_v7 = vpop.f32.mrf.mxu0 }
 0x153   : > { %v1299_v23 = vadd.f32 %v1298_v7, %v5032_v14  ;;  %v4590_v7 = vld [vmem:[%s5661_s3 + $0x58] sm:$0xff] }
 0x154   : > { %1160 = vst [vmem:[#allocation2 + $0x128] sm:$0xff] %v1143_v8  ;;  %v1064_v21 = vpop.f32.mrf.mxu2 }
 0x155   : > { %1163 = vst [vmem:[#allocation2 + $0x13c] sm:$0xff] %v1146_v37  ;;  %v1083_v1 = vpop.f32.mrf.mxu3  ;;  %v1065_v12 = vadd.f32 %v1064_v21, %v5032_v14  ;;  %v1234_v6 = vpop.f32.mrf.mxu1  ;;  %v1382_v11 = vmax.f32 %v1299_v23, 0.0  ;;  %v4631_v23 = vld [vmem:[#allocation2 + $0x90] sm:$0xf0] }
 0x156   : > { %v1084_v13 = vadd.f32 %v1083_v1, %v5032_v14  ;;  %v1235_v24 = vadd.f32 %v1234_v6, %v4991_v38 }
 0x157   : > { %v1130_v15 = vmax.f32 %v1065_v12, 0.0 }
 0x158   : > { %v1131_v16 = vmax.f32 %v1084_v13, 0.0  ;;  %4011 = vmatmul.msk.bf16.vlgmr.msra.gmra.mxu1 %vm1718_vm3, %v4593_v9  ;;  %v1358_v32 = vmax.f32 %v1235_v24, 0.0 }
 0x159   : > { %2337 = vmatpush.bf16.msra.mxu1 %v4186_v53 }
 0x15a   : > { %v1147_v19 = vpack.c.bf16 %v1131_v16, %v1130_v15  ;;  %v4586_v15 = vld [vmem:[%s5661_s3 + $0x8] sm:$0xff] }
 0x15b   : > { %3990 = vmatmul.msk.bf16.gmra.mxu0 %vm1718_vm3, %v4586_v15 }
 0x15c   : > { %1164 = vst [vmem:[#allocation2 + $0x144] sm:$0xff] %v1147_v19  ;;  %v1253_v57 = vpop.f32.mrf.mxu2 }
 0x15d   : > { %v1272_v27 = vpop.f32.mrf.mxu3  ;;  %v1254_v29 = vadd.f32 %v1253_v57, %v4991_v38  ;;  %2338 = vmatpush.bf16.msra.mxu1 %v4182_v25  ;;  %v1236_v30 = vpop.f32.mrf.mxu1 }
 0x15e   : > { %v1273_v31 = vadd.f32 %v1272_v27, %v4991_v38  ;;  %v1237_v36 = vadd.f32 %v1236_v30, %v5004_v51  ;;  %v4589_v27 = vld [vmem:[%s5661_s3 + $0x50] sm:$0xff] }
 0x15f   : > { %v1359_v33 = vmax.f32 %v1254_v29, 0.0  ;;  %3971 = vmatmul.msk.bf16.vlgmr.msrb.gmra.mxu3 %vm1718_vm3, %v4589_v27 }
 0x160   : > { %v1360_v34 = vmax.f32 %v1273_v31, 0.0  ;;  %v1365_v42 = vmax.f32 %v1237_v36, 0.0 }
 0x161   : > { %v1386_v5 = vpack.c.bf16 %v1359_v33, %v1358_v32  ;;  %v1487_v33 = vpop.f32.mrf.mxu0 }
 0x162   : > { %v1387_v0 = vpack.c.bf16 %v1361_v2, %v1360_v34 }
 0x163   : > { %1403 = vst [vmem:[#allocation2 + $0x150] sm:$0xff] %v1386_v5 }
 0x164   : > { %1404 = vst [vmem:[#allocation2 + $0x158] sm:$0xff] %v1387_v0  ;;  %v1255_v39 = vpop.f32.mrf.mxu2 }
 0x165   : > { %v1274_v40 = vpop.f32.mrf.mxu3  ;;  %v1256_v58 = vadd.f32 %v1255_v39, %v5004_v51  ;;  %v1239_v44 = vpop.f32.mrf.mxu1  ;;  %v4610_v39 = vld [vmem:[%s5661_s3 + $0x68] sm:$0xff] }
 0x166   : > { %v1275_v43 = vadd.f32 %v1274_v40, %v5004_v51  ;;  %v1240_v45 = vadd.f32 %v1239_v44, %v5014_v60 }
 0x167   : > { %v1366_v28 = vmax.f32 %v1256_v58, 0.0  ;;  %v4605_v58 = vld [vmem:[%s5661_s3 + $0x10] sm:$0xff] }
 0x168   : > { %v1367_v48 = vmax.f32 %v1275_v43, 0.0  ;;  %4012 = vmatmul.msk.bf16.gmra.mxu1 %vm1718_vm3, %v4594_v26  ;;  %v1372_v47 = vmax.f32 %v1240_v45, 0.0  ;;  %v4632_v45 = vld [vmem:[#allocation2 + $0xc8] sm:$0xf0] }
 0x169   : > { %v1390_v52 = vpack.c.bf16 %v1366_v28, %v1365_v42 }
 0x16a   : > { %v1391_v54 = vpack.c.bf16 %v1368_v41, %v1367_v48  ;;  %v4616_v41 = vld [vmem:[#allocation2 + $0x134] sm:$0xf0]  ;;  %v4027_v43 = vld [vmem:[#allocation2 + $0x150] sm:$0xf] }
 0x16b   : > { %1407 = vst [vmem:[#allocation2 + $0x16c] sm:$0xff] %v1390_v52  ;;  %4077 = vmatmul.msk.bf16.vlgmr.msrb.gmra.mxu0 %vm1718_vm3, %v4605_v58  ;;  %v4120_v28 = vor.u32 %v4616_v41, %v4119_v22  ;;  %v4597_v48 = vld [vmem:[%s5661_s3 + $0xf0] sm:$0xff]  ;;  %v4115_v52 = vld [vmem:[#allocation2 + $0xe4] sm:$0xf] }
 0x16c   : > { %1408 = vst [vmem:[#allocation2 + $0x174] sm:$0xff] %v1391_v54  ;;  %v1258_v55 = vpop.f32.mrf.mxu2  ;;  %v4615_v54 = vld [vmem:[#allocation2 + $0xfc] sm:$0xf0] }
 0x16d   : > { %v1277_v59 = vpop.f32.mrf.mxu3  ;;  %v1259_v61 = vadd.f32 %v1258_v55, %v5014_v60  ;;  %v1241_v50 = vpop.f32.mrf.mxu1 }
 0x16e   : > { %v1278_v62 = vadd.f32 %v1277_v59, %v5014_v60  ;;  %v1242_v21 = vadd.f32 %v1241_v50, %v5032_v14  ;;  %v1489_v50 = vpop.f32.mrf.mxu0 }
 0x16f   : > { %v1373_v3 = vmax.f32 %v1259_v61, 0.0  ;;  %v4116_v61 = vor.u32 %v4615_v54, %v4115_v52  ;;  %3972 = vmatmul.msk.bf16.gmra.mxu3 %vm1718_vm3, %v4590_v7  ;;  %v4295_v52 = vld [vmem:[#allocation2 + $0x44] sm:$0xf]  ;;  %v4291_v7 = vld [vmem:[#allocation2 + $0xc] sm:$0xf] }
 0x170   : > { %v1374_v4 = vmax.f32 %v1278_v62, 0.0  ;;  %v1379_v16 = vmax.f32 %v1242_v21, 0.0  ;;  %v4207_v62 = vld [vmem:[#allocation2 + $0xb0] sm:$0xf]  ;;  %v4203_v21 = vld [vmem:[#allocation2 + $0x78] sm:$0xf] }
 0x171   : > { %v1394_v8 = vpack.c.bf16 %v1373_v3, %v1372_v47 }
 0x172   : > { %v1395_v37 = vpack.c.bf16 %v1375_v56, %v1374_v4  ;;  %v4599_v36 = vld [vmem:[#allocation2 + $0x168] sm:$0xf0]  ;;  %v4208_v4 = vor.u32 %v4632_v45, %v4207_v62 }
 0x173   : > { %1411 = vst [vmem:[#allocation2 + $0x188] sm:$0xff] %v1394_v8  ;;  %v4028_v42 = vor.u32 %v4599_v36, %v4027_v43  ;;  %v4626_v43 = vld [vmem:[%s5661_s3 + $0x28] sm:$0xff] }
 0x174   : > { %1412 = vst [vmem:[#allocation2 + $0x190] sm:$0xff] %v1395_v37  ;;  %v1260_v1 = vpop.f32.mrf.mxu2 }
 0x175   : > { %v1279_v9 = vpop.f32.mrf.mxu3  ;;  %v1261_v12 = vadd.f32 %v1260_v1, %v5032_v14  ;;  %v1310_v6 = vpop.f32.mrf.mxu1 }
 0x176   : > { %v1280_v13 = vadd.f32 %v1279_v9, %v5032_v14  ;;  %v1311_v19 = vadd.f32 %v1310_v6, %v4991_v38  ;;  %v4204_v9 = vor.u32 %v4631_v23, %v4203_v21  ;;  %v4625_v6 = vld [vmem:[%s5661_s3 + $0x20] sm:$0xff]  ;;  %v4647_v23 = vld [vmem:[#allocation2 + $0x24] sm:$0xf0] }
 0x177   : > { %v1380_v53 = vmax.f32 %v1261_v12, 0.0 }
 0x178   : > { %v1381_v17 = vmax.f32 %v1280_v13, 0.0  ;;  %4099 = vmatmul.msk.bf16.vlgmr.msrb.gmra.mxu1 %vm1718_vm3, %v4609_v10  ;;  %v1362_v2 = vmax.f32 %v1311_v19, 0.0 }
 0x179   : > { %v1398_v18 = vpack.c.bf16 %v1380_v53, %v1379_v16  ;;  %v4606_v53 = vld [vmem:[%s5661_s3 + $0x18] sm:$0xff] }
 0x17a   : > { %v1399_v63 = vpack.c.bf16 %v1382_v11, %v1381_v17  ;;  %v4031_v30 = vld [vmem:[#allocation2 + $0x188] sm:$0xf]  ;;  %v1488_v11 = vadd.f32 %v1487_v33, %v4991_v38 }
 0x17b   : > { %1415 = vst [vmem:[#allocation2 + $0x1a4] sm:$0xff] %v1398_v18  ;;  %v1492_v18 = vpop.f32.mrf.mxu0  ;;  %4078 = vmatmul.msk.bf16.gmra.mxu0 %vm1718_vm3, %v4606_v53 }
 0x17c   : > { %1416 = vst [vmem:[#allocation2 + $0x1ac] sm:$0xff] %v1399_v63  ;;  %v1329_v20 = vpop.f32.mrf.mxu2  ;;  %v1493_v22 = vadd.f32 %v1492_v18, %v5014_v60 }
 0x17d   : > { %v1348_v24 = vpop.f32.mrf.mxu3  ;;  %v1330_v25 = vadd.f32 %v1329_v20, %v4991_v38  ;;  %v1312_v57 = vpop.f32.mrf.mxu1  ;;  %v1611_v20 = vmax.f32 %v1488_v11, 0.0  ;;  %v4292_v11 = vor.u32 %v4647_v23, %v4291_v7  ;;  %v4229_v7 = vld [vmem:[#allocation2 + $0x120] sm:$0xf]  ;;  %v4636_v23 = vld [vmem:[#allocation2 + $0x138] sm:$0xf0] }
 0x17e   : > { %v1313_v34 = vadd.f32 %v1312_v57, %v5004_v51  ;;  %v1625_v54 = vmax.f32 %v1493_v22, 0.0 }
 0x17f   : > { %v1363_v29 = vmax.f32 %v1330_v25, 0.0  ;;  %v4598_v25 = vld [vmem:[%s5661_s3 + $0xf8] sm:$0xff] }
 0x180   : > { %v1369_v44 = vmax.f32 %v1313_v34, 0.0 }
 0x181   : > { %v1388_v31 = vpack.c.bf16 %v1363_v29, %v1362_v2  ;;  %v1490_v2 = vadd.f32 %v1489_v50, %v5004_v51 }
 0x182   : > { %v4600_v32 = vld [vmem:[#allocation2 + $0x1a0] sm:$0xf0] }
 0x183   : > { %1405 = vst [vmem:[#allocation2 + $0x160] sm:$0xff] %v1388_v31  ;;  %v4032_v35 = vor.u32 %v4600_v32, %v4031_v30 }
 0x184   : > { %v1331_v5 = vpop.f32.mrf.mxu2 }
 0x185   : > { %v1350_v0 = vpop.f32.mrf.mxu3  ;;  %v1332_v40 = vadd.f32 %v1331_v5, %v5004_v51  ;;  %1900 = vmatpush.bf16.msra.mxu2 %v4032_v35  ;;  %v1315_v26 = vpop.f32.mrf.mxu1 }
 0x186   : > { %v1316_v55 = vadd.f32 %v1315_v26, %v5014_v60  ;;  %v1618_v0 = vmax.f32 %v1490_v2, 0.0 }
 0x187   : > { %v1370_v46 = vmax.f32 %v1332_v40, 0.0 }
 0x188   : > { %4100 = vmatmul.msk.bf16.gmra.mxu1 %vm1718_vm3, %v4610_v39  ;;  %v1376_v8 = vmax.f32 %v1316_v55, 0.0  ;;  %v1494_v39 = vpop.f32.mrf.mxu0  ;;  %v4613_v55 = vld [vmem:[%s5661_s3 + $0xb0] sm:$0xff] }
 0x189   : > { %v1392_v49 = vpack.c.bf16 %v1370_v46, %v1369_v44  ;;  %1901 = vmatpush.bf16.msra.mxu2 %v4028_v42 }
 0x18b   : > { %1409 = vst [vmem:[#allocation2 + $0x17c] sm:$0xff] %v1392_v49 }
 0x18c   : > { %v1334_v59 = vpop.f32.mrf.mxu2  ;;  %4033 = vmatmul.msk.bf16.vlgmr.msra.gmra.mxu2 %vm1718_vm3, %v4597_v48 }
 0x18d   : > { %2150 = vmatpush.bf16.msrb.mxu2 %v4120_v28  ;;  %v1353_v56 = vpop.f32.mrf.mxu3  ;;  %v1335_v47 = vadd.f32 %v1334_v59, %v5014_v60  ;;  %v1317_v3 = vpop.f32.mrf.mxu1  ;;  %v4648_v59 = vld [vmem:[#allocation2 + $0x5c] sm:$0xf0] }
 0x18e   : > { %v1318_v10 = vadd.f32 %v1317_v3, %v5032_v14  ;;  %v4296_v50 = vor.u32 %v4648_v59, %v4295_v52 }
 0x18f   : > { %v1377_v37 = vmax.f32 %v1335_v47, 0.0  ;;  %v1495_v47 = vadd.f32 %v1494_v39, %v5032_v14 }
 0x190   : > { %v1383_v63 = vmax.f32 %v1318_v10, 0.0  ;;  %v1563_v62 = vpop.f32.mrf.mxu0 }
 0x191   : > { %2151 = vmatpush.bf16.msrb.mxu2 %v4116_v61  ;;  %v1396_v1 = vpack.c.bf16 %v1377_v37, %v1376_v8 }
 0x193   : > { %1413 = vst [vmem:[#allocation2 + $0x198] sm:$0xff] %v1396_v1 }
 0x194   : > { %v1336_v12 = vpop.f32.mrf.mxu2 }
 0x195   : > { %2400 = vmatpush.bf16.msra.mxu2 %v4208_v4  ;;  %v1355_v13 = vpop.f32.mrf.mxu3  ;;  %v1337_v15 = vadd.f32 %v1336_v12, %v5032_v14  ;;  %v1506_v16 = vpop.f32.mrf.mxu1  ;;  %v1632_v12 = vmax.f32 %v1495_v47, 0.0 }
 0x196   : > { %v1507_v17 = vadd.f32 %v1506_v16, %v4991_v38  ;;  %v1564_v16 = vadd.f32 %v1563_v62, %v4991_v38 }
 0x197   : > { %v1384_v19 = vmax.f32 %v1337_v15, 0.0 }
 0x198   : > { %v1612_v24 = vmax.f32 %v1507_v17, 0.0  ;;  %4187 = vmatmul.msk.bf16.vlgmr.msra.gmra.mxu1 %vm1718_vm3, %v4625_v6  ;;  %v1565_v18 = vpop.f32.mrf.mxu0 }
 0x199   : > { %2401 = vmatpush.bf16.msra.mxu2 %v4204_v9  ;;  %v1400_v57 = vpack.c.bf16 %v1384_v19, %v1383_v63 }
 0x19a   : > { %v1639_v27 = vpack.c.bf16 %v1612_v24, %v1611_v20 }
 0x19b   : > { %1417 = vst [vmem:[#allocation2 + $0x1b4] sm:$0xff] %v1400_v57 }
 0x19c   : > { %v1525_v29 = vpop.f32.mrf.mxu2  ;;  %4034 = vmatmul.msk.bf16.gmra.mxu2 %vm1718_vm3, %v4598_v25  ;;  %1656 = vst [vmem:[#allocation2 + $0x1c0] sm:$0xff] %v1639_v27  ;;  %v1615_v27 = vmax.f32 %v1564_v16, 0.0 }
 0x19d   : > { %v1544_v31 = vpop.f32.mrf.mxu3  ;;  %v1526_v30 = vadd.f32 %v1525_v29, %v4991_v38  ;;  %v1508_v33 = vpop.f32.mrf.mxu1  ;;  %v4614_v29 = vld [vmem:[%s5661_s3 + $0xb8] sm:$0xff] }
 0x19e   : > { %v1545_v32 = vadd.f32 %v1544_v31, %v4991_v38  ;;  %v1509_v34 = vadd.f32 %v1508_v33, %v5004_v51 }
 0x19f   : > { %v1613_v35 = vmax.f32 %v1526_v30, 0.0 }
 0x1a0   : > { %v1614_v5 = vmax.f32 %v1545_v32, 0.0  ;;  %v1619_v36 = vmax.f32 %v1509_v34, 0.0 }
 0x1a2   : > { %v1640_v40 = vpack.c.bf16 %v1614_v5, %v1613_v35  ;;  %v1643_v26 = vpack.c.bf16 %v1619_v36, %v1618_v0  ;;  %v1566_v5 = vadd.f32 %v1565_v18, %v5004_v51 }
 0x1a4   : > { %1657 = vst [vmem:[#allocation2 + $0x1c8] sm:$0xff] %v1640_v40  ;;  %v1527_v41 = vpop.f32.mrf.mxu2 }
 0x1a5   : > { %1660 = vst [vmem:[#allocation2 + $0x1dc] sm:$0xff] %v1643_v26  ;;  %v1546_v58 = vpop.f32.mrf.mxu3  ;;  %v1528_v44 = vadd.f32 %v1527_v41, %v5004_v51  ;;  %v1511_v42 = vpop.f32.mrf.mxu1  ;;  %v4620_v41 = vld [vmem:[#allocation2 + $0x1a4] sm:$0xf0] }
 0x1a6   : > { %v1547_v46 = vadd.f32 %v1546_v58, %v5004_v51  ;;  %v1512_v28 = vadd.f32 %v1511_v42, %v5014_v60  ;;  %v4251_v58 = vld [vmem:[#allocation2 + $0x190] sm:$0xf]  ;;  %v4159_v42 = vld [vmem:[#allocation2 + $0x1c4] sm:$0xf] }
 0x1a7   : > { %v1620_v48 = vmax.f32 %v1528_v44, 0.0  ;;  %v1568_v44 = vpop.f32.mrf.mxu0 }
 0x1a8   : > { %v1621_v49 = vmax.f32 %v1547_v46, 0.0  ;;  %v1626_v45 = vmax.f32 %v1512_v28, 0.0  ;;  %4188 = vmatmul.msk.bf16.gmra.mxu1 %vm1718_vm3, %v4626_v43  ;;  %v4640_v43 = vld [vmem:[#allocation2 + $0x1a8] sm:$0xf0]  ;;  %v4049_v46 = vld [vmem:[#allocation2 + $0x1c0] sm:$0xf] }
 0x1a9   : > { %v1622_v28 = vmax.f32 %v1566_v5, 0.0  ;;  %v4252_v59 = vor.u32 %v4640_v43, %v4251_v58  ;;  %v4449_v5 = vld [vmem:[#allocation2 + $0x128] sm:$0xf] }
 0x1aa   : > { %v1644_v56 = vpack.c.bf16 %v1621_v49, %v1620_v48  ;;  %v1647_v61 = vpack.c.bf16 %v1626_v45, %v1625_v54  ;;  %v4141_v54 = vld [vmem:[#allocation2 + $0x18c] sm:$0xf]  ;;  %v4247_v45 = vld [vmem:[#allocation2 + $0x158] sm:$0xf] }
 0x1ac   : > { %1661 = vst [vmem:[#allocation2 + $0x1e4] sm:$0xff] %v1644_v56  ;;  %v1530_v3 = vpop.f32.mrf.mxu2  ;;  %4121 = vmatmul.msk.bf16.vlgmr.msrb.gmra.mxu2 %vm1718_vm3, %v4613_v55  ;;  %v4603_v40 = vld [vmem:[#allocation2 + $0x1d8] sm:$0xf0]  ;;  %v4623_v26 = vld [vmem:[#allocation2 + $0x1dc] sm:$0xf0]  ;;  %v4142_v55 = vor.u32 %v4620_v41, %v4141_v54  ;;  %v4602_v54 = vld [vmem:[%s5661_s3 + $0x148] sm:$0xff] }
 0x1ad   : > { %1664 = vst [vmem:[#allocation2 + $0x1f8] sm:$0xff] %v1647_v61  ;;  %v1549_v4 = vpop.f32.mrf.mxu3  ;;  %v1531_v8 = vadd.f32 %v1530_v3, %v5014_v60  ;;  %2650 = vmatpush.bf16.msrb.mxu2 %v4296_v50  ;;  %v1513_v21 = vpop.f32.mrf.mxu1  ;;  %v4050_v49 = vor.u32 %v4603_v40, %v4049_v46  ;;  %v4160_v52 = vor.u32 %v4623_v26, %v4159_v42  ;;  %v4619_v56 = vld [vmem:[#allocation2 + $0x16c] sm:$0xf0]  ;;  %v4639_v61 = vld [vmem:[#allocation2 + $0x170] sm:$0xf0] }
 0x1ae   : > { %v1550_v37 = vadd.f32 %v1549_v4, %v5014_v60  ;;  %v1514_v1 = vadd.f32 %v1513_v21, %v5032_v14  ;;  %v4621_v3 = vld [vmem:[%s5661_s3 + $0x150] sm:$0xff]  ;;  %v4379_v46 = vld [vmem:[#allocation2 + $0x1cc] sm:$0xf] }
 0x1af   : > { %v1627_v9 = vmax.f32 %v1531_v8, 0.0  ;;  %v4656_v8 = vld [vmem:[#allocation2 + $0x13c] sm:$0xf0] }
 0x1b0   : > { %v1628_v10 = vmax.f32 %v1550_v37, 0.0  ;;  %v1633_v13 = vmax.f32 %v1514_v1, 0.0  ;;  %v1569_v37 = vadd.f32 %v1568_v44, %v5014_v60  ;;  %v4137_v1 = vld [vmem:[#allocation2 + $0x154] sm:$0xf] }
 0x1b1   : > { %2651 = vmatpush.bf16.msrb.mxu2 %v4292_v11  ;;  %v4138_v11 = vor.u32 %v4619_v56, %v4137_v1  ;;  %v4617_v56 = vld [vmem:[%s5661_s3 + $0x100] sm:$0xff] }
 0x1b2   : > { %v1648_v6 = vpack.c.bf16 %v1628_v10, %v1627_v9  ;;  %v1651_v15 = vpack.c.bf16 %v1633_v13, %v1632_v12  ;;  %v4248_v12 = vor.u32 %v4639_v61, %v4247_v45  ;;  %v4339_v13 = vld [vmem:[#allocation2 + $0x124] sm:$0xf]  ;;  %v4652_v61 = vld [vmem:[#allocation2 + $0xcc] sm:$0xf0] }
 0x1b3   : > { %v4643_v9 = vld [vmem:[#allocation2 + $0x1e0] sm:$0xf0]  ;;  %v4340_v18 = vor.u32 %v4656_v8, %v4339_v13  ;;  %v4663_v41 = vld [vmem:[#allocation2 + $0x1e4] sm:$0xf0]  ;;  %v4423_v8 = vld [vmem:[#allocation2 + $0x80] sm:$0xf] }
 0x1b4   : > { %1665 = vst [vmem:[#allocation2 + $0x200] sm:$0xff] %v1648_v6  ;;  %v1532_v53 = vpop.f32.mrf.mxu2  ;;  %v4053_v32 = vld [vmem:[#allocation2 + $0x1f8] sm:$0xf]  ;;  %v4163_v33 = vld [vmem:[#allocation2 + $0x1fc] sm:$0xf]  ;;  %v4380_v42 = vor.u32 %v4663_v41, %v4379_v46 }
 0x1b5   : > { %1668 = vst [vmem:[#allocation2 + $0x214] sm:$0xff] %v1651_v15  ;;  %v1551_v17 = vpop.f32.mrf.mxu3  ;;  %v1533_v63 = vadd.f32 %v1532_v53, %v5032_v14  ;;  %v1582_v20 = vpop.f32.mrf.mxu1  ;;  %v4361_v6 = vld [vmem:[#allocation2 + $0x194] sm:$0xf]  ;;  %v4660_v15 = vld [vmem:[#allocation2 + $0x1ac] sm:$0xf0]  ;;  %v4230_v53 = vor.u32 %v4636_v23, %v4229_v7 }
 0x1b6   : > { %v1552_v19 = vadd.f32 %v1551_v17, %v5032_v14  ;;  %v1583_v24 = vadd.f32 %v1582_v20, %v4991_v38  ;;  %v4269_v17 = vld [vmem:[#allocation2 + $0x1c8] sm:$0xf]  ;;  %v4651_v23 = vld [vmem:[#allocation2 + $0x94] sm:$0xf0] }
 0x1b7   : > { %v1634_v25 = vmax.f32 %v1533_v63, 0.0  ;;  %v4270_v63 = vor.u32 %v4643_v9, %v4269_v17  ;;  %v4655_v20 = vld [vmem:[#allocation2 + $0x104] sm:$0xf0]  ;;  %v4645_v9 = vld [vmem:[%s5661_s3 + $0x30] sm:$0xff]  ;;  %v4638_v17 = vld [vmem:[%s5661_s3 + $0x118] sm:$0xff] }
 0x1b8   : > { %v1635_v57 = vmax.f32 %v1552_v19, 0.0  ;;  %v1616_v2 = vmax.f32 %v1583_v24, 0.0  ;;  %v4635_v19 = vld [vmem:[#allocation2 + $0x100] sm:$0xf0]  ;;  %v1629_v24 = vmax.f32 %v1569_v37, 0.0 }
 0x1b9   : > { %v4671_v37 = vld [vmem:[#allocation2 + $0x98] sm:$0xf0] }
 0x1ba   : > { %v1652_v31 = vpack.c.bf16 %v1635_v57, %v1634_v25  ;;  %v1641_v30 = vpack.c.bf16 %v1616_v2, %v1615_v27  ;;  %v4362_v57 = vor.u32 %v4660_v15, %v4361_v6  ;;  %v4629_v27 = vld [vmem:[%s5661_s3 + $0x70] sm:$0xff]  ;;  %v1570_v2 = vpop.f32.mrf.mxu0  ;;  %v4679_v6 = vld [vmem:[#allocation2 + $0x178] sm:$0xf0]  ;;  %v4467_v15 = vld [vmem:[#allocation2 + $0x160] sm:$0xf] }
 0x1bb   : > { %v4273_v50 = vld [vmem:[#allocation2 + $0x200] sm:$0xf]  ;;  %v1571_v40 = vadd.f32 %v1570_v2, %v5032_v14 }
 0x1bc   : > { %1669 = vst [vmem:[#allocation2 + $0x21c] sm:$0xff] %v1652_v31  ;;  %v4604_v34 = vld [vmem:[#allocation2 + $0x210] sm:$0xf0]  ;;  %v4624_v35 = vld [vmem:[#allocation2 + $0x214] sm:$0xf0]  ;;  %v1601_v0 = vpop.f32.mrf.mxu2  ;;  %4122 = vmatmul.msk.bf16.gmra.mxu2 %vm1718_vm3, %v4614_v29 }
 0x1bd   : > { %1658 = vst [vmem:[#allocation2 + $0x1d0] sm:$0xff] %v1641_v30  ;;  %v4054_v38 = vor.u32 %v4604_v34, %v4053_v32  ;;  %v4164_v36 = vor.u32 %v4624_v35, %v4163_v33  ;;  %v1584_v39 = vpop.f32.mrf.mxu1  ;;  %v4225_v29 = vld [vmem:[#allocation2 + $0xe8] sm:$0xf]  ;;  %v4357_v31 = vld [vmem:[#allocation2 + $0x15c] sm:$0xf] }
 0x1be   : > { %v1585_v22 = vadd.f32 %v1584_v39, %v5004_v51  ;;  %v4601_v51 = vld [vmem:[%s5661_s3 + $0x140] sm:$0xff]  ;;  %v4659_v30 = vld [vmem:[#allocation2 + $0x174] sm:$0xf0]  ;;  %v4226_v34 = vor.u32 %v4635_v19, %v4225_v29  ;;  %v4335_v35 = vld [vmem:[#allocation2 + $0xec] sm:$0xf] }
 0x1bf   : > { %1963 = vmatpush.bf16.msra.mxu3 %v4054_v38  ;;  %2276 = vmatpush.bf16.msra.mxu0 %v4164_v36  ;;  %v4383_v33 = vld [vmem:[#allocation2 + $0x204] sm:$0xf]  ;;  %v4336_v38 = vor.u32 %v4655_v20, %v4335_v35  ;;  %v4667_v29 = vld [vmem:[#allocation2 + $0x28] sm:$0xf0] }
 0x1c0   : > { %v1623_v48 = vmax.f32 %v1585_v22, 0.0  ;;  %v4641_v36 = vld [vmem:[%s5661_s3 + $0x160] sm:$0xff]  ;;  %v4358_v22 = vor.u32 %v4659_v30, %v4357_v31  ;;  %v4401_v30 = vld [vmem:[#allocation2 + $0x10] sm:$0xf] }
 0x1c1   : > { %v4676_v39 = vld [vmem:[#allocation2 + $0x140] sm:$0xf0] }
 0x1c2   : > { %v1645_v62 = vpack.c.bf16 %v1623_v48, %v1622_v28  ;;  %v4450_v44 = vor.u32 %v4676_v39, %v4449_v5  ;;  %v4445_v28 = vld [vmem:[#allocation2 + $0xf0] sm:$0xf]  ;;  %v4675_v48 = vld [vmem:[#allocation2 + $0x108] sm:$0xf0]  ;;  %v1781_v19 = vpop.f32.mrf.mxu0 }
 0x1c3   : > { %1964 = vmatpush.bf16.msra.mxu3 %v4050_v49  ;;  %2277 = vmatpush.bf16.msra.mxu0 %v4160_v52  ;;  %v4644_v47 = vld [vmem:[#allocation2 + $0x218] sm:$0xf0]  ;;  %v1636_v49 = vmax.f32 %v1571_v40, 0.0  ;;  %v4661_v5 = vld [vmem:[%s5661_s3 + $0x170] sm:$0xff] }
 0x1c4   : > { %v4274_v4 = vor.u32 %v4644_v47, %v4273_v50  ;;  %1662 = vst [vmem:[#allocation2 + $0x1ec] sm:$0xff] %v1645_v62  ;;  %v1603_v21 = vpop.f32.mrf.mxu2  ;;  %v4637_v62 = vld [vmem:[%s5661_s3 + $0x110] sm:$0xff]  ;;  %v4427_v50 = vld [vmem:[#allocation2 + $0xb8] sm:$0xf] }
 0x1c5   : > { %v1587_v10 = vpop.f32.mrf.mxu1  ;;  %v4672_v47 = vld [vmem:[#allocation2 + $0xd0] sm:$0xf0]  ;;  %v4313_v21 = vld [vmem:[#allocation2 + $0x7c] sm:$0xf] }
 0x1c6   : > { %2589 = vmatpush.bf16.msrb.mxu1 %v4274_v4  ;;  %4055 = vmatmul.msk.bf16.vlgmr.msra.gmra.mxu3 %vm1718_vm3, %v4601_v51  ;;  %v1588_v16 = vadd.f32 %v1587_v10, %v5014_v60  ;;  %v4664_v60 = vld [vmem:[#allocation2 + $0x21c] sm:$0xf0]  ;;  %v4630_v51 = vld [vmem:[%s5661_s3 + $0x78] sm:$0xff]  ;;  %v4428_v7 = vor.u32 %v4672_v47, %v4427_v50  ;;  %v4314_v1 = vor.u32 %v4651_v23, %v4313_v21  ;;  %v4680_v10 = vld [vmem:[#allocation2 + $0x1b0] sm:$0xf0] }
 0x1c7   : > { %2213 = vmatpush.bf16.msrb.mxu3 %v4142_v55  ;;  %2526 = vmatpush.bf16.msrb.mxu0 %v4252_v59  ;;  %v4384_v0 = vor.u32 %v4664_v60, %v4383_v33  ;;  %v4446_v55 = vor.u32 %v4675_v48, %v4445_v28  ;;  %v4662_v48 = vld [vmem:[%s5661_s3 + $0x178] sm:$0xff]  ;;  %v4669_v21 = vld [vmem:[%s5661_s3 + $0x90] sm:$0xff] }
 0x1c8   : > { %4165 = vmatmul.msk.bf16.vlgmr.msra.gmra.mxu0 %vm1718_vm3, %v4621_v3  ;;  %v1630_v25 = vmax.f32 %v1588_v16, 0.0  ;;  %v4317_v3 = vld [vmem:[#allocation2 + $0xb4] sm:$0xf]  ;;  %v4468_v16 = vor.u32 %v4679_v6, %v4467_v15  ;;  %v4674_v15 = vld [vmem:[%s5661_s3 + $0xe8] sm:$0xff] }
 0x1c9   : > { %v4318_v4 = vor.u32 %v4652_v61, %v4317_v3 }
 0x1ca   : > { %2590 = vmatpush.bf16.msrb.mxu1 %v4270_v63  ;;  %v1649_v32 = vpack.c.bf16 %v1630_v25, %v1629_v24  ;;  %v4646_v63 = vld [vmem:[%s5661_s3 + $0x38] sm:$0xff]  ;;  %v4633_v24 = vld [vmem:[%s5661_s3 + $0xc0] sm:$0xff]  ;;  %v1783_v33 = vpop.f32.mrf.mxu0 }
 0x1cb   : > { %2214 = vmatpush.bf16.msrb.mxu3 %v4138_v11  ;;  %2527 = vmatpush.bf16.msrb.mxu0 %v4248_v12  ;;  %v4424_v11 = vor.u32 %v4671_v37, %v4423_v8  ;;  %v4471_v12 = vld [vmem:[#allocation2 + $0x198] sm:$0xf]  ;;  %v4668_v25 = vld [vmem:[#allocation2 + $0x60] sm:$0xf0]  ;;  %v4683_v3 = vld [vmem:[#allocation2 + $0x1e8] sm:$0xf0] }
 0x1cc   : > { %1666 = vst [vmem:[#allocation2 + $0x208] sm:$0xff] %v1649_v32  ;;  %v1606_v26 = vpop.f32.mrf.mxu2  ;;  %4209 = vmatmul.msk.bf16.vlgmr.msra.gmra.mxu2 %vm1718_vm3, %v4629_v27  ;;  %v4472_v13 = vor.u32 %v4680_v10, %v4471_v12  ;;  %v4405_v27 = vld [vmem:[#allocation2 + $0x48] sm:$0xf]  ;;  %v4402_v32 = vor.u32 %v4667_v29, %v4401_v30  ;;  %v4677_v37 = vld [vmem:[%s5661_s3 + $0x130] sm:$0xff]  ;;  %v4678_v12 = vld [vmem:[%s5661_s3 + $0x138] sm:$0xff] }
 0x1cd   : > { %2902 = vmatpush.bf16.msra.mxu2 %v4384_v0  ;;  %v1589_v58 = vpop.f32.mrf.mxu1  ;;  %4275 = vmatmul.msk.bf16.vlgmr.msrb.gmra.mxu1 %vm1718_vm3, %v4641_v36  ;;  %v4406_v2 = vor.u32 %v4668_v25, %v4405_v27  ;;  %v4653_v0 = vld [vmem:[%s5661_s3 + $0xd0] sm:$0xff]  ;;  %v4634_v26 = vld [vmem:[%s5661_s3 + $0xc8] sm:$0xff] }
 0x1ce   : > { %2839 = vmatpush.bf16.msra.mxu1 %v4362_v57  ;;  %v1590_v43 = vadd.f32 %v1589_v58, %v5032_v14  ;;  %v4622_v14 = vld [vmem:[%s5661_s3 + $0x158] sm:$0xff]  ;;  %v4666_v30 = vld [vmem:[%s5661_s3 + $0x48] sm:$0xff] }
 0x1cf   : > { %2463 = vmatpush.bf16.msra.mxu3 %v4230_v53  ;;  %2776 = vmatpush.bf16.msra.mxu0 %v4340_v18  ;;  %v4618_v53 = vld [vmem:[%s5661_s3 + $0x108] sm:$0xff] }
 0x1d0   : > { %v1637_v52 = vmax.f32 %v1590_v43, 0.0  ;;  %v4642_v18 = vld [vmem:[%s5661_s3 + $0x168] sm:$0xff] }
 0x1d1   : > { %2903 = vmatpush.bf16.msra.mxu2 %v4380_v42 }
 0x1d2   : > { %2840 = vmatpush.bf16.msra.mxu1 %v4358_v22  ;;  %v1653_v45 = vpack.c.bf16 %v1637_v52, %v1636_v49  ;;  %v4654_v49 = vld [vmem:[%s5661_s3 + $0xd8] sm:$0xff]  ;;  %v4658_v52 = vld [vmem:[%s5661_s3 + $0x128] sm:$0xff] }
 0x1d3   : > { %2464 = vmatpush.bf16.msra.mxu3 %v4226_v34  ;;  %2777 = vmatpush.bf16.msra.mxu0 %v4336_v38  ;;  %v4657_v38 = vld [vmem:[%s5661_s3 + $0x120] sm:$0xff] }
 0x1d4   : > { %1670 = vst [vmem:[#allocation2 + $0x224] sm:$0xff] %v1653_v45  ;;  %v1608_v59 = vpop.f32.mrf.mxu2 }
 0x1d5   : > { %v1840_v20 = vpop.f32.mrf.mxu1 }
 0x1d6   : > { %3089 = vmatpush.bf16.msrb.mxu1 %v4450_v44  ;;  %4056 = vmatmul.msk.bf16.gmra.mxu3 %vm1718_vm3, %v4602_v54 }
 0x1d8   : > { %4166 = vmatmul.msk.bf16.gmra.mxu0 %vm1718_vm3, %v4622_v14  ;;  %v1786_v41 = vpop.f32.mrf.mxu0 }
 0x1da   : > { %3090 = vmatpush.bf16.msrb.mxu1 %v4446_v55 }
 0x1dc   : > { %4210 = vmatmul.msk.bf16.gmra.mxu2 %vm1718_vm3, %v4630_v51  ;;  %v4649_v51 = vld [vmem:[%s5661_s3 + $0x80] sm:$0xff] }
 0x1dd   : > { %4276 = vmatmul.msk.bf16.gmra.mxu1 %vm1718_vm3, %v4642_v18  ;;  %v1842_v35 = vpop.f32.mrf.mxu1  ;;  %v1674_v18 = vld [vmem:[%s5662_s4 + $0x10] sm:$0xff] }
 0x1de   : > { %3244 = vperm.xlu2 %4735, %v1674_v18  }
 0x1e0   : > { %v1788_v45 = vpop.f32.mrf.mxu0 }
 0x1e2   : > { %v1734_v57 = vpop.f32.mrf.mxu3 }
 0x1e3   : > { %v1782_v60 = vadd.f32 %v1781_v19, %v1734_v57 }
 0x1e5   : > { %v1850_v31 = vadd.f32 %v1840_v20, %v1782_v60  ;;  %v1845_v44 = vpop.f32.mrf.mxu1 }
 0x1e6   : > { %4143 = vmatmul.msk.bf16.vlgmr.msrb.gmra.mxu3 %vm1718_vm3, %v4617_v56  ;;  %v4684_v56 = vld [vmem:[#allocation2 + $0x220] sm:$0xf0] }
 0x1e7   : > { %2713 = vmatpush.bf16.msrb.mxu3 %v4318_v4  ;;  %v4489_v4 = vld [vmem:[#allocation2 + $0x1d0] sm:$0xf] }
 0x1e8   : > { %4253 = vmatmul.msk.bf16.vlgmr.msrb.gmra.mxu0 %vm1718_vm3, %v4637_v62  ;;  %v4493_v62 = vld [vmem:[#allocation2 + $0x208] sm:$0xf]  ;;  %v4490_v23 = vor.u32 %v4683_v3, %v4489_v4  ;;  %v2027_v10 = vpop.f32.mrf.mxu0 }
 0x1e9   : > { %3026 = vmatpush.bf16.msrb.mxu0 %v4428_v7  ;;  %v4494_v50 = vor.u32 %v4684_v56, %v4493_v62 }
 0x1ea   : > { %v1736_v34 = vpop.f32.mrf.mxu3 }
 0x1eb   : > { %2714 = vmatpush.bf16.msrb.mxu3 %v4314_v1  ;;  %v1784_v40 = vadd.f32 %v1783_v33, %v1736_v34  ;;  %v4673_v1 = vld [vmem:[%s5661_s3 + $0xe0] sm:$0xff] }
 0x1ec   : > { %4297 = vmatmul.msk.bf16.vlgmr.msrb.gmra.mxu2 %vm1718_vm3, %v4645_v9  ;;  %v4650_v9 = vld [vmem:[%s5661_s3 + $0x88] sm:$0xff] }
 0x1ed   : > { %3027 = vmatpush.bf16.msrb.mxu0 %v4424_v11  ;;  %3152 = vmatpush.bf16.msrb.mxu2 %v4472_v13  ;;  %v1851_v43 = vadd.f32 %v1842_v35, %v1784_v40  ;;  %v1847_v61 = vpop.f32.mrf.mxu1  ;;  %v4670_v13 = vld [vmem:[%s5661_s3 + $0x98] sm:$0xff] }
 0x1ee   : > { %4363 = vmatmul.msk.bf16.vlgmr.msra.gmra.mxu1 %vm1718_vm3, %v4657_v38 }
 0x1f1   : > { %3153 = vmatpush.bf16.msrb.mxu2 %v4468_v16  ;;  %v2029_v16 = vpop.f32.mrf.mxu0 }
 0x1f2   : > { %v1739_v22 = vpop.f32.mrf.mxu3 }
 0x1f3   : > { %v1787_v58 = vadd.f32 %v1786_v41, %v1739_v22 }
 0x1f5   : > { %v1852_v46 = vadd.f32 %v1845_v44, %v1787_v58  ;;  %v2090_v11 = vpop.f32.mrf.mxu1 }
 0x1f6   : > { %4144 = vmatmul.msk.bf16.gmra.mxu3 %vm1718_vm3, %v4618_v53  ;;  %v4665_v53 = vld [vmem:[%s5661_s3 + $0x40] sm:$0xff] }
 0x1f8   : > { %4254 = vmatmul.msk.bf16.gmra.mxu0 %vm1718_vm3, %v4638_v17 }
 0x1fa   : > { %v1741_v54 = vpop.f32.mrf.mxu3 }
 0x1fb   : > { %v1789_v59 = vadd.f32 %v1788_v45, %v1741_v54  ;;  %v3294_v45 = vld [vmem:[%s5664_s6 + $0x30] sm:$0xff] }
 0x1fc   : > { %4298 = vmatmul.msk.bf16.gmra.mxu2 %vm1718_vm3, %v4646_v63 }
 0x1fd   : > { %v1853_v47 = vadd.f32 %v1847_v61, %v1789_v59  ;;  %v2092_v17 = vpop.f32.mrf.mxu1 }
 0x1fe   : > { %4364 = vmatmul.msk.bf16.gmra.mxu1 %vm1718_vm3, %v4658_v52 }
 0x205   : > { %v2095_v27 = vpop.f32.mrf.mxu1 }
 0x206   : > { %4231 = vmatmul.msk.bf16.vlgmr.msra.gmra.mxu3 %vm1718_vm3, %v4633_v24  ;;  %v2032_v24 = vpop.f32.mrf.mxu0 }
 0x207   : > { %2963 = vmatpush.bf16.msra.mxu3 %v4406_v2  ;;  %v1675_v2 = vld [vmem:[%s5662_s4 + $0x18] sm:$0xff] }
 0x208   : > { %4341 = vmatmul.msk.bf16.vlgmr.msra.gmra.mxu0 %vm1718_vm3, %v4653_v0  ;;  %3249 = vperm.xlu2 %4735, %v1675_v2   ;;  %v3288_v0 = vld [vmem:[%s5664_s6] sm:$0xff] }
 0x20b   : > { %2964 = vmatpush.bf16.msra.mxu3 %v4402_v32 }
 0x20c   : > { %4385 = vmatmul.msk.bf16.vlgmr.msra.gmra.mxu2 %vm1718_vm3, %v4661_v5 }
 0x20e   : > { %4451 = vmatmul.msk.bf16.vlgmr.msrb.gmra.mxu1 %vm1718_vm3, %v4673_v1  ;;  %v2034_v34 = vpop.f32.mrf.mxu0 }
 0x20f   : > { %v1903_v36 = vpop.f32.mrf.mxu2 }
 0x210   : > { %v1913_v39 = vadd.f32 %v1903_v36, %v1850_v31  ;;  %v2097_v36 = vpop.f32.mrf.mxu1  ;;  %3306 = vperm.xlu2 %4735, %v3288_v0  }
 0x216   : > { %4232 = vmatmul.msk.bf16.gmra.mxu3 %vm1718_vm3, %v4634_v26 }
 0x217   : > { %v1905_v42 = vpop.f32.mrf.mxu2 }
 0x218   : > { %v1914_v28 = vadd.f32 %v1905_v42, %v1851_v43  ;;  %4342 = vmatmul.msk.bf16.gmra.mxu0 %vm1718_vm3, %v4654_v49  ;;  %v3291_v43 = vld [vmem:[%s5664_s6 + $0x18] sm:$0xff]  ;;  %v4681_v42 = vld [vmem:[%s5661_s3 + $0x180] sm:$0xff] }
 0x219   : > { %3321 = vperm.xlu2 %4735, %v3291_v43  }
 0x21c   : > { %4386 = vmatmul.msk.bf16.gmra.mxu2 %vm1718_vm3, %v4662_v48 }
 0x21e   : > { %4452 = vmatmul.msk.bf16.gmra.mxu1 %vm1718_vm3, %v4674_v15 }
 0x21f   : > { %v1908_v55 = vpop.f32.mrf.mxu2 }
 0x220   : > { %v1915_v14 = vadd.f32 %v1908_v55, %v1852_v46 }
 0x221   : > { %3336 = vperm.xlu2 %4735, %v3294_v45  }
 0x226   : > { %4319 = vmatmul.msk.bf16.vlgmr.msrb.gmra.mxu3 %vm1718_vm3, %v4649_v51 }
 0x227   : > { %3215 = vmatpush.bf16.msrb.mxu3 %v4494_v50  ;;  %v1910_v7 = vpop.f32.mrf.mxu2  ;;  %v3297_v50 = vld [vmem:[%s5664_s6 + $0x48] sm:$0xff] }
 0x228   : > { %v1916_v8 = vadd.f32 %v1910_v7, %v1853_v47  ;;  %4429 = vmatmul.msk.bf16.vlgmr.msrb.gmra.mxu0 %vm1718_vm3, %v4669_v21  ;;  %v4682_v7 = vld [vmem:[%s5661_s3 + $0x188] sm:$0xff] }
 0x229   : > { %3351 = vperm.xlu2 %4735, %v3297_v50  }
 0x22b   : > { %3216 = vmatpush.bf16.msrb.mxu3 %v4490_v23 }
 0x22c   : > { %4473 = vmatmul.msk.bf16.vlgmr.msrb.gmra.mxu2 %vm1718_vm3, %v4677_v37 }
 0x22f   : > { %v2153_v6 = vpop.f32.mrf.mxu2 }
 0x236   : > { %4320 = vmatmul.msk.bf16.gmra.mxu3 %vm1718_vm3, %v4650_v9  ;;  %v3300_v9 = vld [vmem:[%s5664_s6 + $0x60] sm:$0xff] }
 0x237   : > { %v2155_v19 = vpop.f32.mrf.mxu2  ;;  %3366 = vperm.xlu2 %4735, %v3300_v9  }
 0x238   : > { %4430 = vmatmul.msk.bf16.gmra.mxu0 %vm1718_vm3, %v4670_v13 }
 0x23c   : > { %4474 = vmatmul.msk.bf16.gmra.mxu2 %vm1718_vm3, %v4678_v12 }
 0x23f   : > { %v2158_v32 = vpop.f32.mrf.mxu2 }
 0x245   : > { %v2279_v41 = vpop.f32.mrf.mxu0 }
 0x246   : > { %4407 = vmatmul.msk.bf16.vlgmr.msra.gmra.mxu3 %vm1718_vm3, %v4665_v53  ;;  %v3303_v53 = vld [vmem:[%s5664_s6 + $0x78] sm:$0xff] }
 0x247   : > { %v2160_v26 = vpop.f32.mrf.mxu2  ;;  %3381 = vperm.xlu2 %4735, %v3303_v53  }
 0x249   : > { %v1966_v63 = vpop.f32.mrf.mxu3 }
 0x24a   : > { %v1976_v20 = vadd.f32 %v1966_v63, %v1913_v39 }
 0x24c   : > { %v2037_v25 = vadd.f32 %v2027_v10, %v1976_v20 }
 0x24e   : > { %v2100_v57 = vadd.f32 %v2090_v11, %v2037_v25 }
 0x24f   : > { %v2403_v52 = vpop.f32.mrf.mxu2 }
 0x250   : > { %v2163_v60 = vadd.f32 %v2153_v6, %v2100_v57 }
 0x251   : > { %v1968_v29 = vpop.f32.mrf.mxu3 }
 0x252   : > { %v1977_v31 = vadd.f32 %v1968_v29, %v1914_v28  ;;  %v2340_v28 = vpop.f32.mrf.mxu1 }
 0x254   : > { %v2038_v33 = vadd.f32 %v2029_v16, %v1977_v31 }
 0x256   : > { %v2101_v35 = vadd.f32 %v2092_v17, %v2038_v33  ;;  %4408 = vmatmul.msk.bf16.gmra.mxu3 %vm1718_vm3, %v4666_v30 }
 0x257   : > { %v2405_v3 = vpop.f32.mrf.mxu2 }
 0x258   : > { %v2164_v5 = vadd.f32 %v2155_v19, %v2101_v35 }
 0x259   : > { %v1971_v38 = vpop.f32.mrf.mxu3 }
 0x25a   : > { %v1978_v39 = vadd.f32 %v1971_v38, %v1915_v14  ;;  %v2281_v14 = vpop.f32.mrf.mxu0  ;;  %v2342_v56 = vpop.f32.mrf.mxu1 }
 0x25c   : > { %v2039_v40 = vadd.f32 %v2032_v24, %v1978_v39 }
 0x25e   : > { %v2102_v22 = vadd.f32 %v2095_v27, %v2039_v40 }
 0x25f   : > { %v2408_v12 = vpop.f32.mrf.mxu2 }
 0x260   : > { %v2165_v58 = vadd.f32 %v2158_v32, %v2102_v22 }
 0x261   : > { %v1973_v44 = vpop.f32.mrf.mxu3 }
 0x262   : > { %v1979_v46 = vadd.f32 %v1973_v44, %v1916_v8  ;;  %v2284_v23 = vpop.f32.mrf.mxu0  ;;  %v2345_v21 = vpop.f32.mrf.mxu1 }
 0x264   : > { %v2040_v48 = vadd.f32 %v2034_v34, %v1979_v46 }
 0x266   : > { %v2103_v49 = vadd.f32 %v2097_v36, %v2040_v48  ;;  %4495 = vmatmul.msk.bf16.vlgmr.msrb.gmra.mxu3 %vm1718_vm3, %v4681_v42 }
 0x267   : > { %v2410_v20 = vpop.f32.mrf.mxu2 }
 0x268   : > { %v2166_v54 = vadd.f32 %v2160_v26, %v2103_v49 }
 0x269   : > { %v2216_v55 = vpop.f32.mrf.mxu3 }
 0x26a   : > { %v2226_v59 = vadd.f32 %v2216_v55, %v2163_v60  ;;  %v2286_v6 = vpop.f32.mrf.mxu0  ;;  %v2347_v18 = vpop.f32.mrf.mxu1 }
 0x26c   : > { %v2289_v51 = vadd.f32 %v2279_v41, %v2226_v59 }
 0x26e   : > { %v2350_v61 = vadd.f32 %v2340_v28, %v2289_v51 }
 0x26f   : > { %v2653_v29 = vpop.f32.mrf.mxu2 }
 0x270   : > { %v2413_v62 = vadd.f32 %v2403_v52, %v2350_v61 }
 0x271   : > { %v2218_v47 = vpop.f32.mrf.mxu3 }
 0x272   : > { %v2227_v4 = vadd.f32 %v2218_v47, %v2164_v5  ;;  %v2529_v25 = vpop.f32.mrf.mxu0  ;;  %v2592_v2 = vpop.f32.mrf.mxu1 }
 0x274   : > { %v2290_v8 = vadd.f32 %v2281_v14, %v2227_v4 }
 0x276   : > { %v2351_v37 = vadd.f32 %v2342_v56, %v2290_v8  ;;  %4496 = vmatmul.msk.bf16.gmra.mxu3 %vm1718_vm3, %v4682_v7 }
 0x277   : > { %v2655_v34 = vpop.f32.mrf.mxu2 }
 0x278   : > { %v2414_v1 = vadd.f32 %v2405_v3, %v2351_v37 }
 0x279   : > { %v2221_v10 = vpop.f32.mrf.mxu3 }
 0x27a   : > { %v2228_v11 = vadd.f32 %v2221_v10, %v2165_v58  ;;  %v2531_v30 = vpop.f32.mrf.mxu0  ;;  %v2594_v33 = vpop.f32.mrf.mxu1 }
 0x27c   : > { %v2291_v13 = vadd.f32 %v2284_v23, %v2228_v11 }
 0x27e   : > { %v2352_v15 = vadd.f32 %v2345_v21, %v2291_v13 }
 0x27f   : > { %v2658_v40 = vpop.f32.mrf.mxu2 }
 0x280   : > { %v2415_v16 = vadd.f32 %v2408_v12, %v2352_v15 }
 0x281   : > { %v2223_v17 = vpop.f32.mrf.mxu3 }
 0x282   : > { %v2229_v63 = vadd.f32 %v2223_v17, %v2166_v54  ;;  %v2534_v0 = vpop.f32.mrf.mxu0  ;;  %v2597_v38 = vpop.f32.mrf.mxu1 }
 0x284   : > { %v2292_v19 = vadd.f32 %v2286_v6, %v2229_v63 }
 0x286   : > { %v2353_v24 = vadd.f32 %v2347_v18, %v2292_v19 }
 0x287   : > { %v2660_v58 = vpop.f32.mrf.mxu2 }
 0x288   : > { %v2416_v57 = vadd.f32 %v2410_v20, %v2353_v24 }
 0x289   : > { %v2466_v27 = vpop.f32.mrf.mxu3 }
 0x28a   : > { %v2476_v60 = vadd.f32 %v2466_v27, %v2413_v62  ;;  %v2536_v26 = vpop.f32.mrf.mxu0  ;;  %v2599_v22 = vpop.f32.mrf.mxu1 }
 0x28c   : > { %v2539_v14 = vadd.f32 %v2529_v25, %v2476_v60 }
 0x28e   : > { %v2602_v56 = vadd.f32 %v2592_v2, %v2539_v14 }
 0x28f   : > { %v2905_v42 = vpop.f32.mrf.mxu2 }
 0x290   : > { %v2663_v50 = vadd.f32 %v2653_v29, %v2602_v56 }
 0x291   : > { %v2468_v31 = vpop.f32.mrf.mxu3 }
 0x292   : > { %v2477_v32 = vadd.f32 %v2468_v31, %v2414_v1  ;;  %v2779_v43 = vpop.f32.mrf.mxu0  ;;  %v2842_v46 = vpop.f32.mrf.mxu1 }
 0x294   : > { %v2540_v61 = vadd.f32 %v2531_v30, %v2477_v32 }
 0x296   : > { %v2603_v47 = vadd.f32 %v2594_v33, %v2540_v61  ;;  %v3245_v61 = vpop.permute.xlu2 %3244 }
 0x297   : > { %v2907_v52 = vpop.f32.mrf.mxu2 }
 0x298   : > { %v2664_v23 = vadd.f32 %v2655_v34, %v2603_v47 }
 0x299   : > { %v2471_v35 = vpop.f32.mrf.mxu3 }
 0x29a   : > { %v2478_v5 = vadd.f32 %v2471_v35, %v2415_v16  ;;  %v2781_v28 = vpop.f32.mrf.mxu0  ;;  %v2844_v49 = vpop.f32.mrf.mxu1 }
 0x29c   : > { %v2541_v9 = vadd.f32 %v2534_v0, %v2478_v5 }
 0x29e   : > { %v2604_v6 = vadd.f32 %v2597_v38, %v2541_v9 }
 0x29f   : > { %v2910_v51 = vpop.f32.mrf.mxu2 }
 0x2a0   : > { %v2665_v18 = vadd.f32 %v2658_v40, %v2604_v6 }
 0x2a1   : > { %v2473_v36 = vpop.f32.mrf.mxu3 }
 0x2a2   : > { %v2479_v39 = vadd.f32 %v2473_v36, %v2416_v57  ;;  %v2784_v45 = vpop.f32.mrf.mxu0  ;;  %v2847_v55 = vpop.f32.mrf.mxu1 }
 0x2a4   : > { %v2542_v15 = vadd.f32 %v2536_v26, %v2479_v39 }
 0x2a6   : > { %v2605_v63 = vadd.f32 %v2599_v22, %v2542_v15 }
 0x2a7   : > { %v2912_v8 = vpop.f32.mrf.mxu2 }
 0x2a8   : > { %v2666_v27 = vadd.f32 %v2660_v58, %v2605_v63  ;;  %v4690_v63 = vld [vmem:[%s5663_s5 + $0x18] sm:$0xff] }
 0x2a9   : > { %v2716_v41 = vpop.f32.mrf.mxu3 }
 0x2aa   : > { %v2786_v62 = vpop.f32.mrf.mxu0  ;;  %v2849_v3 = vpop.f32.mrf.mxu1  ;;  %v2726_v7 = vadd.f32 %v2716_v41, %v2663_v50 }
 0x2ac   : > { %v2789_v37 = vadd.f32 %v2779_v43, %v2726_v7 }
 0x2ae   : > { %v2852_v11 = vadd.f32 %v2842_v46, %v2789_v37 }
 0x2af   : > { %v3155_v17 = vpop.f32.mrf.mxu2 }
 0x2b0   : > { %v2915_v16 = vadd.f32 %v2905_v42, %v2852_v11 }
 0x2b1   : > { %v2718_v44 = vpop.f32.mrf.mxu3 }
 0x2b2   : > { %v2727_v21 = vadd.f32 %v2718_v44, %v2664_v23  ;;  %v3029_v1 = vpop.f32.mrf.mxu0  ;;  %v3092_v13 = vpop.f32.mrf.mxu1 }
 0x2b3   : > { %v3235_v44 = vpop.permute.xlu0 %3234 }
 0x2b4   : > { %v2790_v12 = vadd.f32 %v2781_v28, %v2727_v21 }
 0x2b6   : > { %v2853_v53 = vadd.f32 %v2844_v49, %v2790_v12  ;;  %v3240_v49 = vpop.permute.xlu1 %3239 }
 0x2b7   : > { %v3157_v34 = vpop.f32.mrf.mxu2 }
 0x2b8   : > { %v2916_v25 = vadd.f32 %v2907_v52, %v2853_v53  ;;  %v4687_v53 = vld [vmem:[%s5663_s5] sm:$0xff] }
 0x2b9   : > { %v2721_v48 = vpop.f32.mrf.mxu3 }
 0x2ba   : > { %v3031_v20 = vpop.f32.mrf.mxu0  ;;  %v2728_v57 = vadd.f32 %v2721_v48, %v2665_v18  ;;  %v3094_v29 = vpop.f32.mrf.mxu1  ;;  %v4689_v18 = vld [vmem:[%s5663_s5 + $0x10] sm:$0xff] }
 0x2bc   : > { %v2791_v31 = vadd.f32 %v2784_v45, %v2728_v57 }
 0x2be   : > { %v2854_v5 = vadd.f32 %v2847_v55, %v2791_v31 }
 0x2bf   : > { %v3160_v52 = vpop.f32.mrf.mxu2 }
 0x2c0   : > { %v2917_v40 = vadd.f32 %v2910_v51, %v2854_v5 }
 0x2c1   : > { %v2723_v54 = vpop.f32.mrf.mxu3 }
 0x2c2   : > { %v2729_v30 = vadd.f32 %v2723_v54, %v2666_v27  ;;  %v3034_v38 = vpop.f32.mrf.mxu0  ;;  %v3097_v41 = vpop.f32.mrf.mxu1 }
 0x2c4   : > { %v2792_v0 = vadd.f32 %v2786_v62, %v2729_v30  ;;  %v3312_v30 = vpop.permute.xlu0 %3311 }
 0x2c6   : > { %v2855_v26 = vadd.f32 %v2849_v3, %v2792_v0  ;;  %v3317_v0 = vpop.permute.xlu1 %3316 }
 0x2c7   : > { %v3162_v23 = vpop.f32.mrf.mxu2 }
 0x2c8   : > { %v2918_v42 = vadd.f32 %v2912_v8, %v2855_v26 }
 0x2c9   : > { %v2966_v59 = vpop.f32.mrf.mxu3 }
 0x2ca   : > { %v2976_v19 = vadd.f32 %v2966_v59, %v2915_v16  ;;  %v3036_v14 = vpop.f32.mrf.mxu0  ;;  %v3099_v47 = vpop.f32.mrf.mxu1 }
 0x2cc   : > { %v3039_v60 = vadd.f32 %v3029_v1, %v2976_v19  ;;  %v4691_v19 = vld [vmem:[%s5663_s5 + $0x20] sm:$0xff] }
 0x2ce   : > { %v3102_v32 = vadd.f32 %v3092_v13, %v3039_v60 }
 0x2d0   : > { %v3165_v36 = vadd.f32 %v3155_v17, %v3102_v32  ;;  %v4688_v17 = vld [vmem:[%s5663_s5 + $0x8] sm:$0xff] }
 0x2d1   : > { %v2968_v4 = vpop.f32.mrf.mxu3 }
 0x2d2   : > { %v2977_v2 = vadd.f32 %v2968_v4, %v2916_v25  ;;  %v4694_v25 = vld [vmem:[%s5663_s5 + $0x38] sm:$0xff] }
 0x2d4   : > { %v3040_v33 = vadd.f32 %v3031_v20, %v2977_v2  ;;  %v4692_v20 = vld [vmem:[%s5663_s5 + $0x28] sm:$0xff]  ;;  %v3525_v2 = vld [vmem:[%s5665_s7] sm:$0xff] }
 0x2d6   : > { %v3103_v39 = vadd.f32 %v3094_v29, %v3040_v33 }
 0x2d8   : > { %v3166_v43 = vadd.f32 %v3157_v34, %v3103_v39  ;;  %v3526_v34 = vld [vmem:[%s5665_s7 + $0x8] sm:$0xff]  ;;  %v3527_v39 = vld [vmem:[%s5665_s7 + $0x10] sm:$0xff] }
 0x2d9   : > { %v2971_v10 = vpop.f32.mrf.mxu3 }
 0x2da   : > { %v2978_v58 = vadd.f32 %v2971_v10, %v2917_v40  ;;  %v3250_v10 = vpop.permute.xlu2 %3249 }
 0x2dc   : > { %v3041_v54 = vadd.f32 %v3034_v38, %v2978_v58  ;;  %v3528_v58 = vld [vmem:[%s5665_s7 + $0x18] sm:$0xff] }
 0x2de   : > { %v3104_v51 = vadd.f32 %v3097_v41, %v3041_v54 }
 0x2e0   : > { %v3167_v4 = vadd.f32 %v3160_v52, %v3104_v51 }
 0x2e1   : > { %v2973_v24 = vpop.f32.mrf.mxu3 }
 0x2e2   : > { %v2979_v45 = vadd.f32 %v2973_v24, %v2918_v42  ;;  %v4693_v24 = vld [vmem:[%s5663_s5 + $0x30] sm:$0xff]  ;;  %v3307_v57 = vpop.permute.xlu2 %3306  ;;  %v3327_v42 = vpop.permute.xlu0 %3326 }
 0x2e4   : > { %v3042_v62 = vadd.f32 %v3036_v14, %v2979_v45  ;;  %v3332_v45 = vpop.permute.xlu1 %3331 }
 0x2e6   : > { %v3105_v7 = vadd.f32 %v3099_v47, %v3042_v62  ;;  %v3531_v47 = vld [vmem:[%s5665_s7 + $0x30] sm:$0xff] }
 0x2e8   : > { %v3168_v37 = vadd.f32 %v3162_v23, %v3105_v7 }
 0x2e9   : > { %v3218_v35 = vpop.f32.mrf.mxu3 }
 0x2ea   : > { %v3228_v22 = vadd.f32 %v3218_v35, %v3165_v36  ;;  %v3342_v7 = vpop.permute.xlu0 %3341 }
 0x2ec   : > { %v3252_v28 = vadd.f32 %v3235_v44, %v3228_v22  ;;  %v3322_v22 = vpop.permute.xlu2 %3321 }
 0x2ee   : > { %v3256_v59 = vmax.f32 %v3252_v28, 0.0 }
 0x2f1   : > { %v3220_v46 = vpop.f32.mrf.mxu3 }
 0x2f2   : > { %v3229_v48 = vadd.f32 %v3220_v46, %v3166_v43 }
 0x2f4   : > { %v3253_v55 = vadd.f32 %v3240_v49, %v3229_v48  ;;  %v3529_v49 = vld [vmem:[%s5665_s7 + $0x20] sm:$0xff]  ;;  %v3337_v51 = vpop.permute.xlu2 %3336 }
 0x2f6   : > { %v3257_v56 = vmax.f32 %v3253_v55, 0.0 }
 0x2f8   : > { %v4698_v50 = vpack.c.bf16 %v3257_v56, %v3256_v59  ;;  %v3530_v59 = vld [vmem:[%s5665_s7 + $0x28] sm:$0xff] }
 0x2f9   : > { %v3223_v3 = vpop.f32.mrf.mxu3 }
 0x2fa   : > { %4699 = vst [vmem:[#allocation3] sm:$0xff] %v4698_v50   ;;  %v3230_v8 = vadd.f32 %v3223_v3, %v3167_v4 }
 0x2fc   : > { %v3254_v1 = vadd.f32 %v3245_v61, %v3230_v8 }
 0x2fe   : > { %v3258_v12 = vmax.f32 %v3254_v1, 0.0 }
 0x301   : > { %v3225_v21 = vpop.f32.mrf.mxu3  ;;  %v4685_v16 = vld [vmem:[#allocation3] sm:$0xff] }
 0x302   : > { %v3231_v9 = vadd.f32 %v3225_v21, %v3168_v37  ;;  %v3532_v37 = vld [vmem:[%s5665_s7 + $0x38] sm:$0xff] }
 0x304   : > { %v3255_v11 = vadd.f32 %v3250_v10, %v3231_v9  ;;  %v3347_v9 = vpop.permute.xlu1 %3346 }
 0x306   : > { %v3259_v13 = vmax.f32 %v3255_v11, 0.0 }
 0x308   : > { %v4703_v6 = vpack.c.bf16 %v3259_v13, %v3258_v12  ;;  %v3533_v12 = vld [vmem:[%s5665_s7 + $0x40] sm:$0xff] }
 0x30a   : > { %4705 = vst [vmem:[#allocation3 + $0x8] sm:$0xff] %v4703_v6  }
 0x311   : > { %v4686_v15 = vld [vmem:[#allocation3 + $0x8] sm:$0xff] }
 0x312   : > { %3466 = vmatpush.bf16.msra.mxu0 %v4686_v15  ;;  %v3352_v15 = vpop.permute.xlu2 %3351 }
 0x316   : > { %3467 = vmatpush.bf16.msra.mxu0 %v4685_v16 }
 0x319   : > { %4537 = vmatmul.msk.bf16.vlgmr.msra.gmra.mxu0 %vm1718_vm3, %v4687_v53 }
 0x329   : > { %4538 = vmatmul.msk.bf16.gmra.mxu0 %vm1718_vm3, %v4688_v17  ;;  %v3534_v17 = vld [vmem:[%s5665_s7 + $0x48] sm:$0xff] }
 0x339   : > { %4539 = vmatmul.msk.bf16.gmra.mxu0 %vm1718_vm3, %v4689_v18 }
 0x349   : > { %4540 = vmatmul.msk.bf16.gmra.mxu0 %vm1718_vm3, %v4690_v63 }
 0x359   : > { %4541 = vmatmul.msk.bf16.gmra.mxu0 %vm1718_vm3, %v4691_v19  ;;  %v3357_v19 = vpop.permute.xlu0 %3356 }
 0x369   : > { %4542 = vmatmul.msk.bf16.gmra.mxu0 %vm1718_vm3, %v4692_v20 }
 0x379   : > { %4543 = vmatmul.msk.bf16.gmra.mxu0 %vm1718_vm3, %v4693_v24 }
 0x389   : > { %4544 = vmatmul.msk.bf16.gmra.mxu0 %vm1718_vm3, %v4694_v25  ;;  %v3535_v25 = vld [vmem:[%s5665_s7 + $0x50] sm:$0xff] }
 0x396   : > { %v3469_v27 = vpop.f32.mrf.mxu0 }
 0x397   : > { %v3470_v60 = vadd.f32 %v3469_v27, %v3307_v57 }
 0x399   : > { %v3509_v29 = vmul.f32 5.656854, %v3470_v60  ;;  %v3362_v60 = vpop.permute.xlu1 %3361 }
 0x39b   : > { %v3541_v31 = vadd.f32 %v3525_v2, %v3509_v29 }
 0x39d   : > { %3557 = vst [vmem:[%s5586_s11] sm:$0xff] %v3541_v31  ;;  %v3536_v31 = vld [vmem:[%s5665_s7 + $0x58] sm:$0xff] }
 0x39e   : > { %v3471_v32 = vpop.f32.mrf.mxu0 }
 0x39f   : > { %v3472_v33 = vadd.f32 %v3471_v32, %v3312_v30 }
 0x3a1   : > { %v3510_v35 = vmul.f32 5.656854, %v3472_v33  ;;  %v3367_v33 = vpop.permute.xlu2 %3366 }
 0x3a3   : > { %v3542_v5 = vadd.f32 %v3526_v34, %v3510_v35 }
 0x3a5   : > { %3558 = vst [vmem:[%s5586_s11 + $0x8] sm:$0xff] %v3542_v5  ;;  %v3537_v5 = vld [vmem:[%s5665_s7 + $0x60] sm:$0xff] }
 0x3a6   : > { %v3474_v38 = vpop.f32.mrf.mxu0 }
 0x3a7   : > { %v3475_v36 = vadd.f32 %v3474_v38, %v3317_v0 }
 0x3a9   : > { %v3511_v40 = vmul.f32 5.656854, %v3475_v36  ;;  %v3372_v36 = vpop.permute.xlu0 %3371 }
 0x3ab   : > { %v3543_v26 = vadd.f32 %v3527_v39, %v3511_v40 }
 0x3ad   : > { %3559 = vst [vmem:[%s5586_s11 + $0x10] sm:$0xff] %v3543_v26  ;;  %v3538_v26 = vld [vmem:[%s5665_s7 + $0x68] sm:$0xff] }
 0x3ae   : > { %v3476_v41 = vpop.f32.mrf.mxu0 }
 0x3af   : > { %v3477_v43 = vadd.f32 %v3476_v41, %v3322_v22 }
 0x3b1   : > { %v3512_v44 = vmul.f32 5.656854, %v3477_v43  ;;  %v3377_v43 = vpop.permute.xlu1 %3376 }
 0x3b3   : > { %v3544_v46 = vadd.f32 %v3528_v58, %v3512_v44 }
 0x3b5   : > { %3560 = vst [vmem:[%s5586_s11 + $0x18] sm:$0xff] %v3544_v46  ;;  %v3539_v46 = vld [vmem:[%s5665_s7 + $0x70] sm:$0xff] }
 0x3b6   : > { %v3479_v28 = vpop.f32.mrf.mxu0 }
 0x3b7   : > { %v3480_v48 = vadd.f32 %v3479_v28, %v3327_v42 }
 0x3b9   : > { %v3513_v52 = vmul.f32 5.656854, %v3480_v48  ;;  %v3382_v48 = vpop.permute.xlu2 %3381 }
 0x3bb   : > { %v3545_v54 = vadd.f32 %v3529_v49, %v3513_v52 }
 0x3bd   : > { %3561 = vst [vmem:[%s5586_s11 + $0x20] sm:$0xff] %v3545_v54  ;;  %v3540_v54 = vld [vmem:[%s5665_s7 + $0x78] sm:$0xff] }
 0x3be   : > { %v3481_v55 = vpop.f32.mrf.mxu0 }
 0x3bf   : > { %v3482_v14 = vadd.f32 %v3481_v55, %v3332_v45 }
 0x3c1   : > { %v3514_v56 = vmul.f32 5.656854, %v3482_v14 }
 0x3c3   : > { %v3546_v61 = vadd.f32 %v3530_v59, %v3514_v56 }
 0x3c5   : > { %3562 = vst [vmem:[%s5586_s11 + $0x28] sm:$0xff] %v3546_v61 }
 0x3c6   : > { %v3484_v62 = vpop.f32.mrf.mxu0 }
 0x3c7   : > { %v3485_v50 = vadd.f32 %v3484_v62, %v3337_v51 }
 0x3c9   : > { %v3515_v3 = vmul.f32 5.656854, %v3485_v50 }
 0x3cb   : > { %v3547_v4 = vadd.f32 %v3531_v47, %v3515_v3 }
 0x3cd   : > { %3563 = vst [vmem:[%s5586_s11 + $0x30] sm:$0xff] %v3547_v4 }
 0x3ce   : > { %v3486_v23 = vpop.f32.mrf.mxu0 }
 0x3cf   : > { %v3487_v8 = vadd.f32 %v3486_v23, %v3342_v7 }
 0x3d1   : > { %v3516_v21 = vmul.f32 5.656854, %v3487_v8 }
 0x3d3   : > { %v3548_v1 = vadd.f32 %v3532_v37, %v3516_v21 }
 0x3d5   : > { %3564 = vst [vmem:[%s5586_s11 + $0x38] sm:$0xff] %v3548_v1 }
 0x3d6   : > { %v3489_v10 = vpop.f32.mrf.mxu0 }
 0x3d7   : > { %v3490_v11 = vadd.f32 %v3489_v10, %v3347_v9 }
 0x3d9   : > { %v3517_v13 = vmul.f32 5.656854, %v3490_v11 }
 0x3db   : > { %v3549_v6 = vadd.f32 %v3533_v12, %v3517_v13 }
 0x3dd   : > { %3565 = vst [vmem:[%s5586_s11 + $0x40] sm:$0xff] %v3549_v6 }
 0x3de   : > { %v3491_v16 = vpop.f32.mrf.mxu0 }
 0x3df   : > { %v3492_v53 = vadd.f32 %v3491_v16, %v3352_v15 }
 0x3e1   : > { %v3518_v18 = vmul.f32 5.656854, %v3492_v53 }
 0x3e3   : > { %v3550_v63 = vadd.f32 %v3534_v17, %v3518_v18 }
 0x3e5   : > { %3566 = vst [vmem:[%s5586_s11 + $0x48] sm:$0xff] %v3550_v63 }
 0x3e6   : > { %v3494_v20 = vpop.f32.mrf.mxu0 }
 0x3e7   : > { %v3495_v24 = vadd.f32 %v3494_v20, %v3357_v19 }
 0x3e9   : > { %v3519_v57 = vmul.f32 5.656854, %v3495_v24 }
 0x3eb   : > { %v3551_v27 = vadd.f32 %v3535_v25, %v3519_v57 }
 0x3ed   : > { %3567 = vst [vmem:[%s5586_s11 + $0x50] sm:$0xff] %v3551_v27 }
 0x3ee   : > { %v3496_v2 = vpop.f32.mrf.mxu0 }
 0x3ef   : > { %v3497_v29 = vadd.f32 %v3496_v2, %v3362_v60 }
 0x3f1   : > { %v3520_v30 = vmul.f32 5.656854, %v3497_v29 }
 0x3f3   : > { %v3552_v32 = vadd.f32 %v3536_v31, %v3520_v30 }
 0x3f5   : > { %3568 = vst [vmem:[%s5586_s11 + $0x58] sm:$0xff] %v3552_v32 }
 0x3f6   : > { %v3499_v34 = vpop.f32.mrf.mxu0 }
 0x3f7   : > { %v3500_v35 = vadd.f32 %v3499_v34, %v3367_v33 }
 0x3f9   : > { %v3521_v0 = vmul.f32 5.656854, %v3500_v35 }
 0x3fb   : > { %v3553_v38 = vadd.f32 %v3537_v5, %v3521_v0 }
 0x3fd   : > { %3569 = vst [vmem:[%s5586_s11 + $0x60] sm:$0xff] %v3553_v38 }
 0x3fe   : > { %v3501_v39 = vpop.f32.mrf.mxu0 }
 0x3ff   : > { %v3502_v40 = vadd.f32 %v3501_v39, %v3372_v36 }
 0x401   : > { %v3522_v22 = vmul.f32 5.656854, %v3502_v40 }
 0x403   : > { %v3554_v41 = vadd.f32 %v3538_v26, %v3522_v22 }
 0x405   : > { %3570 = vst [vmem:[%s5586_s11 + $0x68] sm:$0xff] %v3554_v41 }
 0x406   : > { %v3504_v58 = vpop.f32.mrf.mxu0 }
 0x407   : > { %v3505_v44 = vadd.f32 %v3504_v58, %v3377_v43 }
 0x409   : > { %v3523_v42 = vmul.f32 5.656854, %v3505_v44 }
 0x40b   : > { %v3555_v28 = vadd.f32 %v3539_v46, %v3523_v42 }
 0x40d   : > { %3571 = vst [vmem:[%s5586_s11 + $0x70] sm:$0xff] %v3555_v28 }
 0x40e   : > { %v3506_v49 = vpop.f32.mrf.mxu0 }
 0x40f   : > { %v3507_v52 = vadd.f32 %v3506_v49, %v3382_v48 }
 0x411   : > { %v3524_v45 = vmul.f32 5.656854, %v3507_v52 }
 0x413   : > { %v3556_v55 = vadd.f32 %v3540_v54, %v3524_v45 }
 0x415   : > { %3572 = vst [vmem:[%s5586_s11 + $0x78] sm:$0xff] %v3556_v55 }
 0x416 PF: > { %s18_s29 = sadd.s32 1, %s4760_s29   ;;  %s5667_s27 = smov %s4756_s28 }
 0x417   : > { %p15_p5 = scmp.ge.s32.totalorder %s18_s29, 4   ;;  %s5668_s28 = smov %s5670_s30 }
 0x419   :  { %17 = sbr.rel (!%p15_p5) target bundleno = 2 (0x2), region = 141 }

</bundles_post_ra>
